<compile_context>
chip_gen: v6e
topology: v6e:2x2x1
jax: 0.10.0
libtpu: 0.0.40
codegen_flags: <defaults>
</compile_context>

<pallas_src>
import functools

import jax
import jax.numpy as jnp
from jax import lax
from jax.experimental import pallas as pl
from jax.experimental.pallas import tpu as pltpu


def _fullfc_kernel(n_valid, tm, with_loss, *refs):
    f32, bf16 = jnp.float32, jnp.bfloat16

    it = iter(refs)
    emb_ref = next(it)
    other_ref = next(it)
    label_ref = next(it) if with_loss else None
    (w_e1, b_e1, w_e2, b_e2, w_o1, b_o1,
     w_f3, b_f3, w_f_t, b_f) = [next(it) for _ in range(10)]
    pred_ref = next(it)
    loss_ref = next(it) if with_loss else None

    # ---- load f32 activations, cast to bf16 in-kernel (no wrapper copy) ----
    emb = emb_ref[...].astype(bf16)                          # [tm, emb_dim]
    oth = other_ref[...].astype(bf16)                        # [tm, other_dim]

    # ---- emb branch: bf16 MXU inputs, f32 accumulate, f32 elementwise ----
    h = jnp.dot(emb, w_e1[...], preferred_element_type=f32) + b_e1[...]
    h = jnp.maximum(h, 0.0)                                  # [tm, 256]
    e_h = jnp.dot(h.astype(bf16), w_e2[...], preferred_element_type=f32) + b_e2[...]
    e_h = jnp.maximum(e_h, 0.0)                              # [tm, 64]

    # ---- other branch ----
    o_h = jnp.dot(oth, w_o1[...], preferred_element_type=f32) + b_o1[...]
    o_h = jnp.maximum(o_h, 0.0)                              # [tm, 64]

    # ---- fused 64->32 layers: block-diagonal [128, 64] matmul ----
    cat = jnp.concatenate([e_h.astype(bf16), o_h.astype(bf16)], axis=1)  # [tm,128]
    f = jnp.dot(cat, w_f3[...], preferred_element_type=f32) + b_f3[...]
    f = jnp.maximum(f, 0.0)                                  # [tm,64] = [emb32|other32]

    # ---- final 64->1 layer, batch-on-lanes: logits [1, tm] (lane dense) ----
    dn = (((1,), (1,)), ((), ()))
    logits = lax.dot_general(w_f_t[...], f.astype(bf16), dn,
                             preferred_element_type=f32) + b_f[...]      # [1, tm]

    # 'test' output (dropouts identity -> single sigmoid), unmasked vst
    pred_ref[...] = jax.nn.sigmoid(logits).reshape(1, 1, tm)

    if with_loss:
        # per-tile partial BCE-with-logits sum; padded rows masked by select
        y = label_ref[...].reshape(1, tm)
        col = lax.broadcasted_iota(jnp.int32, (1, tm), 1)
        valid = (pl.program_id(0) * tm + col) < n_valid
        z = logits
        bce = jnp.maximum(z, 0.0) - z * y + jnp.log1p(jnp.exp(-jnp.abs(z)))
        bce = jnp.where(valid, bce, 0.0)
        loss_ref[...] = jnp.sum(bce).reshape(1, 1, 1)


def init_params(key, emb_dim, other_f_dim):
    """PyTorch-Linear-style init; weights stored as [in, out], biases [1, out]."""
    def linear(key, fan_in, fan_out):
        kw, kb = jax.random.split(key)
        bound = 1.0 / jnp.sqrt(jnp.float32(fan_in))
        w = jax.random.uniform(kw, (fan_in, fan_out), jnp.float32, -bound, bound)
        b = jax.random.uniform(kb, (1, fan_out), jnp.float32, -bound, bound)
        return w, b

    keys = jax.random.split(key, 6)
    w_e1, b_e1 = linear(keys[0], emb_dim, 256)
    w_e2, b_e2 = linear(keys[1], 256, 64)
    w_e3, b_e3 = linear(keys[2], 64, 32)
    w_o1, b_o1 = linear(keys[3], other_f_dim, 64)
    w_o2, b_o2 = linear(keys[4], 64, 32)
    w_f, b_f = linear(keys[5], 64, 1)
    return (w_e1, b_e1, w_e2, b_e2, w_e3, b_e3,
            w_o1, b_o1, w_o2, b_o2, w_f, b_f)


@functools.partial(jax.jit, static_argnames=("tm", "mode"))
def fullfc_forward(emb, other, label, params, *, tm=512, mode="train"):
    """mode='train' -> (pred [N,1] f32, loss scalar f32); mode='test' -> pred."""
    assert mode in ("train", "test")
    assert tm % 128 == 0, "tm must be a multiple of 128 (lane-dense tail)"
    n, emb_dim = emb.shape
    other_dim = other.shape[1]
    num_tiles = pl.cdiv(n, tm)
    pad = num_tiles * tm - n
    f32, bf16 = jnp.float32, jnp.bfloat16

    # Stream activations as f32 (cast to bf16 inside the kernel).  Pad only the
    # ragged remainder; no copy at all when N % tm == 0.
    emb_in = emb if pad == 0 else jnp.pad(emb, ((0, pad), (0, 0)))
    other_in = other if pad == 0 else jnp.pad(other, ((0, pad), (0, 0)))

    (w_e1, b_e1, w_e2, b_e2, w_e3, b_e3,
     w_o1, b_o1, w_o2, b_o2, w_f, b_f) = params

    # Block-diagonal fusion of the two 64->32 layers; final layer as [1,64].
    w_f3 = jnp.zeros((128, 64), f32)
    w_f3 = w_f3.at[:64, :32].set(w_e3).at[64:, 32:].set(w_o2)
    b_f3 = jnp.concatenate([b_e3, b_o2], axis=1)                   # [1, 64]

    bf = lambda w: w.astype(bf16)
    weights = (bf(w_e1), b_e1, bf(w_e2), b_e2, bf(w_o1), b_o1,
               bf(w_f3), b_f3, bf(w_f.T), b_f)                     # b_f: [1, 1]

    resident = lambda a: pl.BlockSpec(a.shape, lambda i: (0, 0))   # VMEM-resident
    # If a v5e profile shows exposed DMA on the activation streams, add
    # pipeline_mode=pl.Buffered(3) to the two specs below.
    in_specs = [pl.BlockSpec((tm, emb_dim), lambda i: (i, 0)),
                pl.BlockSpec((tm, other_dim), lambda i: (i, 0))]
    operands = [emb_in, other_in]

    with_loss = (mode == "train")
    if with_loss:
        label_p = jnp.pad(label.reshape(-1).astype(f32), (0, pad))
        operands.append(label_p.reshape(num_tiles, 1, tm))
        in_specs.append(pl.BlockSpec((1, 1, tm), lambda i: (i, 0, 0)))
    in_specs += [resident(a) for a in weights]
    operands += list(weights)

    out_specs = [pl.BlockSpec((1, 1, tm), lambda i: (i, 0, 0))]
    out_shape = [jax.ShapeDtypeStruct((num_tiles, 1, tm), f32)]
    if with_loss:
        out_specs.append(pl.BlockSpec((1, 1, 1), lambda i: (i, 0, 0)))
        out_shape.append(jax.ShapeDtypeStruct((num_tiles, 1, 1), f32))

    # Raise the scoped VMEM limit only for very large tiles (relevant on v7x's
    # 64 MiB physical VMEM; default scoped limits are ample for tm <= 1024).
    vmem_limit = 48 * 1024 * 1024 if tm >= 2048 else None

    outs = pl.pallas_call(
        functools.partial(_fullfc_kernel, n, tm, with_loss),
        grid=(num_tiles,),
        in_specs=in_specs,
        out_specs=out_specs,
        out_shape=out_shape,
        # No cross-tile accumulation -> batch axis shardable across v7x cores.
        # Switch to pltpu.CORE_PARALLEL if a v7x profile shows one idle core.
        compiler_params=pltpu.CompilerParams(
            dimension_semantics=("parallel",),
            vmem_limit_bytes=vmem_limit),
    )(*operands)

    pred = outs[0].reshape(-1)[:n].reshape(n, 1)
    if not with_loss:
        return pred
    loss = jnp.sum(outs[1]) / jnp.float32(n)
    return pred, loss


def reference_forward(emb, other, label, params):
    """Pure-JAX reference with the same bf16-input / f32-accumulate matmuls."""
    (w_e1, b_e1, w_e2, b_e2, w_e3, b_e3,
     w_o1, b_o1, w_o2, b_o2, w_f, b_f) = params
    bf16, f32 = jnp.bfloat16, jnp.float32
    dot = lambda a, w: jnp.dot(a.astype(bf16), w.astype(bf16),
                               preferred_element_type=f32)
    e = jax.nn.relu(dot(emb, w_e1) + b_e1)
    e = jax.nn.relu(dot(e, w_e2) + b_e2)
    e = jax.nn.relu(dot(e, w_e3) + b_e3)
    o = jax.nn.relu(dot(other, w_o1) + b_o1)
    o = jax.nn.relu(dot(o, w_o2) + b_o2)
    z = dot(jnp.concatenate([e, o], axis=1), w_f) + b_f            # [N, 1]
    pred = jax.nn.sigmoid(z)
    lbl = label.reshape(-1, 1).astype(f32)
    bce = jnp.maximum(z, 0.0) - z * lbl + jnp.log1p(jnp.exp(-jnp.abs(z)))
    return pred, jnp.mean(bce)


if __name__ == "__main__":
    N, EMB_DIM, OTHER_DIM = 200, 96, 24          # ragged vs. tm on purpose

    key = jax.random.PRNGKey(0)
    k_emb, k_oth, k_lbl, k_par = jax.random.split(key, 4)
    emb = jax.random.normal(k_emb, (N, EMB_DIM), jnp.float32)
    other = jax.random.normal(k_oth, (N, OTHER_DIM), jnp.float32)
    label = jax.random.bernoulli(k_lbl, 0.5, (N,)).astype(jnp.float32)
    params = init_params(k_par, EMB_DIM, OTHER_DIM)

    ref_pred, ref_loss = reference_forward(emb, other, label, params)

    # train mode: default tile (single ragged tile) and small tile (multi-tile)
    for tm in (512, 128):
        pred, loss = fullfc_forward(emb, other, label, params, tm=tm, mode="train")
        jax.block_until_ready((pred, loss))
        assert pred.shape == (N, 1)
        assert jnp.allclose(pred, ref_pred, atol=2e-3, rtol=2e-3), (
            tm, float(jnp.max(jnp.abs(pred - ref_pred))))
        assert jnp.allclose(loss, ref_loss, atol=2e-3, rtol=2e-3), (
            tm, float(loss), float(ref_loss))

    # test mode: no label input / loss output plumbed at all
    pred_t = fullfc_forward(emb, other, label, params, tm=512, mode="test")
    jax.block_until_ready(pred_t)
    assert pred_t.shape == (N, 1)
    assert jnp.allclose(pred_t, ref_pred, atol=2e-3, rtol=2e-3), (
        float(jnp.max(jnp.abs(pred_t - ref_pred))))

    print("KERNEL_OK")
</pallas_src>

<mosaic_0001>
module attributes {stable_mosaic.version = 11 : i64} {
  func.func @_fullfc_kernel(%arg0: i32, %arg1: memref<512x96xf32, #tpu.memory_space<vmem>>, %arg2: memref<512x24xf32, #tpu.memory_space<vmem>>, %arg3: memref<1x1x512xf32, #tpu.memory_space<vmem>>, %arg4: memref<96x256xbf16, #tpu.memory_space<vmem>>, %arg5: memref<1x256xf32, #tpu.memory_space<vmem>>, %arg6: memref<256x64xbf16, #tpu.memory_space<vmem>>, %arg7: memref<1x64xf32, #tpu.memory_space<vmem>>, %arg8: memref<24x64xbf16, #tpu.memory_space<vmem>>, %arg9: memref<1x64xf32, #tpu.memory_space<vmem>>, %arg10: memref<128x64xbf16, #tpu.memory_space<vmem>>, %arg11: memref<1x64xf32, #tpu.memory_space<vmem>>, %arg12: memref<1x64xbf16, #tpu.memory_space<vmem>>, %arg13: memref<1x1xf32, #tpu.memory_space<vmem>>, %arg14: memref<1x1x512xf32, #tpu.memory_space<vmem>>, %arg15: memref<1x1x1xf32, #tpu.memory_space<vmem>>) attributes {dimension_semantics = [#tpu.dimension_semantics<parallel>], iteration_bounds = array<i64: 1>, scalar_prefetch = 0 : i64, scratch_operands = 0 : i64, tpu.core_type = #tpu.core_type<tc>, window_params = [{transform_indices = @transform_0, window_bounds = array<i64: 512, 96>}, {transform_indices = @transform_1, window_bounds = array<i64: 512, 24>}, {transform_indices = @transform_2, window_bounds = array<i64: 1, 1, 512>}, {pipeline_mode = #tpu.pipeline_mode<synchronous>, transform_indices = @transform_3, window_bounds = array<i64: 96, 256>}, {pipeline_mode = #tpu.pipeline_mode<synchronous>, transform_indices = @transform_4, window_bounds = array<i64: 1, 256>}, {pipeline_mode = #tpu.pipeline_mode<synchronous>, transform_indices = @transform_5, window_bounds = array<i64: 256, 64>}, {pipeline_mode = #tpu.pipeline_mode<synchronous>, transform_indices = @transform_6, window_bounds = array<i64: 1, 64>}, {pipeline_mode = #tpu.pipeline_mode<synchronous>, transform_indices = @transform_7, window_bounds = array<i64: 24, 64>}, {pipeline_mode = #tpu.pipeline_mode<synchronous>, transform_indices = @transform_8, window_bounds = array<i64: 1, 64>}, {pipeline_mode = #tpu.pipeline_mode<synchronous>, transform_indices = @transform_9, window_bounds = array<i64: 128, 64>}, {pipeline_mode = #tpu.pipeline_mode<synchronous>, transform_indices = @transform_10, window_bounds = array<i64: 1, 64>}, {pipeline_mode = #tpu.pipeline_mode<synchronous>, transform_indices = @transform_11, window_bounds = array<i64: 1, 64>}, {pipeline_mode = #tpu.pipeline_mode<synchronous>, transform_indices = @transform_12, window_bounds = array<i64: 1, 1>}, {transform_indices = @transform_13, window_bounds = array<i64: 1, 1, 512>}, {transform_indices = @transform_14, window_bounds = array<i64: 1, 1, 1>}]} {
    %c0 = arith.constant 0 : index
    %c0_0 = arith.constant 0 : index
    %0 = vector.load %arg1[%c0, %c0_0] : memref<512x96xf32, #tpu.memory_space<vmem>>, vector<512x96xf32>
    %1 = arith.truncf %0 : vector<512x96xf32> to vector<512x96xbf16>
    %c0_1 = arith.constant 0 : index
    %c0_2 = arith.constant 0 : index
    %2 = vector.load %arg2[%c0_1, %c0_2] : memref<512x24xf32, #tpu.memory_space<vmem>>, vector<512x24xf32>
    %3 = arith.truncf %2 : vector<512x24xf32> to vector<512x24xbf16>
    %c0_3 = arith.constant 0 : index
    %c0_4 = arith.constant 0 : index
    %4 = vector.load %arg4[%c0_3, %c0_4] : memref<96x256xbf16, #tpu.memory_space<vmem>>, vector<96x256xbf16>
    %cst = arith.constant dense<0.000000e+00> : vector<512x256xf32>
    %5 = tpu.matmul %1, %4, %cst {dimension_numbers = #tpu.dot_dimension_numbers<[1], [0], [0], [1], [0, 0, 1, 1], [], []>} : vector<512x96xbf16>, vector<96x256xbf16>, vector<512x256xf32> -> vector<512x256xf32>
    %c0_5 = arith.constant 0 : index
    %c0_6 = arith.constant 0 : index
    %6 = vector.load %arg5[%c0_5, %c0_6] : memref<1x256xf32, #tpu.memory_space<vmem>>, vector<1x256xf32>
    %7 = vector.broadcast %6 : vector<1x256xf32> to vector<512x256xf32>
    %8 = arith.addf %5, %7 : vector<512x256xf32>
    %cst_7 = arith.constant 0.000000e+00 : f32
    %9 = vector.broadcast %cst_7 : f32 to vector<512x256xf32>
    %10 = arith.maximumf %8, %9 : vector<512x256xf32>
    %11 = arith.truncf %10 : vector<512x256xf32> to vector<512x256xbf16>
    %c0_8 = arith.constant 0 : index
    %c0_9 = arith.constant 0 : index
    %12 = vector.load %arg6[%c0_8, %c0_9] : memref<256x64xbf16, #tpu.memory_space<vmem>>, vector<256x64xbf16>
    %cst_10 = arith.constant dense<0.000000e+00> : vector<512x64xf32>
    %13 = tpu.matmul %11, %12, %cst_10 {dimension_numbers = #tpu.dot_dimension_numbers<[1], [0], [0], [1], [0, 0, 1, 1], [], []>} : vector<512x256xbf16>, vector<256x64xbf16>, vector<512x64xf32> -> vector<512x64xf32>
    %c0_11 = arith.constant 0 : index
    %c0_12 = arith.constant 0 : index
    %14 = vector.load %arg7[%c0_11, %c0_12] : memref<1x64xf32, #tpu.memory_space<vmem>>, vector<1x64xf32>
    %15 = vector.broadcast %14 : vector<1x64xf32> to vector<512x64xf32>
    %16 = arith.addf %13, %15 : vector<512x64xf32>
    %cst_13 = arith.constant 0.000000e+00 : f32
    %17 = vector.broadcast %cst_13 : f32 to vector<512x64xf32>
    %18 = arith.maximumf %16, %17 : vector<512x64xf32>
    %c0_14 = arith.constant 0 : index
    %c0_15 = arith.constant 0 : index
    %19 = vector.load %arg8[%c0_14, %c0_15] : memref<24x64xbf16, #tpu.memory_space<vmem>>, vector<24x64xbf16>
    %cst_16 = arith.constant dense<0.000000e+00> : vector<512x64xf32>
    %20 = tpu.matmul %3, %19, %cst_16 {dimension_numbers = #tpu.dot_dimension_numbers<[1], [0], [0], [1], [0, 0, 1, 1], [], []>} : vector<512x24xbf16>, vector<24x64xbf16>, vector<512x64xf32> -> vector<512x64xf32>
    %c0_17 = arith.constant 0 : index
    %c0_18 = arith.constant 0 : index
    %21 = vector.load %arg9[%c0_17, %c0_18] : memref<1x64xf32, #tpu.memory_space<vmem>>, vector<1x64xf32>
    %22 = vector.broadcast %21 : vector<1x64xf32> to vector<512x64xf32>
    %23 = arith.addf %20, %22 : vector<512x64xf32>
    %cst_19 = arith.constant 0.000000e+00 : f32
    %24 = vector.broadcast %cst_19 : f32 to vector<512x64xf32>
    %25 = arith.maximumf %23, %24 : vector<512x64xf32>
    %26 = arith.truncf %18 : vector<512x64xf32> to vector<512x64xbf16>
    %27 = arith.truncf %25 : vector<512x64xf32> to vector<512x64xbf16>
    %28 = tpu.concatenate %26, %27 in 1 : vector<512x64xbf16>, vector<512x64xbf16> -> vector<512x128xbf16>
    %c0_20 = arith.constant 0 : index
    %c0_21 = arith.constant 0 : index
    %29 = vector.load %arg10[%c0_20, %c0_21] : memref<128x64xbf16, #tpu.memory_space<vmem>>, vector<128x64xbf16>
    %cst_22 = arith.constant dense<0.000000e+00> : vector<512x64xf32>
    %30 = tpu.matmul %28, %29, %cst_22 {dimension_numbers = #tpu.dot_dimension_numbers<[1], [0], [0], [1], [0, 0, 1, 1], [], []>} : vector<512x128xbf16>, vector<128x64xbf16>, vector<512x64xf32> -> vector<512x64xf32>
    %c0_23 = arith.constant 0 : index
    %c0_24 = arith.constant 0 : index
    %31 = vector.load %arg11[%c0_23, %c0_24] : memref<1x64xf32, #tpu.memory_space<vmem>>, vector<1x64xf32>
    %32 = vector.broadcast %31 : vector<1x64xf32> to vector<512x64xf32>
    %33 = arith.addf %30, %32 : vector<512x64xf32>
    %cst_25 = arith.constant 0.000000e+00 : f32
    %34 = vector.broadcast %cst_25 : f32 to vector<512x64xf32>
    %35 = arith.maximumf %33, %34 : vector<512x64xf32>
    %c0_26 = arith.constant 0 : index
    %c0_27 = arith.constant 0 : index
    %36 = vector.load %arg12[%c0_26, %c0_27] : memref<1x64xbf16, #tpu.memory_space<vmem>>, vector<1x64xbf16>
    %37 = arith.truncf %35 : vector<512x64xf32> to vector<512x64xbf16>
    %cst_28 = arith.constant dense<0.000000e+00> : vector<1x512xf32>
    %38 = tpu.matmul %36, %37, %cst_28 {dimension_numbers = #tpu.dot_dimension_numbers<[1], [1], [0], [0], [0, 0, 1, 0], [], []>} : vector<1x64xbf16>, vector<512x64xbf16>, vector<1x512xf32> -> vector<1x512xf32>
    %c0_29 = arith.constant 0 : index
    %c0_30 = arith.constant 0 : index
    %39 = vector.load %arg13[%c0_29, %c0_30] : memref<1x1xf32, #tpu.memory_space<vmem>>, vector<1x1xf32>
    %40 = vector.broadcast %39 : vector<1x1xf32> to vector<1x512xf32>
    %41 = arith.addf %38, %40 : vector<1x512xf32>
    %42 = arith.negf %41 : vector<1x512xf32>
    %43 = math.exp %42 : vector<1x512xf32>
    %cst_31 = arith.constant 1.000000e+00 : f32
    %44 = vector.broadcast %cst_31 : f32 to vector<1x512xf32>
    %45 = arith.addf %44, %43 : vector<1x512xf32>
    %46 = arith.divf %44, %45 : vector<1x512xf32>
    %47 = vector.shape_cast %46 : vector<1x512xf32> to vector<1x1x512xf32>
    %c0_32 = arith.constant 0 : index
    %c0_33 = arith.constant 0 : index
    %c0_34 = arith.constant 0 : index
    %48 = vector.load %arg14[%c0_32, %c0_33, %c0_34] : memref<1x1x512xf32, #tpu.memory_space<vmem>>, vector<1x1x512xf32>
    tpu.vector_store %arg14[%c0_32, %c0_33, %c0_34], %47 {strides = array<i32>} : memref<1x1x512xf32, #tpu.memory_space<vmem>>, vector<1x1x512xf32>,
    %c0_35 = arith.constant 0 : index
    %c0_36 = arith.constant 0 : index
    %c0_37 = arith.constant 0 : index
    %49 = vector.load %arg3[%c0_35, %c0_36, %c0_37] : memref<1x1x512xf32, #tpu.memory_space<vmem>>, vector<1x1x512xf32>
    %50 = vector.shape_cast %49 : vector<1x1x512xf32> to vector<1x512xf32>
    %51 = tpu.iota {dimensions = array<i32: 1>} : vector<1x512xi32>
    %c512_i32 = arith.constant 512 : i32
    %52 = arith.muli %arg0, %c512_i32 : i32
    %53 = vector.broadcast %52 : i32 to vector<1x512xi32>
    %54 = arith.addi %53, %51 : vector<1x512xi32>
    %c200_i32 = arith.constant 200 : i32
    %55 = vector.broadcast %c200_i32 : i32 to vector<1x512xi32>
    %56 = arith.cmpi slt, %54, %55 : vector<1x512xi32>
    %cst_38 = arith.constant 0.000000e+00 : f32
    %57 = vector.broadcast %cst_38 : f32 to vector<1x512xf32>
    %58 = arith.maximumf %41, %57 : vector<1x512xf32>
    %59 = arith.mulf %41, %50 : vector<1x512xf32>
    %60 = arith.subf %58, %59 : vector<1x512xf32>
    %61 = math.absf %41 : vector<1x512xf32>
    %cst_39 = arith.constant 0.000000e+00 : f32
    %62 = vector.broadcast %cst_39 : f32 to vector<1x512xf32>
    %63 = arith.subf %62, %61 : vector<1x512xf32>
    %64 = math.exp %63 : vector<1x512xf32>
    %65 = math.log1p %64 : vector<1x512xf32>
    %66 = arith.addf %60, %65 : vector<1x512xf32>
    %cst_40 = arith.constant 0.000000e+00 : f32
    %67 = vector.broadcast %cst_40 : f32 to vector<1x512xf32>
    %68 = arith.select %56, %66, %67 : vector<1x512xi1>, vector<1x512xf32>
    %69 = vector.shape_cast %68 : vector<1x512xf32> to vector<1x1x512xf32>
    %cst_41 = arith.constant dense<0.000000e+00> : vector<1xf32>
    %70 = vector.multi_reduction <add>, %69, %cst_41 [1, 2] : vector<1x1x512xf32> to vector<1xf32>
    %71 = vector.shape_cast %70 : vector<1xf32> to vector<1x1x1xf32>
    %72 = vector.extract %71[0, 0, 0] : f32 from vector<1x1x1xf32>
    %73 = vector.broadcast %72 : f32 to vector<1x1x1xf32>
    %c0_42 = arith.constant 0 : index
    %c0_43 = arith.constant 0 : index
    %c0_44 = arith.constant 0 : index
    %74 = vector.load %arg15[%c0_42, %c0_43, %c0_44] : memref<1x1x1xf32, #tpu.memory_space<vmem>>, vector<1x1x1xf32>
    tpu.vector_store %arg15[%c0_42, %c0_43, %c0_44], %73 {strides = array<i32>} : memref<1x1x1xf32, #tpu.memory_space<vmem>>, vector<1x1x1xf32>,
    return
  }
  func.func @transform_0(%arg0: i32) -> (i32, i32) {
    %c0_i32 = arith.constant 0 : i32
    %c0_i32_0 = arith.constant 0 : i32
    return %arg0, %c0_i32 : i32, i32
  }
  func.func @transform_1(%arg0: i32) -> (i32, i32) {
    %c0_i32 = arith.constant 0 : i32
    %c0_i32_0 = arith.constant 0 : i32
    return %arg0, %c0_i32 : i32, i32
  }
  func.func @transform_2(%arg0: i32) -> (i32, i32, i32) {
    %c0_i32 = arith.constant 0 : i32
    %c0_i32_0 = arith.constant 0 : i32
    %c0_i32_1 = arith.constant 0 : i32
    return %arg0, %c0_i32, %c0_i32_0 : i32, i32, i32
  }
  func.func @transform_3(%arg0: i32) -> (i32, i32) {
    %c0_i32 = arith.constant 0 : i32
    %c0_i32_0 = arith.constant 0 : i32
    %c0_i32_1 = arith.constant 0 : i32
    return %c0_i32, %c0_i32_0 : i32, i32
  }
  func.func @transform_4(%arg0: i32) -> (i32, i32) {
    %c0_i32 = arith.constant 0 : i32
    %c0_i32_0 = arith.constant 0 : i32
    %c0_i32_1 = arith.constant 0 : i32
    return %c0_i32, %c0_i32_0 : i32, i32
  }
  func.func @transform_5(%arg0: i32) -> (i32, i32) {
    %c0_i32 = arith.constant 0 : i32
    %c0_i32_0 = arith.constant 0 : i32
    %c0_i32_1 = arith.constant 0 : i32
    return %c0_i32, %c0_i32_0 : i32, i32
  }
  func.func @transform_6(%arg0: i32) -> (i32, i32) {
    %c0_i32 = arith.constant 0 : i32
    %c0_i32_0 = arith.constant 0 : i32
    %c0_i32_1 = arith.constant 0 : i32
    return %c0_i32, %c0_i32_0 : i32, i32
  }
  func.func @transform_7(%arg0: i32) -> (i32, i32) {
    %c0_i32 = arith.constant 0 : i32
    %c0_i32_0 = arith.constant 0 : i32
    %c0_i32_1 = arith.constant 0 : i32
    return %c0_i32, %c0_i32_0 : i32, i32
  }
  func.func @transform_8(%arg0: i32) -> (i32, i32) {
    %c0_i32 = arith.constant 0 : i32
    %c0_i32_0 = arith.constant 0 : i32
    %c0_i32_1 = arith.constant 0 : i32
    return %c0_i32, %c0_i32_0 : i32, i32
  }
  func.func @transform_9(%arg0: i32) -> (i32, i32) {
    %c0_i32 = arith.constant 0 : i32
    %c0_i32_0 = arith.constant 0 : i32
    %c0_i32_1 = arith.constant 0 : i32
    return %c0_i32, %c0_i32_0 : i32, i32
  }
  func.func @transform_10(%arg0: i32) -> (i32, i32) {
    %c0_i32 = arith.constant 0 : i32
    %c0_i32_0 = arith.constant 0 : i32
    %c0_i32_1 = arith.constant 0 : i32
    return %c0_i32, %c0_i32_0 : i32, i32
  }
  func.func @transform_11(%arg0: i32) -> (i32, i32) {
    %c0_i32 = arith.constant 0 : i32
    %c0_i32_0 = arith.constant 0 : i32
    %c0_i32_1 = arith.constant 0 : i32
    return %c0_i32, %c0_i32_0 : i32, i32
  }
  func.func @transform_12(%arg0: i32) -> (i32, i32) {
    %c0_i32 = arith.constant 0 : i32
    %c0_i32_0 = arith.constant 0 : i32
    %c0_i32_1 = arith.constant 0 : i32
    return %c0_i32, %c0_i32_0 : i32, i32
  }
  func.func @transform_13(%arg0: i32) -> (i32, i32, i32) {
    %c0_i32 = arith.constant 0 : i32
    %c0_i32_0 = arith.constant 0 : i32
    %c0_i32_1 = arith.constant 0 : i32
    return %arg0, %c0_i32, %c0_i32_0 : i32, i32, i32
  }
  func.func @transform_14(%arg0: i32) -> (i32, i32, i32) {
    %c0_i32 = arith.constant 0 : i32
    %c0_i32_0 = arith.constant 0 : i32
    %c0_i32_1 = arith.constant 0 : i32
    return %arg0, %c0_i32, %c0_i32_0 : i32, i32, i32
  }
}

</mosaic_0001>

<bundles_post_ra>
// kernel: fullfc_forward.1
= control target key start
LH: loop header
LB: loop body
LE: loop exit
PB: predicated region body
PF: predicated region fallthrough
CT: control target
= control target key end

     0   :  { %s4985_s0 = inlined_call_operand.vmem [shape: f32[512,96], index: 0, kind: input, shape index: {}]   ;;  %s4986_s1 = inlined_call_operand.vmem [shape: f32[512,24], index: 1, kind: input, shape index: {}]   ;;  %s4987_s2 = inlined_call_operand.vmem [shape: f32[1,1,512], index: 2, kind: input, shape index: {}]   ;;  %s4988_s3 = inlined_call_operand.vmem [shape: bf16[96,256], index: 3, kind: input, shape index: {}]   ;;  %s4989_s4 = inlined_call_operand.vmem [shape: f32[1,256], index: 4, kind: input, shape index: {}]   ;;  %s4990_s5 = inlined_call_operand.vmem [shape: bf16[256,64], index: 5, kind: input, shape index: {}]   ;;  %s4991_s6 = inlined_call_operand.vmem [shape: f32[1,64], index: 6, kind: input, shape index: {}]   ;;  %s4992_s7 = inlined_call_operand.vmem [shape: bf16[24,64], index: 7, kind: input, shape index: {}]   ;;  %s4993_s8 = inlined_call_operand.vmem [shape: f32[1,64], index: 8, kind: input, shape index: {}]   ;;  %s4994_s9 = inlined_call_operand.vmem [shape: bf16[128,64], index: 9, kind: input, shape index: {}]   ;;  %s4995_s10 = inlined_call_operand.vmem [shape: f32[1,64], index: 10, kind: input, shape index: {}]   ;;  %s4996_s11 = inlined_call_operand.vmem [shape: bf16[1,64], index: 11, kind: input, shape index: {}]   ;;  %s4997_s12 = inlined_call_operand.<no memory space> [shape: f32[1,1], index: 12, kind: input, shape index: {}]   ;;  %s4998_s13 = inlined_call_operand.vmem [shape: f32[1,1,512], index: 13, kind: output, shape index: {0}]   ;;  %s4999_s14 = inlined_call_operand.hbm [shape: f32[1,1,1], index: 14, kind: output, shape index: {1}]  }
   0x1   :  { %v20_v0 = vstv %s4997_s12 }
   0x2   :  { %21 = vst [vmem:[#allocation2] sm:$0x1] %v20_v0 }
   0x3   :  { %v3496_v1 = vld [vmem:[%s4988_s3 + $0x54] ss:$8 sps:$4 sm:$0xff]   ;;  %v3498_v2 = vld [vmem:[%s4988_s3 + $0x50] ss:$8 sps:$4 sm:$0xff]   ;;  %v3587_v3 = vmov 0   ;;  %v50_v16 = vld [vmem:[%s4985_s0] sm:$0xff] }
   0x4   :  { %455 = vmatprep.mubr.bf16.mxu0 %v3587_v3  ;;  %3440 = vmatprep.subr.bf16.mxu1 %v3587_v3  ;;  %v3499_v4 = vld [vmem:[%s4988_s3 + $0x44] ss:$8 sps:$4 sm:$0xff]   ;;  %v3501_v5 = vld [vmem:[%s4988_s3 + $0x40] ss:$8 sps:$4 sm:$0xff]   ;;  %v3502_v6 = vld [vmem:[%s4988_s3 + $0x34] ss:$8 sps:$4 sm:$0xff]  }
   0x5   :  { %427 = vmatprep.subr.bf16.mxu0 %v3496_v1  ;;  %3495 = vset.pattern.permute.xlu0 %v3587_v3  ;;  %v3504_v7 = vld [vmem:[%s4988_s3 + $0x30] ss:$8 sps:$4 sm:$0xff]   ;;  %v3505_v8 = vld [vmem:[%s4988_s3 + $0x24] ss:$8 sps:$4 sm:$0xff]   ;;  %v3507_v9 = vld [vmem:[%s4988_s3 + $0x20] ss:$8 sps:$4 sm:$0xff]  }
   0x6   :  { %428 = vmatpush1.bf16.msra.mxu0 %v3498_v2  ;;  %v3508_v10 = vld [vmem:[%s4988_s3 + $0x14] ss:$8 sps:$4 sm:$0xff]   ;;  %v3510_v12 = vld [vmem:[%s4988_s3 + $0x10] ss:$8 sps:$4 sm:$0xff]   ;;  %v3511_v13 = vld [vmem:[%s4988_s3 + $0x4] ss:$8 sps:$4 sm:$0xff]  }
   0x7   :  { %429 = vmatprep.subr.bf16.mxu0 %v3499_v4  ;;  %v3514_v11 = vld [vmem:[%s4990_s5 + $0x38] sm:$0xff]   ;;  %v3515_v14 = vld [vmem:[%s4990_s5 + $0x30] sm:$0xff]   ;;  %v3513_v15 = vld [vmem:[%s4988_s3] ss:$8 sps:$4 sm:$0xff]   ;;  %vm326_vm0 = vcmask 785408  }
   0x8   :  { %3456 = vmatpush1.bf16.msra.mxu1 %v3514_v11  ;;  %v51_v17 = vld [vmem:[%s4985_s0 + $0x8] sm:$0xff]  ;;  %v3517_v20 = vld [vmem:[%s4990_s5 + $0x20] sm:$0xff]   ;;  %v52_v21 = vld [vmem:[%s4985_s0 + $0x10] sm:$0xff] }
   0x9   :  { %3441 = vmatprep.subr.bf16.mxu1 %v3587_v3  ;;  %v3516_v18 = vld [vmem:[%s4990_s5 + $0x28] sm:$0xff]   ;;  %v114_v19 = vpack.c.bf16 %v51_v17, %v50_v16  ;;  %v53_v22 = vld [vmem:[%s4985_s0 + $0x18] sm:$0xff]  ;;  %v54_v25 = vld [vmem:[%s4985_s0 + $0x20] sm:$0xff] }
   0xa   :  { %430 = vmatpush1.bf16.msra.mxu0 %v3501_v5  ;;  %v3518_v23 = vld [vmem:[%s4990_s5 + $0x18] sm:$0xff]   ;;  %v115_v24 = vpack.c.bf16 %v53_v22, %v52_v21  ;;  %v55_v26 = vld [vmem:[%s4985_s0 + $0x28] sm:$0xff] }
   0xb   :  { %431 = vmatprep.subr.bf16.mxu0 %v3502_v6  ;;  %v116_v27 = vpack.c.bf16 %v55_v26, %v54_v25 }
   0xc   :  { %3457 = vmatpush1.bf16.msra.mxu1 %v3515_v14 }
   0xd   :  { %3442 = vmatprep.subr.bf16.mxu1 %v3587_v3 }
   0xe   :  { %432 = vmatpush1.bf16.msra.mxu0 %v3504_v7 }
   0xf   :  { %433 = vmatprep.subr.bf16.mxu0 %v3505_v8 }
  0x10   :  { %3458 = vmatpush1.bf16.msra.mxu1 %v3516_v18 }
  0x11   :  { %3443 = vmatprep.subr.bf16.mxu1 %v3587_v3 }
  0x12   :  { %434 = vmatpush1.bf16.msra.mxu0 %v3507_v9 }
  0x13   :  { %435 = vmatprep.subr.bf16.mxu0 %v3508_v10 }
  0x14   :  { %3459 = vmatpush1.bf16.msra.mxu1 %v3517_v20 }
  0x15   :  { %3444 = vmatprep.subr.bf16.mxu1 %v3587_v3 }
  0x16   :  { %436 = vmatpush1.bf16.msra.mxu0 %v3510_v12 }
  0x17   :  { %437 = vmatprep.subr.bf16.mxu0 %v3511_v13 }
  0x18   :  { %3460 = vmatpush1.bf16.msra.mxu1 %v3518_v23 }
  0x19   :  { %3445 = vmatprep.subr.bf16.mxu1 %v3587_v3 }
  0x1a   :  { %438 = vmatpush1.bf16.msra.mxu0 %v3513_v15 }
  0x1b   :  { %1103 = vmatprep.subr.bf16.mxu0 %v3587_v3 }
  0x1d   :  { %3083 = vmatmul.mubr.msk.bf16.vlgmr.msra.gmra.mxu0 %vm326_vm0, %v114_v19 }
  0x1e   :  { %465 = vmatprep.mubr.bf16.mxu0 %v3587_v3  ;;  %1104 = vmatpush1.bf16.msra.mxu0 %v3514_v11 }
  0x1f   :  { %1105 = vmatprep.subr.bf16.mxu0 %v3587_v3 }
  0x22   :  { %1106 = vmatpush1.bf16.msra.mxu0 %v3515_v14 }
  0x23   :  { %1107 = vmatprep.subr.bf16.mxu0 %v3587_v3 }
  0x25   :  { %3084 = vmatmul.mubr.msk.bf16.gmra.mxu0 %vm326_vm0, %v115_v24 }
  0x26   :  { %475 = vmatprep.mubr.bf16.mxu0 %v3587_v3  ;;  %1108 = vmatpush1.bf16.msra.mxu0 %v3516_v18 }
  0x27   :  { %1109 = vmatprep.subr.bf16.mxu0 %v3587_v3 }
  0x2a   :  { %1110 = vmatpush1.bf16.msra.mxu0 %v3517_v20 }
  0x2b   :  { %22 = vsyncpa [#allocation4], 0  ;;  %1111 = vmatprep.subr.bf16.mxu0 %v3587_v3  ;;  %v3519_v28 = vld [vmem:[%s4990_s5 + $0x10] sm:$0xff]   ;;  %v57_v30 = vld [vmem:[%s4985_s0 + $0x38] sm:$0xff]  ;;  %vm1572_vm1 = vcmask 1043456   ;;  %vm1475_vm2 = vcmask 195584  }
  0x2c   :  { %v56_v29 = vld [vmem:[%s4985_s0 + $0x30] sm:$0xff]  ;;  %3461 = vmatpush1.bf16.msra.mxu1 %v3519_v28  ;;  %v58_v32 = vld [vmem:[%s4985_s0 + $0x40] sm:$0xff]  ;;  %v59_v33 = vld [vmem:[%s4985_s0 + $0x48] sm:$0xff]  ;;  %vm2089_vm3 = vcmask 523264   ;;  %vm3033_vm7 = vcmask 1040384   ;;  %vm3051_vm9 = vcmask 0  }
  0x2d   :  { %3085 = vmatmul.mubr.msk.bf16.gmra.mxu0 %vm326_vm0, %v116_v27  ;;  %3446 = vmatprep.subr.bf16.mxu1 %v3587_v3  ;;  %v117_v31 = vpack.c.bf16 %v57_v30, %v56_v29  ;;  %v118_v34 = vpack.c.bf16 %v59_v33, %v58_v32  ;;  %v3520_v35 = vld [vmem:[%s4990_s5 + $0x8] sm:$0xff]   ;;  %v60_v36 = vld [vmem:[%s4985_s0 + $0x50] sm:$0xff]  ;;  %v61_v37 = vld [vmem:[%s4985_s0 + $0x58] sm:$0xff] }
  0x2e   :  { %485 = vmatprep.mubr.bf16.mxu0 %v3587_v3  ;;  %1112 = vmatpush1.bf16.msra.mxu0 %v3518_v23  ;;  %v119_v38 = vpack.c.bf16 %v61_v37, %v60_v36  ;;  %v62_v39 = vld [vmem:[%s4985_s0 + $0x60] sm:$0xff]  ;;  %v63_v40 = vld [vmem:[%s4985_s0 + $0x68] sm:$0xff]  ;;  %v64_v43 = vld [vmem:[%s4985_s0 + $0x70] sm:$0xff] }
  0x2f   :  { %1113 = vmatprep.subr.bf16.mxu0 %v3587_v3  ;;  %v120_v41 = vpack.c.bf16 %v63_v40, %v62_v39  ;;  %v3521_v42 = vld [vmem:[%s4990_s5] sm:$0xff]   ;;  %v65_v44 = vld [vmem:[%s4985_s0 + $0x78] sm:$0xff]  ;;  %v67_v47 = vld [vmem:[%s4985_s0 + $0x88] sm:$0xff] }
  0x30   :  { %3462 = vmatpush1.bf16.msra.mxu1 %v3520_v35  ;;  %v121_v45 = vpack.c.bf16 %v65_v44, %v64_v43  ;;  %v66_v46 = vld [vmem:[%s4985_s0 + $0x80] sm:$0xff]  ;;  %v3522_v48 = vld [vmem:[%s4990_s5 + $0x78] sm:$0xff]   ;;  %v68_v50 = vld [vmem:[%s4985_s0 + $0x90] sm:$0xff] }
  0x31   :  { %3447 = vmatprep.subr.bf16.mxu1 %v3587_v3  ;;  %v122_v49 = vpack.c.bf16 %v67_v47, %v66_v46  ;;  %v69_v51 = vld [vmem:[%s4985_s0 + $0x98] sm:$0xff]  ;;  %v3523_v52 = vld [vmem:[%s4990_s5 + $0x70] sm:$0xff]   ;;  %v3524_v54 = vld [vmem:[%s4990_s5 + $0x68] sm:$0xff]  }
  0x32   :  { %1114 = vmatpush1.bf16.msra.mxu0 %v3519_v28  ;;  %v123_v53 = vpack.c.bf16 %v69_v51, %v68_v50  ;;  %v70_v55 = vld [vmem:[%s4985_s0 + $0xa0] sm:$0xff]  ;;  %v71_v56 = vld [vmem:[%s4985_s0 + $0xa8] sm:$0xff]  ;;  %v3526_v59 = vld [vmem:[%s4990_s5 + $0x58] sm:$0xff]   ;;  %v256_v51 = vlaneseq }
  0x33   :  { %1115 = vmatprep.subr.bf16.mxu0 %v3587_v3  ;;  %v3525_v57 = vld [vmem:[%s4990_s5 + $0x60] sm:$0xff]   ;;  %v124_v58 = vpack.c.bf16 %v71_v56, %v70_v55  ;;  %v72_v60 = vld [vmem:[%s4985_s0 + $0xb0] sm:$0xff]  ;;  %v73_v61 = vld [vmem:[%s4985_s0 + $0xb8] sm:$0xff] }
  0x34   :  { %3463 = vmatpush1.bf16.msra.mxu1 %v3521_v42  ;;  %v3527_v62 = vld [vmem:[%s4990_s5 + $0x50] sm:$0xff]   ;;  %v125_v63 = vpack.c.bf16 %v73_v61, %v72_v60  ;;  %v3528_v0 = vld [vmem:[%s4990_s5 + $0x48] sm:$0xff]   ;;  %v74_v1 = vld [vmem:[%s4985_s0 + $0xc0] sm:$0xff]  ;;  %v4019_v56 = vshrl.u32 %v256_v51, 7  ;;  %vm2921_vm8 = vcmp.lt.s32.totalorder %v256_v51, 512 }
  0x35   :  { %3086 = vmatmul.mubr.msk.bf16.gmra.mxu0 %vm326_vm0, %v117_v31  ;;  %3448 = vmatprep.subr.bf16.mxu1 %v3587_v3  ;;  %v75_v2 = vld [vmem:[%s4985_s0 + $0xc8] sm:$0xff]  ;;  %v3529_v4 = vld [vmem:[%s4990_s5 + $0x40] sm:$0xff]   ;;  %v76_v6 = vld [vmem:[%s4985_s0 + $0xd0] sm:$0xff] }
  0x36   :  { %495 = vmatprep.mubr.bf16.mxu0 %v3587_v3  ;;  %1116 = vmatpush1.bf16.msra.mxu0 %v3520_v35  ;;  %v126_v5 = vpack.c.bf16 %v75_v2, %v74_v1  ;;  %v77_v7 = vld [vmem:[%s4985_s0 + $0xd8] sm:$0xff]  ;;  %v78_v9 = vld [vmem:[%s4985_s0 + $0xe0] sm:$0xff]  ;;  %v79_v10 = vld [vmem:[%s4985_s0 + $0xe8] sm:$0xff]  ;;  %v4026_v60 = vsub.s32 0, %v4019_v56  ;;  %v262_v61 = vsub.s32 1, %v4019_v56 }
  0x37   :  { %1117 = vmatprep.subr.bf16.mxu0 %v3587_v3  ;;  %v127_v8 = vpack.c.bf16 %v77_v7, %v76_v6  ;;  %v128_v11 = vpack.c.bf16 %v79_v10, %v78_v9  ;;  %v80_v12 = vld [vmem:[%s4985_s0 + $0xf0] sm:$0xff]  ;;  %v81_v13 = vld [vmem:[%s4985_s0 + $0xf8] sm:$0xff]  ;;  %v82_v15 = vld [vmem:[%s4985_s0 + $0x100] sm:$0xff] }
  0x38   :  { %3464 = vmatpush2.bf16.msra.mxu1 %v3522_v48  ;;  %v129_v14 = vpack.c.bf16 %v81_v13, %v80_v12  ;;  %v83_v16 = vld [vmem:[%s4985_s0 + $0x108] sm:$0xff]  ;;  %v84_v18 = vld [vmem:[%s4985_s0 + $0x110] sm:$0xff]  ;;  %v85_v19 = vld [vmem:[%s4985_s0 + $0x118] sm:$0xff] }
  0x39   :  { %3449 = vmatprep.subr.bf16.mxu1 %v3587_v3  ;;  %v130_v17 = vpack.c.bf16 %v83_v16, %v82_v15  ;;  %v131_v20 = vpack.c.bf16 %v85_v19, %v84_v18  ;;  %v3530_v21 = vld [vmem:[%s4992_s7 + $0x8] ss:$0 sps:$4 sm:$0xff]   ;;  %v86_v23 = vld [vmem:[%s4985_s0 + $0x120] sm:$0xff]  ;;  %v88_v26 = vld [vmem:[%s4985_s0 + $0x130] sm:$0xff] }
  0x3a   :  { %1118 = vmatpush1.bf16.msra.mxu0 %v3521_v42  ;;  %v3933_v22 = vsel %vm1572_vm1, %v3530_v21, 0  ;;  %v87_v24 = vld [vmem:[%s4985_s0 + $0x128] sm:$0xff]  ;;  %v89_v27 = vld [vmem:[%s4985_s0 + $0x138] sm:$0xff]  ;;  %v90_v29 = vld [vmem:[%s4985_s0 + $0x140] sm:$0xff] }
  0x3b   :  { %1119 = vmatprep.subr.bf16.mxu0 %v3587_v3  ;;  %v132_v25 = vpack.c.bf16 %v87_v24, %v86_v23  ;;  %v133_v28 = vpack.c.bf16 %v89_v27, %v88_v26  ;;  %v91_v30 = vld [vmem:[%s4985_s0 + $0x148] sm:$0xff]  ;;  %v92_v32 = vld [vmem:[%s4985_s0 + $0x150] sm:$0xff]  ;;  %v93_v33 = vld [vmem:[%s4985_s0 + $0x158] sm:$0xff] }
  0x3c   :  { %3465 = vmatpush2.bf16.msra.mxu1 %v3523_v52  ;;  %v134_v31 = vpack.c.bf16 %v91_v30, %v90_v29  ;;  %v94_v35 = vld [vmem:[%s4985_s0 + $0x160] sm:$0xff]  ;;  %v95_v36 = vld [vmem:[%s4985_s0 + $0x168] sm:$0xff]  ;;  %v97_v39 = vld [vmem:[%s4985_s0 + $0x178] sm:$0xff] }
  0x3d   :  { %3087 = vmatmul.mubr.msk.bf16.gmra.mxu0 %vm326_vm0, %v118_v34  ;;  %3450 = vmatprep.subr.bf16.mxu1 %v3587_v3  ;;  %v135_v34 = vpack.c.bf16 %v93_v33, %v92_v32  ;;  %v136_v37 = vpack.c.bf16 %v95_v36, %v94_v35  ;;  %v99_v42 = vld [vmem:[%s4985_s0 + $0x188] sm:$0xff]  ;;  %v101_v46 = vld [vmem:[%s4985_s0 + $0x198] sm:$0xff]  ;;  %v108_v35 = vld [vmem:[%s4985_s0 + $0x1d0] sm:$0xff] }
  0x3e   :  { %505 = vmatprep.mubr.bf16.mxu0 %v3587_v3  ;;  %1120 = vmatpush2.bf16.msra.mxu0 %v3522_v48  ;;  %v105_v1 = vld [vmem:[%s4985_s0 + $0x1b8] sm:$0xff]  ;;  %v107_v18 = vld [vmem:[%s4985_s0 + $0x1c8] sm:$0xff] }
  0x3f   :  { %1121 = vmatprep.subr.bf16.mxu0 %v3587_v3  ;;  %v109_v36 = vld [vmem:[%s4985_s0 + $0x1d8] sm:$0xff] }
  0x40   :  { %3466 = vmatpush2.bf16.msra.mxu1 %v3524_v54 }
  0x41   :  { %3451 = vmatprep.subr.bf16.mxu1 %v3587_v3 }
  0x42   :  { %1122 = vmatpush2.bf16.msra.mxu0 %v3523_v52 }
  0x43   :  { %1123 = vmatprep.subr.bf16.mxu0 %v3587_v3 }
  0x44   :  { %3467 = vmatpush2.bf16.msra.mxu1 %v3525_v57 }
  0x45   :  { %3088 = vmatmul.mubr.msk.bf16.gmra.mxu0 %vm326_vm0, %v119_v38  ;;  %3452 = vmatprep.subr.bf16.mxu1 %v3587_v3  ;;  %v96_v38 = vld [vmem:[%s4985_s0 + $0x170] sm:$0xff] }
  0x46   :  { %515 = vmatprep.mubr.bf16.mxu0 %v3587_v3  ;;  %1124 = vmatpush2.bf16.msra.mxu0 %v3524_v54  ;;  %v137_v40 = vpack.c.bf16 %v97_v39, %v96_v38  ;;  %v103_v54 = vld [vmem:[%s4985_s0 + $0x1a8] sm:$0xff] }
  0x47   :  { %1125 = vmatprep.subr.bf16.mxu0 %v3587_v3 }
  0x48   :  { %3468 = vmatpush2.bf16.msra.mxu1 %v3526_v59 }
  0x49   :  { %3453 = vmatprep.subr.bf16.mxu1 %v3587_v3 }
  0x4a   :  { %1126 = vmatpush2.bf16.msra.mxu0 %v3525_v57 }
  0x4b   :  { %1127 = vmatprep.subr.bf16.mxu0 %v3587_v3 }
  0x4c   :  { %3469 = vmatpush2.bf16.msra.mxu1 %v3527_v62 }
  0x4d   :  { %3089 = vmatmul.mubr.msk.bf16.gmra.mxu0 %vm326_vm0, %v120_v41  ;;  %3454 = vmatprep.subr.bf16.mxu1 %v3587_v3  ;;  %v98_v41 = vld [vmem:[%s4985_s0 + $0x180] sm:$0xff] }
  0x4e   :  { %525 = vmatprep.mubr.bf16.mxu0 %v3587_v3  ;;  %1128 = vmatpush2.bf16.msra.mxu0 %v3526_v59  ;;  %v138_v43 = vpack.c.bf16 %v99_v42, %v98_v41  ;;  %v143_v42 = vpack.c.bf16 %v109_v36, %v108_v35 }
  0x4f   :  { %1129 = vmatprep.subr.bf16.mxu0 %v3587_v3 }
  0x50   :  { %3470 = vmatpush2.bf16.msra.mxu1 %v3528_v0 }
  0x51   :  { %3455 = vmatprep.subr.bf16.mxu1 %v3587_v3 }
  0x52   :  { %1130 = vmatpush2.bf16.msra.mxu0 %v3527_v62  ;;  %v254_v62 = vld [vmem:[%s4989_s4] sm:$0x3] }
  0x53   :  { %1131 = vmatprep.subr.bf16.mxu0 %v3587_v3 }
  0x54   :  { %3471 = vmatpush2.bf16.msra.mxu1 %v3529_v4 }
  0x55   :  { %3090 = vmatmul.mubr.msk.bf16.gmra.mxu0 %vm326_vm0, %v121_v45  ;;  %v100_v45 = vld [vmem:[%s4985_s0 + $0x190] sm:$0xff] }
  0x56   :  { %535 = vmatprep.mubr.bf16.mxu0 %v3587_v3  ;;  %1132 = vmatpush2.bf16.msra.mxu0 %v3528_v0  ;;  %v104_v0 = vld [vmem:[%s4985_s0 + $0x1b0] sm:$0xff] }
  0x57   :  { %1133 = vmatprep.subr.bf16.mxu0 %v3587_v3  ;;  %v141_v7 = vpack.c.bf16 %v105_v1, %v104_v0  ;;  %v110_v0 = vld [vmem:[%s4985_s0 + $0x1e0] sm:$0xff]  ;;  %v111_v1 = vld [vmem:[%s4985_s0 + $0x1e8] sm:$0xff] }
  0x5a   :  { %1134 = vmatpush2.bf16.msra.mxu0 %v3529_v4  ;;  %v4041_v4 = vrot.slane %v254_v62, %v4026_v60 }
  0x5b   :  { %3472 = vmatprep.subr.msk.bf16.mxu0 %vm1572_vm1, %v3530_v21 }
  0x5d   :  { %3091 = vmatmul.mubr.msk.bf16.gmra.mxu0 %vm326_vm0, %v122_v49  ;;  %v139_v49 = vpack.c.bf16 %v101_v46, %v100_v45 }
  0x5e   :  { %545 = vmatprep.mubr.bf16.mxu0 %v3587_v3 }
  0x65   :  { %3092 = vmatmul.mubr.msk.bf16.gmra.mxu0 %vm326_vm0, %v123_v53  ;;  %v102_v53 = vld [vmem:[%s4985_s0 + $0x1a0] sm:$0xff] }
  0x66   :  { %555 = vmatprep.mubr.bf16.mxu0 %v3587_v3 }
  0x6d   :  { %3093 = vmatmul.mubr.msk.bf16.gmra.mxu0 %vm326_vm0, %v124_v58  ;;  %v140_v58 = vpack.c.bf16 %v103_v54, %v102_v53 }
  0x6e   :  { %565 = vmatprep.mubr.bf16.mxu0 %v3587_v3 }
  0x75   :  { %3094 = vmatmul.mubr.msk.bf16.gmra.mxu0 %vm326_vm0, %v125_v63 }
  0x76   :  { %575 = vmatprep.mubr.bf16.mxu0 %v3587_v3 }
  0x7d   :  { %3095 = vmatmul.mubr.msk.bf16.gmra.mxu0 %vm326_vm0, %v126_v5  ;;  %v4045_v5 = vrot.slane %v254_v62, %v262_v61 }
  0x7e   :  { %585 = vmatprep.mubr.bf16.mxu0 %v3587_v3 }
  0x85   :  { %3096 = vmatmul.mubr.msk.bf16.gmra.mxu0 %vm326_vm0, %v127_v8 }
  0x86   :  { %595 = vmatprep.mubr.bf16.mxu0 %v3587_v3 }
  0x8d   :  { %3097 = vmatmul.mubr.msk.bf16.gmra.mxu0 %vm326_vm0, %v128_v11 }
  0x8e   :  { %605 = vmatprep.mubr.bf16.mxu0 %v3587_v3 }
  0x95   :  { %3098 = vmatmul.mubr.msk.bf16.gmra.mxu0 %vm326_vm0, %v129_v14 }
  0x96   :  { %615 = vmatprep.mubr.bf16.mxu0 %v3587_v3 }
  0x9d   :  { %3099 = vmatmul.mubr.msk.bf16.gmra.mxu0 %vm326_vm0, %v130_v17  ;;  %v106_v17 = vld [vmem:[%s4985_s0 + $0x1c0] sm:$0xff] }
  0x9e   :  { %625 = vmatprep.mubr.bf16.mxu0 %v3587_v3 }
  0xa5   :  { %3100 = vmatmul.mubr.msk.bf16.gmra.mxu0 %vm326_vm0, %v131_v20 }
  0xa6   :  { %635 = vmatprep.mubr.bf16.mxu0 %v3587_v3 }
  0xad   :  { %3101 = vmatmul.mubr.msk.bf16.gmra.mxu0 %vm326_vm0, %v132_v25  ;;  %v142_v25 = vpack.c.bf16 %v107_v18, %v106_v17 }
  0xae   :  { %645 = vmatprep.mubr.bf16.mxu0 %v3587_v3 }
  0xb5   :  { %3102 = vmatmul.mubr.msk.bf16.gmra.mxu0 %vm326_vm0, %v133_v28 }
  0xb6   :  { %655 = vmatprep.mubr.bf16.mxu0 %v3587_v3 }
  0xbd   :  { %3103 = vmatmul.mubr.msk.bf16.gmra.mxu0 %vm326_vm0, %v134_v31 }
  0xbe   :  { %665 = vmatprep.mubr.bf16.mxu0 %v3587_v3 }
  0xc5   :  { %3104 = vmatmul.mubr.msk.bf16.gmra.mxu0 %vm326_vm0, %v135_v34 }
  0xc6   :  { %675 = vmatprep.mubr.bf16.mxu0 %v3587_v3 }
  0xcd   :  { %3105 = vmatmul.mubr.msk.bf16.gmra.mxu0 %vm326_vm0, %v136_v37 }
  0xce   :  { %685 = vmatprep.mubr.bf16.mxu0 %v3587_v3 }
  0xd5   :  { %3106 = vmatmul.mubr.msk.bf16.gmra.mxu0 %vm326_vm0, %v137_v40 }
  0xd6   :  { %695 = vmatprep.mubr.bf16.mxu0 %v3587_v3 }
  0xdd   :  { %v3990_v44 = vpop.f32.mrf.mxu0  ;;  %3107 = vmatmul.mubr.msk.bf16.gmra.mxu0 %vm326_vm0, %v138_v43 }
  0xde   :  { %705 = vmatprep.mubr.bf16.mxu0 %v3587_v3 }
  0xdf   :  { %v4000_v47 = vpop.f32.mrf.mxu0 }
  0xe1   :  { %v4002_v48 = vpop.f32.mrf.mxu0 }
  0xe3   :  { %v4004_v50 = vpop.f32.mrf.mxu0 }
  0xe5   :  { %v4006_v52 = vpop.f32.mrf.mxu0  ;;  %3108 = vmatmul.mubr.msk.bf16.gmra.mxu0 %vm326_vm0, %v139_v49 }
  0xe6   :  { %715 = vmatprep.mubr.bf16.mxu0 %v3587_v3 }
  0xe7   :  { %v4016_v55 = vpop.f32.mrf.mxu0 }
  0xe9   :  { %v4021_v57 = vpop.f32.mrf.mxu0 }
  0xeb   :  { %v4023_v59 = vpop.f32.mrf.mxu0 }
  0xec   :  { %v474_v35 = vadd.f32 %v4023_v59, %v4045_v5 }
  0xed   :  { %v477_v63 = vpop.f32.mrf.mxu0  ;;  %3109 = vmatmul.mubr.msk.bf16.gmra.mxu0 %vm326_vm0, %v140_v58 }
  0xee   :  { %725 = vmatprep.mubr.bf16.mxu0 %v3587_v3  ;;  %v478_v10 = vadd.f32 %v477_v63, %v4041_v4  ;;  %v783_v59 = vmax.f32 %v474_v35, 0.0 }
  0xef   :  { %v479_v2 = vpop.f32.mrf.mxu0 }
  0xf0   :  { %v480_v8 = vadd.f32 %v479_v2, %v4045_v5  ;;  %v784_v19 = vmax.f32 %v478_v10, 0.0  ;;  %v144_v10 = vpack.c.bf16 %v111_v1, %v110_v0 }
  0xf1   :  { %v481_v6 = vpop.f32.mrf.mxu0 }
  0xf2   :  { %v482_v9 = vadd.f32 %v481_v6, %v4041_v4  ;;  %v785_v15 = vmax.f32 %v480_v8, 0.0 }
  0xf3   :  { %v483_v11 = vpop.f32.mrf.mxu0 }
  0xf4   :  { %v484_v12 = vadd.f32 %v483_v11, %v4045_v5  ;;  %v786_v13 = vmax.f32 %v482_v9, 0.0 }
  0xf5   :  { %v487_v14 = vpop.f32.mrf.mxu0  ;;  %3110 = vmatmul.mubr.msk.bf16.gmra.mxu0 %vm326_vm0, %v141_v7 }
  0xf6   :  { %v787_v16 = vmax.f32 %v484_v12, 0.0  ;;  %735 = vmatprep.mubr.bf16.mxu0 %v3587_v3  ;;  %v908_v23 = vpack.c.bf16 %v786_v13, %v784_v19  ;;  %v488_v28 = vadd.f32 %v487_v14, %v4041_v4  ;;  %v460_v19 = vadd.f32 %v4000_v47, %v4045_v5 }
  0xf7   :  { %v489_v20 = vpop.f32.mrf.mxu0 }
  0xf8   :  { %v909_v21 = vpack.c.bf16 %v787_v16, %v785_v15  ;;  %v490_v26 = vadd.f32 %v489_v20, %v4045_v5  ;;  %v788_v37 = vmax.f32 %v488_v28, 0.0  ;;  %v464_v15 = vadd.f32 %v4004_v50, %v4045_v5  ;;  %v113_v50 = vld [vmem:[%s4985_s0 + $0x1f8] sm:$0xff] }
  0xf9   :  { %v491_v24 = vpop.f32.mrf.mxu0  ;;  %v777_v47 = vmax.f32 %v460_v19, 0.0 }
  0xfa   :  { %v492_v27 = vadd.f32 %v491_v24, %v4041_v4  ;;  %1151 = vmatprep.mubr.bf16.mxu1 %v909_v21  ;;  %v789_v33 = vmax.f32 %v490_v26, 0.0  ;;  %v779_v26 = vmax.f32 %v464_v15, 0.0 }
  0xfb   :  { %v493_v29 = vpop.f32.mrf.mxu0  ;;  %1152 = vmatmul.mubr.bf16.vlgmr.msra.gmra.mxu1 %v908_v23  ;;  %v112_v23 = vld [vmem:[%s4985_s0 + $0x1f0] sm:$0xff]  ;;  %s3590_s0 = smov [#allocation3]  }
  0xfc   :  { %v494_v30 = vadd.f32 %v493_v29, %v4045_v5  ;;  %v790_v31 = vmax.f32 %v492_v27, 0.0  ;;  %s3061_s19 = sshll.u32 %s3590_s0, 4  ;;  %s3062_s19 = int_to_ptr.vmem [resolvable:$true] %s3061_s19 }
  0xfd   :  { %v497_v32 = vpop.f32.mrf.mxu0  ;;  %3111 = vmatmul.mubr.msk.bf16.gmra.mxu0 %vm326_vm0, %v142_v25  ;;  %s3569_s20 = scalar_lea.vmem %s3062_s19, 32  ;;  %p3570_p1 = scmp.lt.s32.totalorder %s3062_s19, %s3062_s19 }
  0xfe   :  { %v791_v34 = vmax.f32 %v494_v30, 0.0  ;;  %745 = vmatprep.mubr.bf16.mxu0 %v3587_v3  ;;  %v910_v40 = vpack.c.bf16 %v790_v31, %v788_v37  ;;  %v498_v46 = vadd.f32 %v497_v32, %v4041_v4  ;;  %v145_v30 = vpack.c.bf16 %v113_v50, %v112_v23 }
  0xff   :  { %v499_v38 = vpop.f32.mrf.mxu0  ;;  %v462_v32 = vadd.f32 %v4002_v48, %v4041_v4  ;;  %v905_v37 = vpack.c.bf16 %v779_v26, %v777_v47  ;;  %v470_v48 = vadd.f32 %v4016_v55, %v4045_v5  ;;  %v472_v55 = vadd.f32 %v4021_v57, %v4041_v4  ;;  %v148_v47 = vld [vmem:[%s4986_s1 + $0x10] sm:$0xff] }
 0x100   :  { %v911_v39 = vpack.c.bf16 %v791_v34, %v789_v33  ;;  %v500_v43 = vadd.f32 %v499_v38, %v4045_v5  ;;  %v792_v2 = vmax.f32 %v498_v46, 0.0  ;;  %v458_v38 = vadd.f32 %v3990_v44, %v4041_v4 }
 0x101   :  { %v501_v41 = vpop.f32.mrf.mxu0  ;;  %v782_v57 = vmax.f32 %v472_v55, 0.0 }
 0x102   :  { %v502_v45 = vadd.f32 %v501_v41, %v4041_v4  ;;  %1159 = vmatprep.mubr.bf16.mxu1 %v911_v39  ;;  %v793_v62 = vmax.f32 %v500_v43, 0.0  ;;  %v778_v43 = vmax.f32 %v462_v32, 0.0 }
 0x103   :  { %v503_v49 = vpop.f32.mrf.mxu0  ;;  %1160 = vmatmul.mubr.bf16.gmra.mxu1 %v910_v40 }
 0x104   :  { %v504_v53 = vadd.f32 %v503_v49, %v4045_v5  ;;  %v794_v54 = vmax.f32 %v502_v45, 0.0 }
 0x105   :  { %v507_v58 = vpop.f32.mrf.mxu0  ;;  %3112 = vmatmul.mubr.msk.bf16.gmra.mxu0 %vm326_vm0, %v143_v42 }
 0x106   :  { %v795_v63 = vmax.f32 %v504_v53, 0.0  ;;  %755 = vmatprep.mubr.bf16.mxu0 %v3587_v3  ;;  %v912_v8 = vpack.c.bf16 %v794_v54, %v792_v2  ;;  %v508_v13 = vadd.f32 %v507_v58, %v4041_v4  ;;  %v776_v53 = vmax.f32 %v458_v38, 0.0 }
 0x107   :  { %v509_v6 = vpop.f32.mrf.mxu0 }
 0x108   :  { %v913_v7 = vpack.c.bf16 %v795_v63, %v793_v62  ;;  %v510_v11 = vadd.f32 %v509_v6, %v4045_v5  ;;  %v796_v24 = vmax.f32 %v508_v13, 0.0  ;;  %v781_v62 = vmax.f32 %v470_v48, 0.0  ;;  %v3531_v6 = vld [vmem:[%s4992_s7] sm:$0xff]   ;;  %s3565_s7 = scalar_lea.vmem %s3062_s19, 16 }
 0x109   :  { %v511_v9 = vpop.f32.mrf.mxu0  ;;  %v904_v0 = vpack.c.bf16 %v778_v43, %v776_v53  ;;  %v152_v53 = vld [vmem:[%s4986_s1 + $0x30] sm:$0xff]  ;;  %p3566_p0 = scmp.ne.s32.totalorder %s3062_s19, %s3565_s7  ;;  %p3571_p2 = scmp.lt.s32.totalorder %s3569_s20, %s3565_s7 }
 0x10a   :  { %v512_v12 = vadd.f32 %v511_v9, %v4041_v4  ;;  %1167 = vmatprep.mubr.bf16.mxu1 %v913_v7  ;;  %v797_v20 = vmax.f32 %v510_v11, 0.0  ;;  %v468_v9 = vadd.f32 %v4006_v52, %v4041_v4  ;;  %v147_v52 = vld [vmem:[%s4986_s1 + $0x8] sm:$0xff] }
 0x10b   :  { %v513_v14 = vpop.f32.mrf.mxu0  ;;  %1168 = vmatmul.mubr.bf16.gmra.mxu1 %v912_v8  ;;  %v907_v8 = vpack.c.bf16 %v783_v59, %v781_v62  ;;  %p3572_p3 = por %p3571_p2, %p3570_p1 }
 0x10c   :  { %v514_v16 = vadd.f32 %v513_v14, %v4045_v5  ;;  %v798_v17 = vmax.f32 %v512_v12, 0.0 }
 0x10d   :  { %v517_v18 = vpop.f32.mrf.mxu0  ;;  %3113 = vmatmul.mubr.msk.bf16.gmra.mxu0 %vm326_vm0, %v144_v10  ;;  %p3573_p4 = pnand %p3572_p3, %p3566_p0 }
 0x10e   :  { %v799_v21 = vmax.f32 %v514_v16, 0.0  ;;  %765 = vmatprep.mubr.bf16.mxu0 %v3587_v3  ;;  %v914_v28 = vpack.c.bf16 %v798_v17, %v796_v24  ;;  %v518_v33 = vadd.f32 %v517_v18, %v4041_v4  ;;  %v146_v16 = vld [vmem:[%s4986_s1] sm:$0xff]  ;;  %v780_v18 = vmax.f32 %v468_v9, 0.0 }
 0x10f   :  { %v519_v25 = vpop.f32.mrf.mxu0  ;;  %v210_v23 = vpack.c.bf16 %v147_v52, %v146_v16  ;;  %v157_v16 = vld [vmem:[%s4986_s1 + $0x58] sm:$0xff] }
 0x110   :  { %v915_v27 = vpack.c.bf16 %v799_v21, %v797_v20  ;;  %v520_v31 = vadd.f32 %v519_v25, %v4045_v5  ;;  %v800_v45 = vmax.f32 %v518_v33, 0.0  ;;  %v906_v50 = vpack.c.bf16 %v782_v57, %v780_v18  ;;  %v150_v33 = vld [vmem:[%s4986_s1 + $0x20] sm:$0xff] }
 0x111   :  { %v521_v29 = vpop.f32.mrf.mxu0  ;;  %v158_v18 = vld [vmem:[%s4986_s1 + $0x60] sm:$0xff] }
 0x112   :  { %v522_v3 = vadd.f32 %v521_v29, %v4041_v4  ;;  %1175 = vmatprep.mubr.bf16.mxu1 %v915_v27  ;;  %v801_v41 = vmax.f32 %v520_v31, 0.0  ;;  %v149_v31 = vld [vmem:[%s4986_s1 + $0x18] sm:$0xff] }
 0x113   :  { %v523_v34 = vpop.f32.mrf.mxu0  ;;  %1176 = vmatmul.mubr.bf16.gmra.mxu1 %v914_v28  ;;  %v211_v38 = vpack.c.bf16 %v149_v31, %v148_v47 }
 0x114   :  { %v524_v36 = vadd.f32 %v523_v34, %v4045_v5  ;;  %v802_v39 = vmax.f32 %v522_v3, 0.0  ;;  %v151_v34 = vld [vmem:[%s4986_s1 + $0x28] sm:$0xff] }
 0x115   :  { %v527_v40 = vpop.f32.mrf.mxu0  ;;  %3114 = vmatmul.mubr.msk.bf16.gmra.mxu0 %vm326_vm0, %v145_v30  ;;  %v212_v48 = vpack.c.bf16 %v151_v34, %v150_v33 }
 0x116   :  { %v803_v42 = vmax.f32 %v524_v36, 0.0  ;;  %1135 = vmatprep.mubr.bf16.mxu0 %v905_v37  ;;  %v916_v54 = vpack.c.bf16 %v802_v39, %v800_v45  ;;  %v528_v1 = vadd.f32 %v527_v40, %v4041_v4 }
 0x117   :  { %v529_v46 = vpop.f32.mrf.mxu0 }
 0x118   :  { %v917_v49 = vpack.c.bf16 %v803_v42, %v801_v41  ;;  %v530_v44 = vadd.f32 %v529_v46, %v4045_v5  ;;  %v804_v14 = vmax.f32 %v528_v1, 0.0 }
 0x119   :  { %v531_v58 = vpop.f32.mrf.mxu0 }
 0x11a   :  { %v532_v63 = vadd.f32 %v531_v58, %v4041_v4  ;;  %1183 = vmatprep.mubr.bf16.mxu1 %v917_v49  ;;  %v805_v12 = vmax.f32 %v530_v44, 0.0  ;;  %v154_v44 = vld [vmem:[%s4986_s1 + $0x40] sm:$0xff] }
 0x11b   :  { %v533_v2 = vpop.f32.mrf.mxu0  ;;  %1184 = vmatmul.mubr.bf16.gmra.mxu1 %v916_v54  ;;  %v153_v54 = vld [vmem:[%s4986_s1 + $0x38] sm:$0xff] }
 0x11c   :  { %v534_v7 = vadd.f32 %v533_v2, %v4045_v5  ;;  %v806_v10 = vmax.f32 %v532_v63, 0.0  ;;  %v155_v63 = vld [vmem:[%s4986_s1 + $0x48] sm:$0xff]  ;;  %v213_v2 = vpack.c.bf16 %v153_v54, %v152_v53 }
 0x11d   :  { %v537_v11 = vpop.f32.mrf.mxu0  ;;  %1136 = vmatmul.mubr.bf16.vlgmr.msra.gmra.mxu0 %v904_v0 }
 0x11e   :  { %v807_v13 = vmax.f32 %v534_v7, 0.0  ;;  %1143 = vmatprep.mubr.bf16.mxu0 %v907_v8  ;;  %3293 = vmatpush3.bf16.msra.mxu0 %v3933_v22  ;;  %v918_v19 = vpack.c.bf16 %v806_v10, %v804_v14  ;;  %v538_v24 = vadd.f32 %v537_v11, %v4041_v4  ;;  %v214_v8 = vpack.c.bf16 %v155_v63, %v154_v44  ;;  %v3532_v44 = vld [vmem:[%s4994_s9 + $0x38] sm:$0xff]  }
 0x11f   :  { %v539_v15 = vpop.f32.mrf.mxu0  ;;  %3294 = vmatprep.subr.bf16.mxu0 %v3531_v6  ;;  %3360 = vmatprep.subr.bf16.mxu1 %v3532_v44 }
 0x120   :  { %v919_v17 = vpack.c.bf16 %v807_v13, %v805_v12  ;;  %v540_v21 = vadd.f32 %v539_v15, %v4045_v5  ;;  %v808_v3 = vmax.f32 %v538_v24, 0.0  ;;  %v156_v15 = vld [vmem:[%s4986_s1 + $0x50] sm:$0xff]  ;;  %3361 = vmatpush3.bf16.msra.mxu1 %v3532_v44 }
 0x121   :  { %v541_v20 = vpop.f32.mrf.mxu0 }
 0x122   :  { %v542_v22 = vadd.f32 %v541_v20, %v4041_v4  ;;  %1191 = vmatprep.mubr.bf16.mxu1 %v919_v17  ;;  %3295 = vmatpush3.bf16.msra.mxu0 %v3531_v6  ;;  %v809_v29 = vmax.f32 %v540_v21, 0.0 }
 0x123   :  { %v543_v25 = vpop.f32.mrf.mxu0  ;;  %1192 = vmatmul.mubr.bf16.gmra.mxu1 %v918_v19  ;;  %v159_v19 = vld [vmem:[%s4986_s1 + $0x68] sm:$0xff] }
 0x124   :  { %v544_v26 = vadd.f32 %v543_v25, %v4045_v5  ;;  %v810_v27 = vmax.f32 %v542_v22, 0.0  ;;  %v216_v25 = vpack.c.bf16 %v159_v19, %v158_v18  ;;  %v169_v18 = vld [vmem:[%s4986_s1 + $0xb8] sm:$0xff] }
 0x125   :  { %v547_v28 = vpop.f32.mrf.mxu0  ;;  %1144 = vmatmul.mubr.bf16.gmra.mxu0 %v906_v50 }
 0x126   :  { %v811_v30 = vmax.f32 %v544_v26, 0.0  ;;  %3296 = vmatprep.mubr.msk.bf16.mxu0 %vm1475_vm2, %v210_v23  ;;  %v920_v36 = vpack.c.bf16 %v810_v27, %v808_v3  ;;  %v548_v41 = vadd.f32 %v547_v28, %v4041_v4  ;;  %v215_v23 = vpack.c.bf16 %v157_v16, %v156_v15  ;;  %v160_v3 = vld [vmem:[%s4986_s1 + $0x70] sm:$0xff] }
 0x127   :  { %v549_v32 = vpop.f32.mrf.mxu0 }
 0x128   :  { %v921_v35 = vpack.c.bf16 %v811_v30, %v809_v29  ;;  %v550_v39 = vadd.f32 %v549_v32, %v4045_v5  ;;  %v812_v58 = vmax.f32 %v548_v41, 0.0  ;;  %v161_v32 = vld [vmem:[%s4986_s1 + $0x78] sm:$0xff] }
 0x129   :  { %v551_v37 = vpop.f32.mrf.mxu0 }
 0x12a   :  { %v552_v40 = vadd.f32 %v551_v37, %v4041_v4  ;;  %1199 = vmatprep.mubr.bf16.mxu1 %v921_v35  ;;  %v813_v59 = vmax.f32 %v550_v39, 0.0  ;;  %v162_v35 = vld [vmem:[%s4986_s1 + $0x80] sm:$0xff] }
 0x12b   :  { %v553_v42 = vpop.f32.mrf.mxu0  ;;  %1200 = vmatmul.mubr.bf16.gmra.mxu1 %v920_v36  ;;  %v163_v36 = vld [vmem:[%s4986_s1 + $0x88] sm:$0xff] }
 0x12c   :  { %v554_v43 = vadd.f32 %v553_v42, %v4045_v5  ;;  %v814_v45 = vmax.f32 %v552_v40, 0.0  ;;  %v217_v40 = vpack.c.bf16 %v161_v32, %v160_v3  ;;  %v218_v42 = vpack.c.bf16 %v163_v36, %v162_v35  ;;  %v173_v35 = vld [vmem:[%s4986_s1 + $0xd8] sm:$0xff] }
 0x12d   :  { %v557_v46 = vpop.f32.mrf.mxu0  ;;  %3297 = vmatmul.mubr.msk.bf16.vlgmr.msra.gmra.mxu0 %vm1475_vm2, %v211_v38 }
 0x12e   :  { %v815_v49 = vmax.f32 %v554_v43, 0.0  ;;  %3300 = vmatprep.mubr.msk.bf16.mxu0 %vm1475_vm2, %v212_v48  ;;  %v922_v55 = vpack.c.bf16 %v814_v45, %v812_v58  ;;  %v558_v9 = vadd.f32 %v557_v46, %v4041_v4  ;;  %v164_v58 = vld [vmem:[%s4986_s1 + $0x90] sm:$0xff] }
 0x12f   :  { %v559_v62 = vpop.f32.mrf.mxu0 }
 0x130   :  { %v923_v0 = vpack.c.bf16 %v815_v49, %v813_v59  ;;  %v560_v6 = vadd.f32 %v559_v62, %v4045_v5  ;;  %v816_v52 = vmax.f32 %v558_v9, 0.0  ;;  %v165_v62 = vld [vmem:[%s4986_s1 + $0x98] sm:$0xff] }
 0x131   :  { %v561_v1 = vpop.f32.mrf.mxu0 }
 0x132   :  { %v562_v7 = vadd.f32 %v561_v1, %v4041_v4  ;;  %1207 = vmatprep.mubr.bf16.mxu1 %v923_v0  ;;  %v817_v57 = vmax.f32 %v560_v6, 0.0  ;;  %v167_v1 = vld [vmem:[%s4986_s1 + $0xa8] sm:$0xff] }
 0x133   :  { %v563_v10 = vpop.f32.mrf.mxu0  ;;  %1208 = vmatmul.mubr.bf16.gmra.mxu1 %v922_v55  ;;  %v166_v55 = vld [vmem:[%s4986_s1 + $0xa0] sm:$0xff] }
 0x134   :  { %v564_v11 = vadd.f32 %v563_v10, %v4045_v5  ;;  %v818_v12 = vmax.f32 %v562_v7, 0.0 }
 0x135   :  { %v567_v13 = vpop.f32.mrf.mxu0  ;;  %3301 = vmatmul.mubr.msk.bf16.gmra.mxu0 %vm1475_vm2, %v213_v2 }
 0x136   :  { %v819_v14 = vmax.f32 %v564_v11, 0.0  ;;  %3304 = vmatprep.mubr.msk.bf16.mxu0 %vm1475_vm2, %v214_v8  ;;  %v924_v21 = vpack.c.bf16 %v818_v12, %v816_v52  ;;  %v568_v26 = vadd.f32 %v567_v13, %v4041_v4  ;;  %v219_v8 = vpack.c.bf16 %v165_v62, %v164_v58 }
 0x137   :  { %v569_v17 = vpop.f32.mrf.mxu0  ;;  %v220_v11 = vpack.c.bf16 %v167_v1, %v166_v55 }
 0x138   :  { %v925_v20 = vpack.c.bf16 %v819_v14, %v817_v57  ;;  %v570_v50 = vadd.f32 %v569_v17, %v4045_v5  ;;  %v820_v33 = vmax.f32 %v568_v26, 0.0  ;;  %v168_v17 = vld [vmem:[%s4986_s1 + $0xb0] sm:$0xff] }
 0x139   :  { %v571_v22 = vpop.f32.mrf.mxu0 }
 0x13a   :  { %v572_v24 = vadd.f32 %v571_v22, %v4041_v4  ;;  %1215 = vmatprep.mubr.bf16.mxu1 %v925_v20  ;;  %v821_v47 = vmax.f32 %v570_v50, 0.0  ;;  %v171_v22 = vld [vmem:[%s4986_s1 + $0xc8] sm:$0xff] }
 0x13b   :  { %v573_v27 = vpop.f32.mrf.mxu0  ;;  %1216 = vmatmul.mubr.bf16.gmra.mxu1 %v924_v21  ;;  %v170_v21 = vld [vmem:[%s4986_s1 + $0xc0] sm:$0xff] }
 0x13c   :  { %v574_v28 = vadd.f32 %v573_v27, %v4045_v5  ;;  %v822_v29 = vmax.f32 %v572_v24, 0.0 }
 0x13d   :  { %v577_v30 = vpop.f32.mrf.mxu0  ;;  %3305 = vmatmul.mubr.msk.bf16.gmra.mxu0 %vm1475_vm2, %v215_v23 }
 0x13e   :  { %v823_v31 = vmax.f32 %v574_v28, 0.0  ;;  %3308 = vmatprep.mubr.msk.bf16.mxu0 %vm1475_vm2, %v216_v25  ;;  %v926_v38 = vpack.c.bf16 %v822_v29, %v820_v33  ;;  %v578_v43 = vadd.f32 %v577_v30, %v4041_v4  ;;  %v221_v25 = vpack.c.bf16 %v169_v18, %v168_v17 }
 0x13f   :  { %v579_v34 = vpop.f32.mrf.mxu0  ;;  %v222_v28 = vpack.c.bf16 %v171_v22, %v170_v21  ;;  %v181_v21 = vld [vmem:[%s4986_s1 + $0x118] sm:$0xff] }
 0x140   :  { %v927_v37 = vpack.c.bf16 %v823_v31, %v821_v47  ;;  %v580_v48 = vadd.f32 %v579_v34, %v4045_v5  ;;  %v824_v63 = vmax.f32 %v578_v43, 0.0  ;;  %v172_v34 = vld [vmem:[%s4986_s1 + $0xd0] sm:$0xff] }
 0x141   :  { %v581_v39 = vpop.f32.mrf.mxu0 }
 0x142   :  { %v582_v41 = vadd.f32 %v581_v39, %v4041_v4  ;;  %1223 = vmatprep.mubr.bf16.mxu1 %v927_v37  ;;  %v825_v53 = vmax.f32 %v580_v48, 0.0  ;;  %v175_v39 = vld [vmem:[%s4986_s1 + $0xe8] sm:$0xff] }
 0x143   :  { %v583_v45 = vpop.f32.mrf.mxu0  ;;  %1224 = vmatmul.mubr.bf16.gmra.mxu1 %v926_v38  ;;  %v174_v38 = vld [vmem:[%s4986_s1 + $0xe0] sm:$0xff] }
 0x144   :  { %v584_v46 = vadd.f32 %v583_v45, %v4045_v5  ;;  %v826_v59 = vmax.f32 %v582_v41, 0.0 }
 0x145   :  { %v587_v49 = vpop.f32.mrf.mxu0  ;;  %3309 = vmatmul.mubr.msk.bf16.gmra.mxu0 %vm1475_vm2, %v217_v40 }
 0x146   :  { %v827_v54 = vmax.f32 %v584_v46, 0.0  ;;  %3312 = vmatprep.mubr.msk.bf16.mxu0 %vm1475_vm2, %v218_v42  ;;  %v928_v6 = vpack.c.bf16 %v826_v59, %v824_v63  ;;  %v588_v12 = vadd.f32 %v587_v49, %v4041_v4  ;;  %v223_v42 = vpack.c.bf16 %v173_v35, %v172_v34  ;;  %v176_v63 = vld [vmem:[%s4986_s1 + $0xf0] sm:$0xff] }
 0x147   :  { %v589_v0 = vpop.f32.mrf.mxu0  ;;  %v224_v46 = vpack.c.bf16 %v175_v39, %v174_v38  ;;  %v185_v38 = vld [vmem:[%s4986_s1 + $0x138] sm:$0xff] }
 0x148   :  { %v929_v2 = vpack.c.bf16 %v827_v54, %v825_v53  ;;  %v590_v9 = vadd.f32 %v589_v0, %v4045_v5  ;;  %v828_v19 = vmax.f32 %v588_v12, 0.0  ;;  %v177_v0 = vld [vmem:[%s4986_s1 + $0xf8] sm:$0xff] }
 0x149   :  { %v591_v7 = vpop.f32.mrf.mxu0 }
 0x14a   :  { %v592_v10 = vadd.f32 %v591_v7, %v4041_v4  ;;  %1231 = vmatprep.mubr.bf16.mxu1 %v929_v2  ;;  %v829_v16 = vmax.f32 %v590_v9, 0.0  ;;  %v178_v2 = vld [vmem:[%s4986_s1 + $0x100] sm:$0xff] }
 0x14b   :  { %v593_v13 = vpop.f32.mrf.mxu0  ;;  %1232 = vmatmul.mubr.bf16.gmra.mxu1 %v928_v6  ;;  %v179_v6 = vld [vmem:[%s4986_s1 + $0x108] sm:$0xff] }
 0x14c   :  { %v594_v57 = vadd.f32 %v593_v13, %v4045_v5  ;;  %v830_v14 = vmax.f32 %v592_v10, 0.0  ;;  %v225_v10 = vpack.c.bf16 %v177_v0, %v176_v63  ;;  %v226_v13 = vpack.c.bf16 %v179_v6, %v178_v2  ;;  %v189_v2 = vld [vmem:[%s4986_s1 + $0x158] sm:$0xff] }
 0x14d   :  { %v597_v15 = vpop.f32.mrf.mxu0  ;;  %3313 = vmatmul.mubr.msk.bf16.gmra.mxu0 %vm1475_vm2, %v219_v8 }
 0x14e   :  { %v831_v52 = vmax.f32 %v594_v57, 0.0  ;;  %3316 = vmatprep.mubr.msk.bf16.mxu0 %vm1475_vm2, %v220_v11  ;;  %v930_v50 = vpack.c.bf16 %v830_v14, %v828_v19  ;;  %v598_v29 = vadd.f32 %v597_v15, %v4041_v4 }
 0x14f   :  { %v599_v20 = vpop.f32.mrf.mxu0 }
 0x150   :  { %v931_v23 = vpack.c.bf16 %v831_v52, %v829_v16  ;;  %v600_v26 = vadd.f32 %v599_v20, %v4045_v5  ;;  %v832_v36 = vmax.f32 %v598_v29, 0.0  ;;  %v3533_v16 = vld [vmem:[%s4994_s9 + $0x30] sm:$0xff]  }
 0x151   :  { %v601_v24 = vpop.f32.mrf.mxu0  ;;  %v180_v20 = vld [vmem:[%s4986_s1 + $0x110] sm:$0xff]  ;;  %3362 = vmatprep.subr.bf16.mxu1 %v3533_v16 }
 0x152   :  { %v602_v27 = vadd.f32 %v601_v24, %v4041_v4  ;;  %1239 = vmatprep.mubr.bf16.mxu1 %v931_v23  ;;  %v833_v32 = vmax.f32 %v600_v26, 0.0  ;;  %v183_v24 = vld [vmem:[%s4986_s1 + $0x128] sm:$0xff]  ;;  %3363 = vmatpush3.bf16.msra.mxu1 %v3533_v16 }
 0x153   :  { %v603_v30 = vpop.f32.mrf.mxu0  ;;  %1240 = vmatmul.mubr.bf16.gmra.mxu1 %v930_v50  ;;  %v182_v50 = vld [vmem:[%s4986_s1 + $0x120] sm:$0xff] }
 0x154   :  { %v604_v47 = vadd.f32 %v603_v30, %v4045_v5  ;;  %v834_v31 = vmax.f32 %v602_v27, 0.0 }
 0x155   :  { %v607_v3 = vpop.f32.mrf.mxu0  ;;  %3317 = vmatmul.mubr.msk.bf16.gmra.mxu0 %vm1475_vm2, %v221_v25 }
 0x156   :  { %v835_v33 = vmax.f32 %v604_v47, 0.0  ;;  %3320 = vmatprep.mubr.msk.bf16.mxu0 %vm1475_vm2, %v222_v28  ;;  %v932_v48 = vpack.c.bf16 %v834_v31, %v832_v36  ;;  %v608_v59 = vadd.f32 %v607_v3, %v4041_v4  ;;  %v227_v28 = vpack.c.bf16 %v181_v21, %v180_v20 }
 0x157   :  { %v609_v37 = vpop.f32.mrf.mxu0  ;;  %v228_v47 = vpack.c.bf16 %v183_v24, %v182_v50 }
 0x158   :  { %v933_v40 = vpack.c.bf16 %v835_v33, %v833_v32  ;;  %v610_v43 = vadd.f32 %v609_v37, %v4045_v5  ;;  %v836_v55 = vmax.f32 %v608_v59, 0.0  ;;  %v184_v37 = vld [vmem:[%s4986_s1 + $0x130] sm:$0xff] }
 0x159   :  { %v611_v41 = vpop.f32.mrf.mxu0 }
 0x15a   :  { %v612_v45 = vadd.f32 %v611_v41, %v4041_v4  ;;  %1247 = vmatprep.mubr.bf16.mxu1 %v933_v40  ;;  %v837_v62 = vmax.f32 %v610_v43, 0.0  ;;  %v187_v41 = vld [vmem:[%s4986_s1 + $0x148] sm:$0xff] }
 0x15b   :  { %v613_v49 = vpop.f32.mrf.mxu0  ;;  %1248 = vmatmul.mubr.bf16.gmra.mxu1 %v932_v48  ;;  %v186_v48 = vld [vmem:[%s4986_s1 + $0x140] sm:$0xff] }
 0x15c   :  { %v614_v53 = vadd.f32 %v613_v49, %v4045_v5  ;;  %v838_v54 = vmax.f32 %v612_v45, 0.0 }
 0x15d   :  { %v617_v58 = vpop.f32.mrf.mxu0  ;;  %3321 = vmatmul.mubr.msk.bf16.gmra.mxu0 %vm1475_vm2, %v223_v42 }
 0x15e   :  { %v839_v44 = vmax.f32 %v614_v53, 0.0  ;;  %3324 = vmatprep.mubr.msk.bf16.mxu0 %vm1475_vm2, %v224_v46  ;;  %v934_v8 = vpack.c.bf16 %v838_v54, %v836_v55  ;;  %v618_v57 = vadd.f32 %v617_v58, %v4041_v4  ;;  %v229_v46 = vpack.c.bf16 %v185_v38, %v184_v37 }
 0x15f   :  { %v619_v1 = vpop.f32.mrf.mxu0  ;;  %v230_v53 = vpack.c.bf16 %v187_v41, %v186_v48  ;;  %v197_v48 = vld [vmem:[%s4986_s1 + $0x198] sm:$0xff] }
 0x160   :  { %v935_v7 = vpack.c.bf16 %v839_v44, %v837_v62  ;;  %v620_v11 = vadd.f32 %v619_v1, %v4045_v5  ;;  %v840_v22 = vmax.f32 %v618_v57, 0.0  ;;  %v188_v1 = vld [vmem:[%s4986_s1 + $0x150] sm:$0xff] }
 0x161   :  { %v621_v9 = vpop.f32.mrf.mxu0 }
 0x162   :  { %v622_v12 = vadd.f32 %v621_v9, %v4041_v4  ;;  %1255 = vmatprep.mubr.bf16.mxu1 %v935_v7  ;;  %v841_v18 = vmax.f32 %v620_v11, 0.0  ;;  %v191_v9 = vld [vmem:[%s4986_s1 + $0x168] sm:$0xff] }
 0x163   :  { %v623_v14 = vpop.f32.mrf.mxu0  ;;  %1256 = vmatmul.mubr.bf16.gmra.mxu1 %v934_v8  ;;  %v190_v8 = vld [vmem:[%s4986_s1 + $0x160] sm:$0xff] }
 0x164   :  { %v624_v15 = vadd.f32 %v623_v14, %v4045_v5  ;;  %v842_v52 = vmax.f32 %v622_v12, 0.0 }
 0x165   :  { %v627_v17 = vpop.f32.mrf.mxu0  ;;  %3325 = vmatmul.mubr.msk.bf16.gmra.mxu0 %vm1475_vm2, %v225_v10 }
 0x166   :  { %v843_v19 = vmax.f32 %v624_v15, 0.0  ;;  %3328 = vmatprep.mubr.msk.bf16.mxu0 %vm1475_vm2, %v226_v13  ;;  %v936_v26 = vpack.c.bf16 %v842_v52, %v840_v22  ;;  %v628_v31 = vadd.f32 %v627_v17, %v4041_v4  ;;  %v231_v13 = vpack.c.bf16 %v189_v2, %v188_v1  ;;  %v192_v22 = vld [vmem:[%s4986_s1 + $0x170] sm:$0xff] }
 0x167   :  { %v629_v23 = vpop.f32.mrf.mxu0  ;;  %v232_v15 = vpack.c.bf16 %v191_v9, %v190_v8  ;;  %v201_v8 = vld [vmem:[%s4986_s1 + $0x1b8] sm:$0xff] }
 0x168   :  { %v937_v25 = vpack.c.bf16 %v843_v19, %v841_v18  ;;  %v630_v29 = vadd.f32 %v629_v23, %v4045_v5  ;;  %v844_v39 = vmax.f32 %v628_v31, 0.0  ;;  %v193_v23 = vld [vmem:[%s4986_s1 + $0x178] sm:$0xff] }
 0x169   :  { %v631_v27 = vpop.f32.mrf.mxu0 }
 0x16a   :  { %v632_v30 = vadd.f32 %v631_v27, %v4041_v4  ;;  %1263 = vmatprep.mubr.bf16.mxu1 %v937_v25  ;;  %v845_v35 = vmax.f32 %v630_v29, 0.0  ;;  %v194_v25 = vld [vmem:[%s4986_s1 + $0x180] sm:$0xff] }
 0x16b   :  { %v633_v3 = vpop.f32.mrf.mxu0  ;;  %1264 = vmatmul.mubr.bf16.gmra.mxu1 %v936_v26  ;;  %v195_v26 = vld [vmem:[%s4986_s1 + $0x188] sm:$0xff] }
 0x16c   :  { %v634_v32 = vadd.f32 %v633_v3, %v4045_v5  ;;  %v846_v33 = vmax.f32 %v632_v30, 0.0 }
 0x16d   :  { %v637_v34 = vpop.f32.mrf.mxu0  ;;  %3329 = vmatmul.mubr.msk.bf16.gmra.mxu0 %vm1475_vm2, %v227_v28  ;;  %v3534_v28 = vld [vmem:[%s4994_s9 + $0x28] sm:$0xff]  }
 0x16e   :  { %v847_v36 = vmax.f32 %v634_v32, 0.0  ;;  %3332 = vmatprep.mubr.msk.bf16.mxu0 %vm1475_vm2, %v228_v47  ;;  %v938_v43 = vpack.c.bf16 %v846_v33, %v844_v39  ;;  %v638_v54 = vadd.f32 %v637_v34, %v4041_v4  ;;  %v233_v47 = vpack.c.bf16 %v193_v23, %v192_v22  ;;  %3364 = vmatprep.subr.bf16.mxu1 %v3534_v28 }
 0x16f   :  { %v639_v40 = vpop.f32.mrf.mxu0  ;;  %v234_v32 = vpack.c.bf16 %v195_v26, %v194_v25  ;;  %3365 = vmatpush3.bf16.msra.mxu1 %v3534_v28  ;;  %v205_v25 = vld [vmem:[%s4986_s1 + $0x1d8] sm:$0xff]  ;;  %v206_v28 = vld [vmem:[%s4986_s1 + $0x1e0] sm:$0xff] }
 0x170   :  { %v939_v42 = vpack.c.bf16 %v847_v36, %v845_v35  ;;  %v640_v59 = vadd.f32 %v639_v40, %v4045_v5  ;;  %v848_v6 = vmax.f32 %v638_v54, 0.0  ;;  %v196_v40 = vld [vmem:[%s4986_s1 + $0x190] sm:$0xff] }
 0x171   :  { %v641_v45 = vpop.f32.mrf.mxu0 }
 0x172   :  { %v642_v49 = vadd.f32 %v641_v45, %v4041_v4  ;;  %1271 = vmatprep.mubr.bf16.mxu1 %v939_v42  ;;  %v849_v0 = vmax.f32 %v640_v59, 0.0  ;;  %v199_v45 = vld [vmem:[%s4986_s1 + $0x1a8] sm:$0xff] }
 0x173   :  { %v643_v58 = vpop.f32.mrf.mxu0  ;;  %1272 = vmatmul.mubr.bf16.gmra.mxu1 %v938_v43  ;;  %v198_v43 = vld [vmem:[%s4986_s1 + $0x1a0] sm:$0xff] }
 0x174   :  { %v644_v62 = vadd.f32 %v643_v58, %v4045_v5  ;;  %v850_v44 = vmax.f32 %v642_v49, 0.0 }
 0x175   :  { %v647_v63 = vpop.f32.mrf.mxu0  ;;  %3333 = vmatmul.mubr.msk.bf16.gmra.mxu0 %vm1475_vm2, %v229_v46 }
 0x176   :  { %v851_v55 = vmax.f32 %v644_v62, 0.0  ;;  %3336 = vmatprep.mubr.msk.bf16.mxu0 %vm1475_vm2, %v230_v53  ;;  %v940_v11 = vpack.c.bf16 %v850_v44, %v848_v6  ;;  %v648_v16 = vadd.f32 %v647_v63, %v4041_v4  ;;  %v235_v53 = vpack.c.bf16 %v197_v48, %v196_v40 }
 0x177   :  { %v649_v7 = vpop.f32.mrf.mxu0  ;;  %v236_v62 = vpack.c.bf16 %v199_v45, %v198_v43 }
 0x178   :  { %v941_v10 = vpack.c.bf16 %v851_v55, %v849_v0  ;;  %v650_v57 = vadd.f32 %v649_v7, %v4045_v5  ;;  %v852_v50 = vmax.f32 %v648_v16, 0.0  ;;  %v200_v7 = vld [vmem:[%s4986_s1 + $0x1b0] sm:$0xff] }
 0x179   :  { %v651_v12 = vpop.f32.mrf.mxu0 }
 0x17a   :  { %v652_v14 = vadd.f32 %v651_v12, %v4041_v4  ;;  %1279 = vmatprep.mubr.bf16.mxu1 %v941_v10  ;;  %v853_v20 = vmax.f32 %v650_v57, 0.0  ;;  %v203_v12 = vld [vmem:[%s4986_s1 + $0x1c8] sm:$0xff] }
 0x17b   :  { %v653_v52 = vpop.f32.mrf.mxu0  ;;  %1280 = vmatmul.mubr.bf16.gmra.mxu1 %v940_v11  ;;  %v202_v11 = vld [vmem:[%s4986_s1 + $0x1c0] sm:$0xff] }
 0x17c   :  { %v654_v17 = vadd.f32 %v653_v52, %v4045_v5  ;;  %v854_v18 = vmax.f32 %v652_v14, 0.0 }
 0x17d   :  { %v657_v19 = vpop.f32.mrf.mxu0  ;;  %3337 = vmatmul.mubr.msk.bf16.gmra.mxu0 %vm1475_vm2, %v231_v13 }
 0x17e   :  { %v855_v21 = vmax.f32 %v654_v17, 0.0  ;;  %3340 = vmatprep.mubr.msk.bf16.mxu0 %vm1475_vm2, %v232_v15  ;;  %v942_v29 = vpack.c.bf16 %v854_v18, %v852_v50  ;;  %v658_v33 = vadd.f32 %v657_v19, %v4041_v4  ;;  %v237_v15 = vpack.c.bf16 %v201_v8, %v200_v7 }
 0x17f   :  { %v659_v24 = vpop.f32.mrf.mxu0  ;;  %v238_v17 = vpack.c.bf16 %v203_v12, %v202_v11 }
 0x180   :  { %v943_v27 = vpack.c.bf16 %v855_v21, %v853_v20  ;;  %v660_v31 = vadd.f32 %v659_v24, %v4045_v5  ;;  %v856_v41 = vmax.f32 %v658_v33, 0.0  ;;  %v204_v24 = vld [vmem:[%s4986_s1 + $0x1d0] sm:$0xff] }
 0x181   :  { %v661_v30 = vpop.f32.mrf.mxu0 }
 0x182   :  { %v662_v3 = vadd.f32 %v661_v30, %v4041_v4  ;;  %1287 = vmatprep.mubr.bf16.mxu1 %v943_v27  ;;  %v857_v38 = vmax.f32 %v660_v31, 0.0 }
 0x183   :  { %v663_v34 = vpop.f32.mrf.mxu0  ;;  %1288 = vmatmul.mubr.bf16.gmra.mxu1 %v942_v29  ;;  %v207_v29 = vld [vmem:[%s4986_s1 + $0x1e8] sm:$0xff] }
 0x184   :  { %v664_v35 = vadd.f32 %v663_v34, %v4045_v5  ;;  %v858_v36 = vmax.f32 %v662_v3, 0.0  ;;  %v239_v3 = vpack.c.bf16 %v205_v25, %v204_v24  ;;  %v240_v34 = vpack.c.bf16 %v207_v29, %v206_v28 }
 0x185   :  { %v667_v37 = vpop.f32.mrf.mxu0  ;;  %3341 = vmatmul.mubr.msk.bf16.gmra.mxu0 %vm1475_vm2, %v233_v47 }
 0x186   :  { %v859_v39 = vmax.f32 %v664_v35, 0.0  ;;  %3344 = vmatprep.mubr.msk.bf16.mxu0 %vm1475_vm2, %v234_v32  ;;  %v944_v59 = vpack.c.bf16 %v858_v36, %v856_v41  ;;  %v668_v44 = vadd.f32 %v667_v37, %v4041_v4  ;;  %v208_v41 = vld [vmem:[%s4986_s1 + $0x1f0] sm:$0xff] }
 0x187   :  { %v669_v42 = vpop.f32.mrf.mxu0 }
 0x188   :  { %v945_v46 = vpack.c.bf16 %v859_v39, %v857_v38  ;;  %v670_v54 = vadd.f32 %v669_v42, %v4045_v5  ;;  %v860_v9 = vmax.f32 %v668_v44, 0.0  ;;  %v209_v42 = vld [vmem:[%s4986_s1 + $0x1f8] sm:$0xff] }
 0x189   :  { %v671_v49 = vpop.f32.mrf.mxu0 }
 0x18a   :  { %v672_v58 = vadd.f32 %v671_v49, %v4041_v4  ;;  %1295 = vmatprep.mubr.bf16.mxu1 %v945_v46  ;;  %v861_v2 = vmax.f32 %v670_v54, 0.0  ;;  %v241_v54 = vpack.c.bf16 %v209_v42, %v208_v41 }
 0x18b   :  { %v673_v63 = vpop.f32.mrf.mxu0  ;;  %1296 = vmatmul.mubr.bf16.gmra.mxu1 %v944_v59  ;;  %v3535_v59 = vld [vmem:[%s4994_s9 + $0x20] sm:$0xff]  }
 0x18c   :  { %v674_v0 = vadd.f32 %v673_v63, %v4045_v5  ;;  %v862_v55 = vmax.f32 %v672_v58, 0.0  ;;  %3366 = vmatprep.subr.bf16.mxu1 %v3535_v59 }
 0x18d   :  { %v677_v1 = vpop.f32.mrf.mxu0  ;;  %3345 = vmatmul.mubr.msk.bf16.gmra.mxu0 %vm1475_vm2, %v235_v53  ;;  %3367 = vmatpush3.bf16.msra.mxu1 %v3535_v59 }
 0x18e   :  { %v863_v6 = vmax.f32 %v674_v0, 0.0  ;;  %3348 = vmatprep.mubr.msk.bf16.mxu0 %vm1475_vm2, %v236_v62  ;;  %v946_v57 = vpack.c.bf16 %v862_v55, %v860_v9  ;;  %v678_v18 = vadd.f32 %v677_v1, %v4041_v4 }
 0x18f   :  { %v679_v10 = vpop.f32.mrf.mxu0 }
 0x190   :  { %v947_v13 = vpack.c.bf16 %v863_v6, %v861_v2  ;;  %v680_v16 = vadd.f32 %v679_v10, %v4045_v5  ;;  %v864_v26 = vmax.f32 %v678_v18, 0.0 }
 0x191   :  { %v681_v14 = vpop.f32.mrf.mxu0 }
 0x192   :  { %v682_v52 = vadd.f32 %v681_v14, %v4041_v4  ;;  %1303 = vmatprep.mubr.bf16.mxu1 %v947_v13  ;;  %v865_v23 = vmax.f32 %v680_v16, 0.0 }
 0x193   :  { %v683_v19 = vpop.f32.mrf.mxu0  ;;  %1304 = vmatmul.mubr.bf16.gmra.mxu1 %v946_v57 }
 0x194   :  { %v684_v20 = vadd.f32 %v683_v19, %v4045_v5  ;;  %v866_v21 = vmax.f32 %v682_v52, 0.0 }
 0x195   :  { %v687_v22 = vpop.f32.mrf.mxu0  ;;  %3349 = vmatmul.mubr.msk.bf16.gmra.mxu0 %vm1475_vm2, %v237_v15 }
 0x196   :  { %v867_v50 = vmax.f32 %v684_v20, 0.0  ;;  %3352 = vmatprep.mubr.msk.bf16.mxu0 %vm1475_vm2, %v238_v17  ;;  %v948_v47 = vpack.c.bf16 %v866_v21, %v864_v26  ;;  %v688_v35 = vadd.f32 %v687_v22, %v4041_v4 }
 0x197   :  { %v689_v27 = vpop.f32.mrf.mxu0 }
 0x198   :  { %v949_v30 = vpack.c.bf16 %v867_v50, %v865_v23  ;;  %v690_v32 = vadd.f32 %v689_v27, %v4045_v5  ;;  %v868_v43 = vmax.f32 %v688_v35, 0.0 }
 0x199   :  { %v691_v31 = vpop.f32.mrf.mxu0 }
 0x19a   :  { %v692_v33 = vadd.f32 %v691_v31, %v4041_v4  ;;  %1311 = vmatprep.mubr.bf16.mxu1 %v949_v30  ;;  %v869_v40 = vmax.f32 %v690_v32, 0.0 }
 0x19b   :  { %v693_v36 = vpop.f32.mrf.mxu0  ;;  %1312 = vmatmul.mubr.bf16.gmra.mxu1 %v948_v47 }
 0x19c   :  { %v694_v37 = vadd.f32 %v693_v36, %v4045_v5  ;;  %v870_v38 = vmax.f32 %v692_v33, 0.0 }
 0x19d   :  { %v697_v39 = vpop.f32.mrf.mxu0  ;;  %3353 = vmatmul.mubr.msk.bf16.gmra.mxu0 %vm1475_vm2, %v239_v3 }
 0x19e   :  { %v871_v48 = vmax.f32 %v694_v37, 0.0  ;;  %3356 = vmatprep.mubr.msk.bf16.mxu0 %vm1475_vm2, %v240_v34  ;;  %v950_v49 = vpack.c.bf16 %v870_v38, %v868_v43  ;;  %v698_v44 = vadd.f32 %v697_v39, %v4041_v4  ;;  %v4442_v39 = vld [vmem:[%s4991_s6] ss:$0 sm:$0xff] }
 0x19f   :  { %v699_v45 = vpop.f32.mrf.mxu0 }
 0x1a0   :  { %v951_v46 = vpack.c.bf16 %v871_v48, %v869_v40  ;;  %v700_v58 = vadd.f32 %v699_v45, %v4045_v5  ;;  %v872_v7 = vmax.f32 %v698_v44, 0.0 }
 0x1a1   :  { %v701_v53 = vpop.f32.mrf.mxu0 }
 0x1a2   :  { %v702_v62 = vadd.f32 %v701_v53, %v4041_v4  ;;  %1319 = vmatprep.mubr.bf16.mxu1 %v951_v46  ;;  %v873_v2 = vmax.f32 %v700_v58, 0.0 }
 0x1a3   :  { %v703_v63 = vpop.f32.mrf.mxu0  ;;  %1320 = vmatmul.mubr.bf16.gmra.mxu1 %v950_v49  ;;  %v3536_v49 = vld [vmem:[%s4994_s9 + $0x18] sm:$0xff]  }
 0x1a4   :  { %v704_v0 = vadd.f32 %v703_v63, %v4045_v5  ;;  %v874_v55 = vmax.f32 %v702_v62, 0.0  ;;  %3368 = vmatprep.subr.bf16.mxu1 %v3536_v49 }
 0x1a5   :  { %v707_v1 = vpop.f32.mrf.mxu0  ;;  %3357 = vmatmul.mubr.msk.bf16.gmra.mxu0 %vm1475_vm2, %v241_v54  ;;  %3369 = vmatpush3.bf16.msra.mxu1 %v3536_v49 }
 0x1a6   :  { %v875_v6 = vmax.f32 %v704_v0, 0.0  ;;  %v952_v10 = vpack.c.bf16 %v874_v55, %v872_v7  ;;  %v708_v57 = vadd.f32 %v707_v1, %v4041_v4 }
 0x1a7   :  { %v709_v8 = vpop.f32.mrf.mxu0 }
 0x1a8   :  { %v953_v9 = vpack.c.bf16 %v875_v6, %v873_v2  ;;  %v710_v12 = vadd.f32 %v709_v8, %v4045_v5  ;;  %v876_v19 = vmax.f32 %v708_v57, 0.0 }
 0x1a9   :  { %v711_v11 = vpop.f32.mrf.mxu0 }
 0x1aa   :  { %v712_v13 = vadd.f32 %v711_v11, %v4041_v4  ;;  %1327 = vmatprep.mubr.bf16.mxu1 %v953_v9  ;;  %v877_v17 = vmax.f32 %v710_v12, 0.0 }
 0x1ab   :  { %v713_v14 = vpop.f32.mrf.mxu0  ;;  %1328 = vmatmul.mubr.bf16.gmra.mxu1 %v952_v10 }
 0x1ac   :  { %v714_v15 = vadd.f32 %v713_v14, %v4045_v5  ;;  %v878_v16 = vmax.f32 %v712_v13, 0.0 }
 0x1ad   :  { %v717_v52 = vpop.f32.mrf.mxu0 }
 0x1ae   :  { %v879_v18 = vmax.f32 %v714_v15, 0.0  ;;  %v954_v22 = vpack.c.bf16 %v878_v16, %v876_v19  ;;  %v718_v25 = vadd.f32 %v717_v52, %v4041_v4 }
 0x1af   :  { %v719_v20 = vpop.f32.mrf.mxu0 }
 0x1b0   :  { %v955_v21 = vpack.c.bf16 %v879_v18, %v877_v17  ;;  %v720_v50 = vadd.f32 %v719_v20, %v4045_v5  ;;  %v880_v31 = vmax.f32 %v718_v25, 0.0 }
 0x1b1   :  { %v721_v23 = vpop.f32.mrf.mxu0 }
 0x1b2   :  { %v722_v24 = vadd.f32 %v721_v23, %v4041_v4  ;;  %1335 = vmatprep.mubr.bf16.mxu1 %v955_v21  ;;  %v881_v30 = vmax.f32 %v720_v50, 0.0 }
 0x1b3   :  { %v723_v26 = vpop.f32.mrf.mxu0  ;;  %1336 = vmatmul.mubr.bf16.gmra.mxu1 %v954_v22 }
 0x1b4   :  { %v724_v27 = vadd.f32 %v723_v26, %v4045_v5  ;;  %v882_v28 = vmax.f32 %v722_v24, 0.0 }
 0x1b5   :  { %v727_v29 = vpop.f32.mrf.mxu0 }
 0x1b6   :  { %v883_v47 = vmax.f32 %v724_v27, 0.0  ;;  %v956_v33 = vpack.c.bf16 %v882_v28, %v880_v31  ;;  %v728_v37 = vadd.f32 %v727_v29, %v4041_v4 }
 0x1b7   :  { %v729_v3 = vpop.f32.mrf.mxu0 }
 0x1b8   :  { %v957_v32 = vpack.c.bf16 %v883_v47, %v881_v30  ;;  %v730_v35 = vadd.f32 %v729_v3, %v4045_v5  ;;  %v884_v53 = vmax.f32 %v728_v37, 0.0 }
 0x1b9   :  { %v731_v34 = vpop.f32.mrf.mxu0 }
 0x1ba   :  { %v732_v36 = vadd.f32 %v731_v34, %v4041_v4  ;;  %1343 = vmatprep.mubr.bf16.mxu1 %v957_v32  ;;  %v885_v45 = vmax.f32 %v730_v35, 0.0 }
 0x1bb   :  { %v733_v38 = vpop.f32.mrf.mxu0  ;;  %v1153_v40 = vpop.f32.mrf.mxu1  ;;  %1344 = vmatmul.mubr.bf16.gmra.mxu1 %v956_v33 }
 0x1bc   :  { %v734_v48 = vadd.f32 %v733_v38, %v4045_v5  ;;  %v886_v41 = vmax.f32 %v732_v36, 0.0  ;;  %v1154_v59 = vadd.f32 %v4442_v39, %v1153_v40 }
 0x1bd   :  { %v737_v42 = vpop.f32.mrf.mxu0  ;;  %v1155_v43 = vpop.f32.mrf.mxu1 }
 0x1be   :  { %v887_v46 = vmax.f32 %v734_v48, 0.0  ;;  %v958_v63 = vpack.c.bf16 %v886_v41, %v884_v53  ;;  %v1396_v1 = vmax.f32 %v1154_v59, 0.0  ;;  %v738_v8 = vadd.f32 %v737_v42, %v4041_v4 }
 0x1bf   :  { %v739_v54 = vpop.f32.mrf.mxu0  ;;  %v1156_v58 = vpop.f32.mrf.mxu1 }
 0x1c0   :  { %v959_v62 = vpack.c.bf16 %v887_v46, %v885_v45  ;;  %v1157_v44 = vadd.f32 %v4442_v39, %v1156_v58  ;;  %v740_v2 = vadd.f32 %v739_v54, %v4045_v5  ;;  %v888_v17 = vmax.f32 %v738_v8, 0.0 }
 0x1c1   :  { %v741_v0 = vpop.f32.mrf.mxu0  ;;  %v1158_v55 = vpop.f32.mrf.mxu1 }
 0x1c2   :  { %v1397_v6 = vmax.f32 %v1157_v44, 0.0  ;;  %v742_v7 = vadd.f32 %v741_v0, %v4041_v4  ;;  %1351 = vmatprep.mubr.bf16.mxu1 %v959_v62  ;;  %v889_v15 = vmax.f32 %v740_v2, 0.0 }
 0x1c3   :  { %v743_v9 = vpop.f32.mrf.mxu0  ;;  %v1161_v10 = vpop.f32.mrf.mxu1  ;;  %1352 = vmatmul.mubr.bf16.gmra.mxu1 %v958_v63 }
 0x1c4   :  { %v4453_v11 = vpack.c.bf16 %v1397_v6, %v1396_v1  ;;  %v744_v12 = vadd.f32 %v743_v9, %v4045_v5  ;;  %v890_v13 = vmax.f32 %v742_v7, 0.0  ;;  %v1162_v52 = vadd.f32 %v4442_v39, %v1161_v10 }
 0x1c5   :  { %v747_v57 = vpop.f32.mrf.mxu0  ;;  %v1163_v14 = vpop.f32.mrf.mxu1 }
 0x1c6   :  { %v891_v16 = vmax.f32 %v744_v12, 0.0  ;;  %v960_v22 = vpack.c.bf16 %v890_v13, %v888_v17  ;;  %v1398_v24 = vmax.f32 %v1162_v52, 0.0  ;;  %v748_v28 = vadd.f32 %v747_v57, %v4041_v4 }
 0x1c7   :  { %v749_v18 = vpop.f32.mrf.mxu0  ;;  %v1164_v19 = vpop.f32.mrf.mxu1 }
 0x1c8   :  { %v961_v20 = vpack.c.bf16 %v891_v16, %v889_v15  ;;  %v1165_v21 = vadd.f32 %v4442_v39, %v1164_v19  ;;  %v750_v25 = vadd.f32 %v749_v18, %v4045_v5  ;;  %v892_v37 = vmax.f32 %v748_v28, 0.0 }
 0x1c9   :  { %v751_v23 = vpop.f32.mrf.mxu0  ;;  %v1166_v50 = vpop.f32.mrf.mxu1 }
 0x1ca   :  { %v1399_v26 = vmax.f32 %v1165_v21, 0.0  ;;  %v752_v27 = vadd.f32 %v751_v23, %v4041_v4  ;;  %1359 = vmatprep.mubr.bf16.mxu1 %v961_v20  ;;  %v893_v34 = vmax.f32 %v750_v25, 0.0  ;;  %v3537_v50 = vld [vmem:[%s4994_s9 + $0x10] sm:$0xff]  }
 0x1cb   :  { %v753_v29 = vpop.f32.mrf.mxu0  ;;  %v1169_v30 = vpop.f32.mrf.mxu1  ;;  %1360 = vmatmul.mubr.bf16.gmra.mxu1 %v960_v22  ;;  %3370 = vmatprep.subr.bf16.mxu1 %v3537_v50 }
 0x1cc   :  { %v4461_v47 = vpack.c.bf16 %v1399_v26, %v1398_v24  ;;  %v754_v31 = vadd.f32 %v753_v29, %v4045_v5  ;;  %v894_v3 = vmax.f32 %v752_v27, 0.0  ;;  %v1170_v36 = vadd.f32 %v4442_v39, %v1169_v30  ;;  %3371 = vmatpush3.bf16.msra.mxu1 %v3537_v50 }
 0x1cd   :  { %v757_v32 = vpop.f32.mrf.mxu0  ;;  %v1171_v33 = vpop.f32.mrf.mxu1 }
 0x1ce   :  { %v895_v35 = vmax.f32 %v754_v31, 0.0  ;;  %v962_v42 = vpack.c.bf16 %v894_v3, %v892_v37  ;;  %v1400_v46 = vmax.f32 %v1170_v36, 0.0  ;;  %v758_v54 = vadd.f32 %v757_v32, %v4041_v4 }
 0x1cf   :  { %v759_v38 = vpop.f32.mrf.mxu0  ;;  %v1172_v40 = vpop.f32.mrf.mxu1 }
 0x1d0   :  { %v963_v48 = vpack.c.bf16 %v895_v35, %v893_v34  ;;  %v1173_v41 = vadd.f32 %v4442_v39, %v1172_v40  ;;  %v760_v59 = vadd.f32 %v759_v38, %v4045_v5  ;;  %v896_v8 = vmax.f32 %v758_v54, 0.0 }
 0x1d1   :  { %v761_v43 = vpop.f32.mrf.mxu0  ;;  %v1174_v45 = vpop.f32.mrf.mxu1 }
 0x1d2   :  { %v1401_v49 = vmax.f32 %v1173_v41, 0.0  ;;  %v762_v53 = vadd.f32 %v761_v43, %v4041_v4  ;;  %1367 = vmatprep.mubr.bf16.mxu1 %v963_v48  ;;  %v897_v2 = vmax.f32 %v760_v59, 0.0 }
 0x1d3   :  { %v763_v58 = vpop.f32.mrf.mxu0  ;;  %v1177_v62 = vpop.f32.mrf.mxu1  ;;  %1368 = vmatmul.mubr.bf16.gmra.mxu1 %v962_v42 }
 0x1d4   :  { %v4469_v44 = vpack.c.bf16 %v1401_v49, %v1400_v46  ;;  %v764_v63 = vadd.f32 %v763_v58, %v4045_v5  ;;  %v898_v0 = vmax.f32 %v762_v53, 0.0  ;;  %v1178_v7 = vadd.f32 %v4442_v39, %v1177_v62 }
 0x1d5   :  { %v767_v55 = vpop.f32.mrf.mxu0  ;;  %v1179_v1 = vpop.f32.mrf.mxu1 }
 0x1d6   :  { %v899_v6 = vmax.f32 %v764_v63, 0.0  ;;  %v964_v57 = vpack.c.bf16 %v898_v0, %v896_v8  ;;  %v1402_v16 = vmax.f32 %v1178_v7, 0.0  ;;  %v768_v19 = vadd.f32 %v767_v55, %v4041_v4  ;;  %v3538_v63 = vld [vmem:[%s4994_s9 + $0x8] sm:$0xff]  }
 0x1d7   :  { %v769_v9 = vpop.f32.mrf.mxu0  ;;  %v1180_v10 = vpop.f32.mrf.mxu1  ;;  %3372 = vmatprep.subr.bf16.mxu1 %v3538_v63 }
 0x1d8   :  { %v965_v12 = vpack.c.bf16 %v899_v6, %v897_v2  ;;  %v1181_v13 = vadd.f32 %v4442_v39, %v1180_v10  ;;  %v770_v52 = vadd.f32 %v769_v9, %v4045_v5  ;;  %3373 = vmatpush3.bf16.msra.mxu1 %v3538_v63 }
 0x1d9   :  { %v771_v14 = vpop.f32.mrf.mxu0  ;;  %v1182_v15 = vpop.f32.mrf.mxu1 }
 0x1da   :  { %v1403_v17 = vmax.f32 %v1181_v13, 0.0  ;;  %v772_v18 = vadd.f32 %v771_v14, %v4041_v4  ;;  %1375 = vmatprep.mubr.bf16.mxu1 %v965_v12  ;;  %v901_v27 = vmax.f32 %v770_v52, 0.0  ;;  %v900_v4 = vmax.f32 %v768_v19, 0.0  ;;  %v3539_v13 = vld [vmem:[%s4994_s9] sm:$0xff]  }
 0x1db   :  { %v773_v20 = vpop.f32.mrf.mxu0  ;;  %v1185_v21 = vpop.f32.mrf.mxu1  ;;  %1376 = vmatmul.mubr.bf16.gmra.mxu1 %v964_v57  ;;  %3374 = vmatprep.subr.bf16.mxu1 %v3539_v13  ;;  %v4510_v19 = vld [vmem:[%s4993_s8] ss:$0 sm:$0xff]  ;;  %s3588_s8 = smov 64  }
 0x1dc   :  { %v4477_v22 = vpack.c.bf16 %v1403_v17, %v1402_v16  ;;  %v774_v23 = vadd.f32 %v773_v20, %v4045_v5  ;;  %v902_v24 = vmax.f32 %v772_v18, 0.0  ;;  %v1186_v29 = vadd.f32 %v4442_v39, %v1185_v21  ;;  %3375 = vmatpush3.bf16.msra.mxu1 %v3539_v13 }
 0x1dd   :  { %v1137_v25 = vpop.f32.mrf.mxu0  ;;  %v1187_v26 = vpop.f32.mrf.mxu1 }
 0x1de   :  { %v903_v28 = vmax.f32 %v774_v23, 0.0  ;;  %v1138_v32 = vadd.f32 %v4442_v39, %v1137_v25  ;;  %v966_v33 = vpack.c.bf16 %v902_v24, %v900_v4  ;;  %v1404_v36 = vmax.f32 %v1186_v29, 0.0 }
 0x1df   :  { %v1139_v30 = vpop.f32.mrf.mxu0  ;;  %v1188_v31 = vpop.f32.mrf.mxu1 }
 0x1e0   :  { %v967_v3 = vpack.c.bf16 %v903_v28, %v901_v27  ;;  %v1189_v5 = vadd.f32 %v4442_v39, %v1188_v31  ;;  %v1392_v41 = vmax.f32 %v1138_v32, 0.0 }
 0x1e1   :  { %v1140_v34 = vpop.f32.mrf.mxu0  ;;  %v1190_v35 = vpop.f32.mrf.mxu1 }
 0x1e2   :  { %v1405_v37 = vmax.f32 %v1189_v5, 0.0  ;;  %v1141_v38 = vadd.f32 %v4442_v39, %v1140_v34  ;;  %1383 = vmatprep.mubr.bf16.mxu1 %v967_v3 }
 0x1e3   :  { %v1142_v40 = vpop.f32.mrf.mxu0  ;;  %v1193_v48 = vpop.f32.mrf.mxu1  ;;  %1384 = vmatmul.mubr.bf16.gmra.mxu1 %v966_v33 }
 0x1e4   :  { %v4487_v42 = vpack.c.bf16 %v1405_v37, %v1404_v36  ;;  %v1393_v43 = vmax.f32 %v1141_v38, 0.0  ;;  %v1194_v49 = vadd.f32 %v4442_v39, %v1193_v48 }
 0x1e5   :  { %v1145_v45 = vpop.f32.mrf.mxu0  ;;  %v1195_v46 = vpop.f32.mrf.mxu1 }
 0x1e6   :  { %v4489_v59 = vpack.c.bf16 %v1393_v43, %v1392_v41  ;;  %v1146_v58 = vadd.f32 %v4442_v39, %v1145_v45  ;;  %v1406_v1 = vmax.f32 %v1194_v49, 0.0 }
 0x1e7   :  { %v1147_v53 = vpop.f32.mrf.mxu0  ;;  %v1196_v54 = vpop.f32.mrf.mxu1 }
 0x1e8   :  { %v1197_v62 = vadd.f32 %v4442_v39, %v1196_v54  ;;  %v1394_v9 = vmax.f32 %v1146_v58, 0.0 }
 0x1e9   :  { %v1148_v0 = vpop.f32.mrf.mxu0  ;;  %v1198_v55 = vpop.f32.mrf.mxu1 }
 0x1ea   :  { %v1407_v2 = vmax.f32 %v1197_v62, 0.0  ;;  %v1149_v6 = vadd.f32 %v4442_v39, %v1148_v0 }
 0x1eb   :  { %v1150_v7 = vpop.f32.mrf.mxu0  ;;  %v1201_v8 = vpop.f32.mrf.mxu1 }
 0x1ec   :  { %v4498_v10 = vpack.c.bf16 %v1407_v2, %v1406_v1  ;;  %v1395_v12 = vmax.f32 %v1149_v6, 0.0  ;;  %v1202_v16 = vadd.f32 %v4442_v39, %v1201_v8 }
 0x1ed   :  { %v1203_v57 = vpop.f32.mrf.mxu1  ;;  %v3298_v14 = vpop.f32.mrf.mxu0 }
 0x1ee   :  { %v4503_v15 = vpack.c.bf16 %v1395_v12, %v1394_v9  ;;  %v1408_v23 = vmax.f32 %v1202_v16, 0.0  ;;  %v1619_v31 = vadd.f32 %v3298_v14, %v4510_v19 }
 0x1ef   :  { %v1204_v52 = vpop.f32.mrf.mxu1  ;;  %v1610_v17 = vpop.f32.mrf.mxu0 }
 0x1f0   :  { %v1205_v18 = vadd.f32 %v4442_v39, %v1204_v52  ;;  %v1611_v24 = vadd.f32 %v4510_v19, %v1610_v17  ;;  %v1867_v48 = vmax.f32 %v1619_v31, 0.0 }
 0x1f1   :  { %v1206_v20 = vpop.f32.mrf.mxu1  ;;  %v3299_v21 = vpop.f32.mrf.mxu0 }
 0x1f2   :  { %v1409_v50 = vmax.f32 %v1205_v18, 0.0  ;;  %v1622_v28 = vadd.f32 %v3299_v21, %v4510_v19  ;;  %v1865_v3 = vmax.f32 %v1611_v24, 0.0 }
 0x1f3   :  { %v1209_v25 = vpop.f32.mrf.mxu1  ;;  %v1613_v26 = vpop.f32.mrf.mxu0 }
 0x1f4   :  { %v4513_v27 = vpack.c.bf16 %v1409_v50, %v1408_v23  ;;  %v1614_v29 = vadd.f32 %v4510_v19, %v1613_v26  ;;  %v1210_v32 = vadd.f32 %v4442_v39, %v1209_v25  ;;  %v1868_v35 = vmax.f32 %v1622_v28, 0.0 }
 0x1f5   :  { %v1211_v4 = vpop.f32.mrf.mxu1  ;;  %v3302_v30 = vpop.f32.mrf.mxu0 }
 0x1f6   :  { %v1866_v5 = vmax.f32 %v1614_v29, 0.0  ;;  %v1410_v41 = vmax.f32 %v1210_v32, 0.0  ;;  %v1962_v54 = vpack.c.bf16 %v1868_v35, %v1867_v48  ;;  %v1635_v63 = vadd.f32 %v3302_v30, %v4510_v19 }
 0x1f7   :  { %v1212_v33 = vpop.f32.mrf.mxu1  ;;  %v1626_v34 = vpop.f32.mrf.mxu0 }
 0x1f8   :  { %v1213_v36 = vadd.f32 %v4442_v39, %v1212_v33  ;;  %v1961_v37 = vpack.c.bf16 %v1866_v5, %v1865_v3  ;;  %v1627_v45 = vadd.f32 %v4510_v19, %v1626_v34  ;;  %v1871_v14 = vmax.f32 %v1635_v63, 0.0 }
 0x1f9   :  { %v1214_v38 = vpop.f32.mrf.mxu1  ;;  %v3303_v40 = vpop.f32.mrf.mxu0 }
 0x1fa   :  { %v1411_v43 = vmax.f32 %v1213_v36, 0.0  ;;  %2025 = vrot.lane.b32.xlu0 %v1961_v37, %s3588_s8  ;;  %v1638_v46 = vadd.f32 %v3303_v40, %v4510_v19  ;;  %v1869_v1 = vmax.f32 %v1627_v45, 0.0 }
 0x1fb   :  { %v1217_v49 = vpop.f32.mrf.mxu1  ;;  %v1629_v53 = vpop.f32.mrf.mxu0 }
 0x1fc   :  { %v4523_v58 = vpack.c.bf16 %v1411_v43, %v1410_v41  ;;  %v1630_v62 = vadd.f32 %v4510_v19, %v1629_v53  ;;  %v1218_v2 = vadd.f32 %v4442_v39, %v1217_v49  ;;  %v1872_v7 = vmax.f32 %v1638_v46, 0.0 }
 0x1fd   :  { %v1219_v0 = vpop.f32.mrf.mxu1  ;;  %v3306_v55 = vpop.f32.mrf.mxu0 }
 0x1fe   :  { %v1870_v6 = vmax.f32 %v1630_v62, 0.0  ;;  %2027 = vrot.lane.b32.xlu0 %v1962_v54, %s3588_s8  ;;  %v1651_v12 = vadd.f32 %v3306_v55, %v4510_v19  ;;  %v1412_v17 = vmax.f32 %v1218_v2, 0.0  ;;  %v1964_v23 = vpack.c.bf16 %v1872_v7, %v1871_v14 }
 0x1ff   :  { %v1220_v8 = vpop.f32.mrf.mxu1  ;;  %v1642_v9 = vpop.f32.mrf.mxu0 }
 0x200   :  { %v1221_v13 = vadd.f32 %v4442_v39, %v1220_v8  ;;  %v1963_v57 = vpack.c.bf16 %v1870_v6, %v1869_v1  ;;  %v1643_v20 = vadd.f32 %v4510_v19, %v1642_v9  ;;  %v1875_v25 = vmax.f32 %v1651_v12, 0.0 }
 0x201   :  { %v1222_v16 = vpop.f32.mrf.mxu1  ;;  %v3307_v52 = vpop.f32.mrf.mxu0 }
 0x202   :  { %v1413_v18 = vmax.f32 %v1221_v13, 0.0  ;;  %v1654_v21 = vadd.f32 %v3307_v52, %v4510_v19  ;;  %2029 = vrot.lane.b32.xlu1 %v1963_v57, %s3588_s8  ;;  %v1873_v31 = vmax.f32 %v1643_v20, 0.0 }
 0x203   :  { %v1225_v50 = vpop.f32.mrf.mxu1  ;;  %v1645_v24 = vpop.f32.mrf.mxu0 }
 0x204   :  { %v4534_v26 = vpack.c.bf16 %v1413_v18, %v1412_v17  ;;  %v1876_v28 = vmax.f32 %v1654_v21, 0.0  ;;  %v1646_v29 = vadd.f32 %v4510_v19, %v1645_v24  ;;  %v1226_v3 = vadd.f32 %v4442_v39, %v1225_v50 }
 0x205   :  { %v1227_v4 = vpop.f32.mrf.mxu1  ;;  %v3310_v30 = vpop.f32.mrf.mxu0 }
 0x206   :  { %v1874_v32 = vmax.f32 %v1646_v29, 0.0  ;;  %v1667_v5 = vadd.f32 %v3310_v30, %v4510_v19  ;;  %2031 = vrot.lane.b32.xlu1 %v1964_v23, %s3588_s8  ;;  %v1966_v35 = vpack.c.bf16 %v1876_v28, %v1875_v25  ;;  %v1414_v41 = vmax.f32 %v1226_v3, 0.0 }
 0x207   :  { %v1228_v33 = vpop.f32.mrf.mxu1  ;;  %v1658_v34 = vpop.f32.mrf.mxu0 }
 0x208   :  { %v1965_v36 = vpack.c.bf16 %v1874_v32, %v1873_v31  ;;  %v1229_v37 = vadd.f32 %v4442_v39, %v1228_v33  ;;  %v1659_v38 = vadd.f32 %v4510_v19, %v1658_v34  ;;  %v1879_v43 = vmax.f32 %v1667_v5, 0.0 }
 0x209   :  { %v1230_v40 = vpop.f32.mrf.mxu1  ;;  %v3311_v48 = vpop.f32.mrf.mxu0 }
 0x20a   :  { %v1415_v45 = vmax.f32 %v1229_v37, 0.0  ;;  %v1670_v46 = vadd.f32 %v3311_v48, %v4510_v19  ;;  %2035 = vrot.lane.b32.xlu1 %v1966_v35, %s3588_s8  ;;  %2033 = vrot.lane.b32.xlu0 %v1965_v36, %s3588_s8  ;;  %v1877_v0 = vmax.f32 %v1659_v38, 0.0 }
 0x20b   :  { %v1233_v49 = vpop.f32.mrf.mxu1  ;;  %v1661_v53 = vpop.f32.mrf.mxu0 }
 0x20c   :  { %v4545_v54 = vpack.c.bf16 %v1415_v45, %v1414_v41  ;;  %v1880_v62 = vmax.f32 %v1670_v46, 0.0  ;;  %v1662_v63 = vadd.f32 %v4510_v19, %v1661_v53  ;;  %v1234_v6 = vadd.f32 %v4442_v39, %v1233_v49 }
 0x20d   :  { %v1235_v55 = vpop.f32.mrf.mxu1  ;;  %v3314_v1 = vpop.f32.mrf.mxu0 }
 0x20e   :  { %v1968_v2 = vpack.c.bf16 %v1880_v62, %v1879_v43  ;;  %v1878_v7 = vmax.f32 %v1662_v63, 0.0  ;;  %v1683_v8 = vadd.f32 %v3314_v1, %v4510_v19  ;;  %v1416_v17 = vmax.f32 %v1234_v6, 0.0 }
 0x20f   :  { %v1236_v9 = vpop.f32.mrf.mxu1  ;;  %v1674_v12 = vpop.f32.mrf.mxu0 }
 0x210   :  { %v1967_v13 = vpack.c.bf16 %v1878_v7, %v1877_v0  ;;  %v1237_v57 = vadd.f32 %v4442_v39, %v1236_v9  ;;  %2039 = vrot.lane.b32.xlu1 %v1968_v2, %s3588_s8  ;;  %v1675_v14 = vadd.f32 %v4510_v19, %v1674_v12  ;;  %v1883_v18 = vmax.f32 %v1683_v8, 0.0 }
 0x211   :  { %v1238_v16 = vpop.f32.mrf.mxu1  ;;  %v3315_v52 = vpop.f32.mrf.mxu0 }
 0x212   :  { %v1417_v20 = vmax.f32 %v1237_v57, 0.0  ;;  %v1686_v21 = vadd.f32 %v3315_v52, %v4510_v19  ;;  %2037 = vrot.lane.b32.xlu0 %v1967_v13, %s3588_s8  ;;  %v1881_v29 = vmax.f32 %v1675_v14, 0.0 }
 0x213   :  { %v1241_v23 = vpop.f32.mrf.mxu1  ;;  %v1677_v50 = vpop.f32.mrf.mxu0 }
 0x214   :  { %v4555_v24 = vpack.c.bf16 %v1417_v20, %v1416_v17  ;;  %v1884_v25 = vmax.f32 %v1686_v21, 0.0  ;;  %v1678_v28 = vadd.f32 %v4510_v19, %v1677_v50  ;;  %v1242_v3 = vadd.f32 %v4442_v39, %v1241_v23 }
 0x215   :  { %v1243_v4 = vpop.f32.mrf.mxu1  ;;  %v3318_v30 = vpop.f32.mrf.mxu0 }
 0x216   :  { %v1970_v31 = vpack.c.bf16 %v1884_v25, %v1883_v18  ;;  %v1882_v32 = vmax.f32 %v1678_v28, 0.0  ;;  %v1699_v5 = vadd.f32 %v3318_v30, %v4510_v19  ;;  %v1418_v48 = vmax.f32 %v1242_v3, 0.0 }
 0x217   :  { %v1244_v33 = vpop.f32.mrf.mxu1  ;;  %v1690_v34 = vpop.f32.mrf.mxu0 }
 0x218   :  { %v1969_v35 = vpack.c.bf16 %v1882_v32, %v1881_v29  ;;  %v1245_v36 = vadd.f32 %v4442_v39, %v1244_v33  ;;  %2043 = vrot.lane.b32.xlu1 %v1970_v31, %s3588_s8  ;;  %v1691_v37 = vadd.f32 %v4510_v19, %v1690_v34  ;;  %v1887_v41 = vmax.f32 %v1699_v5, 0.0 }
 0x219   :  { %v1246_v38 = vpop.f32.mrf.mxu1  ;;  %v3319_v40 = vpop.f32.mrf.mxu0 }
 0x21a   :  { %v1419_v43 = vmax.f32 %v1245_v36, 0.0  ;;  %v1702_v45 = vadd.f32 %v3319_v40, %v4510_v19  ;;  %2041 = vrot.lane.b32.xlu0 %v1969_v35, %s3588_s8  ;;  %v1885_v0 = vmax.f32 %v1691_v37, 0.0 }
 0x21b   :  { %v1249_v46 = vpop.f32.mrf.mxu1  ;;  %v1693_v49 = vpop.f32.mrf.mxu0 }
 0x21c   :  { %v4565_v53 = vpack.c.bf16 %v1419_v43, %v1418_v48  ;;  %v1888_v62 = vmax.f32 %v1702_v45, 0.0  ;;  %v1694_v63 = vadd.f32 %v4510_v19, %v1693_v49  ;;  %v1250_v6 = vadd.f32 %v4442_v39, %v1249_v46 }
 0x21d   :  { %v1251_v55 = vpop.f32.mrf.mxu1  ;;  %v3322_v1 = vpop.f32.mrf.mxu0 }
 0x21e   :  { %v1972_v2 = vpack.c.bf16 %v1888_v62, %v1887_v41  ;;  %v1886_v7 = vmax.f32 %v1694_v63, 0.0  ;;  %v1715_v8 = vadd.f32 %v3322_v1, %v4510_v19  ;;  %v1420_v17 = vmax.f32 %v1250_v6, 0.0 }
 0x21f   :  { %v1252_v9 = vpop.f32.mrf.mxu1  ;;  %v1706_v12 = vpop.f32.mrf.mxu0 }
 0x220   :  { %v1971_v13 = vpack.c.bf16 %v1886_v7, %v1885_v0  ;;  %v1253_v57 = vadd.f32 %v4442_v39, %v1252_v9  ;;  %2047 = vrot.lane.b32.xlu1 %v1972_v2, %s3588_s8  ;;  %v1707_v14 = vadd.f32 %v4510_v19, %v1706_v12  ;;  %v1891_v18 = vmax.f32 %v1715_v8, 0.0 }
 0x221   :  { %v1254_v16 = vpop.f32.mrf.mxu1  ;;  %v3323_v52 = vpop.f32.mrf.mxu0 }
 0x222   :  { %v1421_v20 = vmax.f32 %v1253_v57, 0.0  ;;  %v1718_v21 = vadd.f32 %v3323_v52, %v4510_v19  ;;  %2045 = vrot.lane.b32.xlu0 %v1971_v13, %s3588_s8  ;;  %v1889_v4 = vmax.f32 %v1707_v14, 0.0 }
 0x223   :  { %v1257_v23 = vpop.f32.mrf.mxu1  ;;  %v1709_v50 = vpop.f32.mrf.mxu0 }
 0x224   :  { %v4575_v25 = vpack.c.bf16 %v1421_v20, %v1420_v17  ;;  %v1892_v28 = vmax.f32 %v1718_v21, 0.0  ;;  %v1710_v29 = vadd.f32 %v4510_v19, %v1709_v50  ;;  %v1258_v32 = vadd.f32 %v4442_v39, %v1257_v23 }
 0x225   :  { %v1259_v30 = vpop.f32.mrf.mxu1  ;;  %v3326_v31 = vpop.f32.mrf.mxu0 }
 0x226   :  { %v1974_v3 = vpack.c.bf16 %v1892_v28, %v1891_v18  ;;  %v1890_v5 = vmax.f32 %v1710_v29, 0.0  ;;  %v1731_v33 = vadd.f32 %v3326_v31, %v4510_v19  ;;  %v1422_v41 = vmax.f32 %v1258_v32, 0.0 }
 0x227   :  { %v1260_v34 = vpop.f32.mrf.mxu1  ;;  %v1722_v35 = vpop.f32.mrf.mxu0 }
 0x228   :  { %v1973_v36 = vpack.c.bf16 %v1890_v5, %v1889_v4  ;;  %v1261_v37 = vadd.f32 %v4442_v39, %v1260_v34  ;;  %2051 = vrot.lane.b32.xlu1 %v1974_v3, %s3588_s8  ;;  %v1723_v38 = vadd.f32 %v4510_v19, %v1722_v35  ;;  %v1895_v43 = vmax.f32 %v1731_v33, 0.0 }
 0x229   :  { %v1262_v40 = vpop.f32.mrf.mxu1  ;;  %v3327_v48 = vpop.f32.mrf.mxu0 }
 0x22a   :  { %v1423_v45 = vmax.f32 %v1261_v37, 0.0  ;;  %v1734_v46 = vadd.f32 %v3327_v48, %v4510_v19  ;;  %2049 = vrot.lane.b32.xlu0 %v1973_v36, %s3588_s8  ;;  %v1893_v1 = vmax.f32 %v1723_v38, 0.0 }
 0x22b   :  { %v1265_v49 = vpop.f32.mrf.mxu1  ;;  %v1725_v62 = vpop.f32.mrf.mxu0 }
 0x22c   :  { %v4585_v63 = vpack.c.bf16 %v1423_v45, %v1422_v41  ;;  %v1896_v0 = vmax.f32 %v1734_v46, 0.0  ;;  %v1726_v55 = vadd.f32 %v4510_v19, %v1725_v62  ;;  %v1266_v8 = vadd.f32 %v4442_v39, %v1265_v49 }
 0x22d   :  { %v1267_v2 = vpop.f32.mrf.mxu1  ;;  %v3330_v6 = vpop.f32.mrf.mxu0 }
 0x22e   :  { %v1976_v7 = vpack.c.bf16 %v1896_v0, %v1895_v43  ;;  %v1894_v9 = vmax.f32 %v1726_v55, 0.0  ;;  %v1747_v12 = vadd.f32 %v3330_v6, %v4510_v19  ;;  %v1424_v20 = vmax.f32 %v1266_v8, 0.0 }
 0x22f   :  { %v1268_v13 = vpop.f32.mrf.mxu1  ;;  %v1738_v57 = vpop.f32.mrf.mxu0 }
 0x230   :  { %v1975_v14 = vpack.c.bf16 %v1894_v9, %v1893_v1  ;;  %v1269_v16 = vadd.f32 %v4442_v39, %v1268_v13  ;;  %v1739_v52 = vadd.f32 %v4510_v19, %v1738_v57  ;;  %2055 = vrot.lane.b32.xlu1 %v1976_v7, %s3588_s8  ;;  %v1899_v21 = vmax.f32 %v1747_v12, 0.0 }
 0x231   :  { %v1270_v17 = vpop.f32.mrf.mxu1  ;;  %v3331_v18 = vpop.f32.mrf.mxu0 }
 0x232   :  { %v1425_v23 = vmax.f32 %v1269_v16, 0.0  ;;  %v1750_v50 = vadd.f32 %v3331_v18, %v4510_v19  ;;  %2053 = vrot.lane.b32.xlu0 %v1975_v14, %s3588_s8  ;;  %v1897_v30 = vmax.f32 %v1739_v52, 0.0 }
 0x233   :  { %v1273_v28 = vpop.f32.mrf.mxu1  ;;  %v1741_v29 = vpop.f32.mrf.mxu0 }
 0x234   :  { %v4595_v4 = vpack.c.bf16 %v1425_v23, %v1424_v20  ;;  %v1900_v31 = vmax.f32 %v1750_v50, 0.0  ;;  %v1742_v3 = vadd.f32 %v4510_v19, %v1741_v29  ;;  %v1274_v34 = vadd.f32 %v4442_v39, %v1273_v28 }
 0x235   :  { %v1275_v32 = vpop.f32.mrf.mxu1  ;;  %v3334_v5 = vpop.f32.mrf.mxu0 }
 0x236   :  { %v1978_v33 = vpack.c.bf16 %v1900_v31, %v1899_v21  ;;  %v1898_v35 = vmax.f32 %v1742_v3, 0.0  ;;  %v1763_v36 = vadd.f32 %v3334_v5, %v4510_v19  ;;  %v1426_v46 = vmax.f32 %v1274_v34, 0.0 }
 0x237   :  { %v1276_v37 = vpop.f32.mrf.mxu1  ;;  %v1754_v38 = vpop.f32.mrf.mxu0 }
 0x238   :  { %v1977_v40 = vpack.c.bf16 %v1898_v35, %v1897_v30  ;;  %v1277_v48 = vadd.f32 %v4442_v39, %v1276_v37  ;;  %v1755_v41 = vadd.f32 %v4510_v19, %v1754_v38  ;;  %2059 = vrot.lane.b32.xlu1 %v1978_v33, %s3588_s8  ;;  %v1903_v49 = vmax.f32 %v1763_v36, 0.0 }
 0x239   :  { %v1278_v43 = vpop.f32.mrf.mxu1  ;;  %v3335_v45 = vpop.f32.mrf.mxu0 }
 0x23a   :  { %v1427_v62 = vmax.f32 %v1277_v48, 0.0  ;;  %v1766_v0 = vadd.f32 %v3335_v45, %v4510_v19  ;;  %2057 = vrot.lane.b32.xlu0 %v1977_v40, %s3588_s8  ;;  %v1901_v6 = vmax.f32 %v1755_v41, 0.0 }
 0x23b   :  { %v1281_v55 = vpop.f32.mrf.mxu1  ;;  %v1757_v1 = vpop.f32.mrf.mxu0 }
 0x23c   :  { %v4605_v2 = vpack.c.bf16 %v1427_v62, %v1426_v46  ;;  %v1904_v7 = vmax.f32 %v1766_v0, 0.0  ;;  %v1758_v8 = vadd.f32 %v4510_v19, %v1757_v1  ;;  %v1282_v57 = vadd.f32 %v4442_v39, %v1281_v55 }
 0x23d   :  { %v1283_v9 = vpop.f32.mrf.mxu1  ;;  %v3338_v12 = vpop.f32.mrf.mxu0 }
 0x23e   :  { %v1980_v13 = vpack.c.bf16 %v1904_v7, %v1903_v49  ;;  %v1902_v14 = vmax.f32 %v1758_v8, 0.0  ;;  %v1779_v16 = vadd.f32 %v3338_v12, %v4510_v19  ;;  %v1428_v28 = vmax.f32 %v1282_v57, 0.0 }
 0x23f   :  { %v1284_v52 = vpop.f32.mrf.mxu1  ;;  %v1770_v17 = vpop.f32.mrf.mxu0 }
 0x240   :  { %v1979_v18 = vpack.c.bf16 %v1902_v14, %v1901_v6  ;;  %v1285_v20 = vadd.f32 %v4442_v39, %v1284_v52  ;;  %v1771_v21 = vadd.f32 %v4510_v19, %v1770_v17  ;;  %2063 = vrot.lane.b32.xlu1 %v1980_v13, %s3588_s8  ;;  %v1907_v29 = vmax.f32 %v1779_v16, 0.0 }
 0x241   :  { %v1286_v23 = vpop.f32.mrf.mxu1  ;;  %v3339_v50 = vpop.f32.mrf.mxu0 }
 0x242   :  { %v1429_v30 = vmax.f32 %v1285_v20, 0.0  ;;  %v1782_v31 = vadd.f32 %v3339_v50, %v4510_v19  ;;  %2061 = vrot.lane.b32.xlu0 %v1979_v18, %s3588_s8  ;;  %v1905_v33 = vmax.f32 %v1771_v21, 0.0 }
 0x243   :  { %v1289_v3 = vpop.f32.mrf.mxu1  ;;  %v1773_v32 = vpop.f32.mrf.mxu0 }
 0x244   :  { %v4615_v5 = vpack.c.bf16 %v1429_v30, %v1428_v28  ;;  %v1908_v34 = vmax.f32 %v1782_v31, 0.0  ;;  %v1774_v35 = vadd.f32 %v4510_v19, %v1773_v32  ;;  %v1290_v40 = vadd.f32 %v4442_v39, %v1289_v3 }
 0x245   :  { %v1291_v36 = vpop.f32.mrf.mxu1  ;;  %v3342_v37 = vpop.f32.mrf.mxu0 }
 0x246   :  { %v1982_v38 = vpack.c.bf16 %v1908_v34, %v1907_v29  ;;  %v1906_v48 = vmax.f32 %v1774_v35, 0.0  ;;  %v1795_v41 = vadd.f32 %v3342_v37, %v4510_v19  ;;  %v1430_v1 = vmax.f32 %v1290_v40, 0.0 }
 0x247   :  { %v1292_v43 = vpop.f32.mrf.mxu1  ;;  %v1786_v45 = vpop.f32.mrf.mxu0 }
 0x248   :  { %v1981_v46 = vpack.c.bf16 %v1906_v48, %v1905_v33  ;;  %v1293_v49 = vadd.f32 %v4442_v39, %v1292_v43  ;;  %v1787_v62 = vadd.f32 %v4510_v19, %v1786_v45  ;;  %2067 = vrot.lane.b32.xlu1 %v1982_v38, %s3588_s8  ;;  %v1911_v6 = vmax.f32 %v1795_v41, 0.0 }
 0x249   :  { %v1294_v0 = vpop.f32.mrf.mxu1  ;;  %v3343_v55 = vpop.f32.mrf.mxu0 }
 0x24a   :  { %v1431_v7 = vmax.f32 %v1293_v49, 0.0  ;;  %v1798_v8 = vadd.f32 %v3343_v55, %v4510_v19  ;;  %2065 = vrot.lane.b32.xlu0 %v1981_v46, %s3588_s8  ;;  %v1909_v57 = vmax.f32 %v1787_v62, 0.0 }
 0x24b   :  { %v1297_v9 = vpop.f32.mrf.mxu1  ;;  %v1789_v12 = vpop.f32.mrf.mxu0 }
 0x24c   :  { %v4625_v13 = vpack.c.bf16 %v1431_v7, %v1430_v1  ;;  %v1912_v14 = vmax.f32 %v1798_v8, 0.0  ;;  %v1790_v16 = vadd.f32 %v4510_v19, %v1789_v12  ;;  %v1298_v20 = vadd.f32 %v4442_v39, %v1297_v9 }
 0x24d   :  { %v1299_v52 = vpop.f32.mrf.mxu1  ;;  %v3346_v17 = vpop.f32.mrf.mxu0 }
 0x24e   :  { %v1984_v18 = vpack.c.bf16 %v1912_v14, %v1911_v6  ;;  %v1910_v21 = vmax.f32 %v1790_v16, 0.0  ;;  %v1811_v23 = vadd.f32 %v3346_v17, %v4510_v19  ;;  %v1432_v33 = vmax.f32 %v1298_v20, 0.0 }
 0x24f   :  { %v1300_v50 = vpop.f32.mrf.mxu1  ;;  %v1802_v28 = vpop.f32.mrf.mxu0 }
 0x250   :  { %v1983_v29 = vpack.c.bf16 %v1910_v21, %v1909_v57  ;;  %v1301_v30 = vadd.f32 %v4442_v39, %v1300_v50  ;;  %v1803_v31 = vadd.f32 %v4510_v19, %v1802_v28  ;;  %2071 = vrot.lane.b32.xlu1 %v1984_v18, %s3588_s8  ;;  %v1915_v34 = vmax.f32 %v1811_v23, 0.0 }
 0x251   :  { %v1302_v3 = vpop.f32.mrf.mxu1  ;;  %v3347_v32 = vpop.f32.mrf.mxu0 }
 0x252   :  { %v1433_v35 = vmax.f32 %v1301_v30, 0.0  ;;  %v1814_v36 = vadd.f32 %v3347_v32, %v4510_v19  ;;  %2069 = vrot.lane.b32.xlu0 %v1983_v29, %s3588_s8  ;;  %v1913_v48 = vmax.f32 %v1803_v31, 0.0 }
 0x253   :  { %v1305_v37 = vpop.f32.mrf.mxu1  ;;  %v1805_v38 = vpop.f32.mrf.mxu0 }
 0x254   :  { %v4635_v40 = vpack.c.bf16 %v1433_v35, %v1432_v33  ;;  %v1916_v41 = vmax.f32 %v1814_v36, 0.0  ;;  %v1806_v43 = vadd.f32 %v4510_v19, %v1805_v38  ;;  %v1306_v62 = vadd.f32 %v4442_v39, %v1305_v37  ;;  %v4653_v37 = vld [vmem:[%s4991_s6] ss:$0 sm:$0xff] }
 0x255   :  { %v1307_v45 = vpop.f32.mrf.mxu1  ;;  %v3350_v46 = vpop.f32.mrf.mxu0 }
 0x256   :  { %v1986_v49 = vpack.c.bf16 %v1916_v41, %v1915_v34  ;;  %v1914_v0 = vmax.f32 %v1806_v43, 0.0  ;;  %v1827_v55 = vadd.f32 %v3350_v46, %v4510_v19  ;;  %v1434_v14 = vmax.f32 %v1306_v62, 0.0 }
 0x257   :  { %v1308_v1 = vpop.f32.mrf.mxu1  ;;  %v1818_v6 = vpop.f32.mrf.mxu0 }
 0x258   :  { %v1985_v7 = vpack.c.bf16 %v1914_v0, %v1913_v48  ;;  %v1309_v8 = vadd.f32 %v4442_v39, %v1308_v1  ;;  %v1819_v9 = vadd.f32 %v4510_v19, %v1818_v6  ;;  %2075 = vrot.lane.b32.xlu1 %v1986_v49, %s3588_s8  ;;  %v1919_v16 = vmax.f32 %v1827_v55, 0.0 }
 0x259   :  { %v1310_v12 = vpop.f32.mrf.mxu1  ;;  %v3351_v57 = vpop.f32.mrf.mxu0 }
 0x25a   :  { %v1435_v52 = vmax.f32 %v1309_v8, 0.0  ;;  %v1830_v17 = vadd.f32 %v3351_v57, %v4510_v19  ;;  %2073 = vrot.lane.b32.xlu0 %v1985_v7, %s3588_s8  ;;  %v1917_v23 = vmax.f32 %v1819_v9, 0.0 }
 0x25b   :  { %v1313_v18 = vpop.f32.mrf.mxu1  ;;  %v1821_v20 = vpop.f32.mrf.mxu0 }
 0x25c   :  { %v4645_v21 = vpack.c.bf16 %v1435_v52, %v1434_v14  ;;  %v1920_v50 = vmax.f32 %v1830_v17, 0.0  ;;  %v1822_v28 = vadd.f32 %v4510_v19, %v1821_v20  ;;  %v1314_v3 = vadd.f32 %v4442_v39, %v1313_v18 }
 0x25d   :  { %v1315_v29 = vpop.f32.mrf.mxu1  ;;  %v3354_v30 = vpop.f32.mrf.mxu0 }
 0x25e   :  { %v1988_v31 = vpack.c.bf16 %v1920_v50, %v1919_v16  ;;  %v1918_v32 = vmax.f32 %v1822_v28, 0.0  ;;  %v1843_v33 = vadd.f32 %v3354_v30, %v4510_v19  ;;  %v1436_v39 = vmax.f32 %v1314_v3, 0.0 }
 0x25f   :  { %v1316_v34 = vpop.f32.mrf.mxu1  ;;  %v1834_v35 = vpop.f32.mrf.mxu0 }
 0x260   :  { %v1987_v36 = vpack.c.bf16 %v1918_v32, %v1917_v23  ;;  %v1317_v38 = vadd.f32 %v4653_v37, %v1316_v34  ;;  %v1835_v48 = vadd.f32 %v4510_v19, %v1834_v35  ;;  %2079 = vrot.lane.b32.xlu1 %v1988_v31, %s3588_s8  ;;  %v1923_v45 = vmax.f32 %v1843_v33, 0.0 }
 0x261   :  { %v1318_v41 = vpop.f32.mrf.mxu1  ;;  %v3355_v43 = vpop.f32.mrf.mxu0 }
 0x262   :  { %v1437_v46 = vmax.f32 %v1317_v38, 0.0  ;;  %v1846_v49 = vadd.f32 %v3355_v43, %v4510_v19  ;;  %2077 = vrot.lane.b32.xlu0 %v1987_v36, %s3588_s8  ;;  %v1921_v1 = vmax.f32 %v1835_v48, 0.0 }
 0x263   :  { %v1321_v62 = vpop.f32.mrf.mxu1  ;;  %v1837_v0 = vpop.f32.mrf.mxu0 }
 0x264   :  { %v4660_v55 = vpack.c.bf16 %v1437_v46, %v1436_v39  ;;  %v1924_v6 = vmax.f32 %v1846_v49, 0.0  ;;  %v1838_v7 = vadd.f32 %v4510_v19, %v1837_v0  ;;  %v1322_v57 = vadd.f32 %v4653_v37, %v1321_v62 }
 0x265   :  { %v1323_v8 = vpop.f32.mrf.mxu1  ;;  %v3358_v9 = vpop.f32.mrf.mxu0 }
 0x266   :  { %v1990_v12 = vpack.c.bf16 %v1924_v6, %v1923_v45  ;;  %v1922_v14 = vmax.f32 %v1838_v7, 0.0  ;;  %v1859_v16 = vadd.f32 %v3358_v9, %v4510_v19  ;;  %v1438_v29 = vmax.f32 %v1322_v57, 0.0 }
 0x267   :  { %v1324_v52 = vpop.f32.mrf.mxu1  ;;  %v1850_v17 = vpop.f32.mrf.mxu0 }
 0x268   :  { %v1989_v18 = vpack.c.bf16 %v1922_v14, %v1921_v1  ;;  %v1325_v20 = vadd.f32 %v4653_v37, %v1324_v52  ;;  %v1851_v23 = vadd.f32 %v4510_v19, %v1850_v17  ;;  %2083 = vrot.lane.b32.xlu1 %v1990_v12, %s3588_s8  ;;  %v1927_v30 = vmax.f32 %v1859_v16, 0.0 }
 0x269   :  { %v1326_v50 = vpop.f32.mrf.mxu1  ;;  %v3359_v28 = vpop.f32.mrf.mxu0 }
 0x26a   :  { %v1439_v31 = vmax.f32 %v1325_v20, 0.0  ;;  %v1862_v3 = vadd.f32 %v3359_v28, %v4510_v19  ;;  %2081 = vrot.lane.b32.xlu0 %v1989_v18, %s3588_s8  ;;  %v1925_v35 = vmax.f32 %v1851_v23, 0.0 }
 0x26b   :  { %v1329_v32 = vpop.f32.mrf.mxu1  ;;  %v1853_v33 = vpop.f32.mrf.mxu0 }
 0x26c   :  { %v4670_v34 = vpack.c.bf16 %v1439_v31, %v1438_v29  ;;  %v1928_v36 = vmax.f32 %v1862_v3, 0.0  ;;  %v1854_v38 = vadd.f32 %v4510_v19, %v1853_v33  ;;  %v2026_v48 = vpop.permute.xlu0 %2025  ;;  %v1330_v45 = vadd.f32 %v4653_v37, %v1329_v32 }
 0x26d   :  { %v1331_v41 = vpop.f32.mrf.mxu1  ;;  %v2092_v43 = vsel %vm2089_vm3, %v4489_v59, %v2026_v48 }
 0x26e   :  { %v1992_v39 = vpack.c.bf16 %v1928_v36, %v1927_v30  ;;  %v1926_v46 = vmax.f32 %v1854_v38, 0.0  ;;  %3376 = vmatprep.mubr.bf16.mxu1 %v2092_v43  ;;  %v1440_v7 = vmax.f32 %v1330_v45, 0.0 }
 0x26f   :  { %v1332_v49 = vpop.f32.mrf.mxu1 }
 0x270   :  { %v1991_v62 = vpack.c.bf16 %v1926_v46, %v1925_v35  ;;  %v1333_v0 = vadd.f32 %v4653_v37, %v1332_v49  ;;  %2087 = vrot.lane.b32.xlu1 %v1992_v39, %s3588_s8  ;;  %v2028_v1 = vpop.permute.xlu0 %2027 }
 0x271   :  { %v2096_v19 = vsel %vm2089_vm3, %v4503_v15, %v2028_v1  ;;  %v1334_v6 = vpop.f32.mrf.mxu1 }
 0x272   :  { %v1441_v8 = vmax.f32 %v1333_v0, 0.0  ;;  %2085 = vrot.lane.b32.xlu0 %v1991_v62, %s3588_s8  ;;  %3377 = vmatmul.mubr.bf16.vlgmr.msra.gmra.mxu1 %v2096_v19 }
 0x273   :  { %v1337_v59 = vpop.f32.mrf.mxu1 }
 0x274   :  { %v4681_v9 = vpack.c.bf16 %v1441_v8, %v1440_v7  ;;  %v2030_v12 = vpop.permute.xlu1 %2029  ;;  %v1338_v16 = vadd.f32 %v4653_v37, %v1337_v59 }
 0x275   :  { %v1339_v57 = vpop.f32.mrf.mxu1  ;;  %v2100_v14 = vsel %vm2089_vm3, %v4453_v11, %v2030_v12 }
 0x276   :  { %3380 = vmatprep.mubr.bf16.mxu1 %v2100_v14  ;;  %v1442_v23 = vmax.f32 %v1338_v16, 0.0 }
 0x277   :  { %v1340_v52 = vpop.f32.mrf.mxu1 }
 0x278   :  { %v1341_v15 = vadd.f32 %v4653_v37, %v1340_v52  ;;  %v2032_v17 = vpop.permute.xlu1 %2031 }
 0x279   :  { %v2104_v18 = vsel %vm2089_vm3, %v4461_v47, %v2032_v17  ;;  %v1342_v20 = vpop.f32.mrf.mxu1 }
 0x27a   :  { %v1443_v50 = vmax.f32 %v1341_v15, 0.0  ;;  %3381 = vmatmul.mubr.bf16.gmra.mxu1 %v2104_v18 }
 0x27b   :  { %v1345_v28 = vpop.f32.mrf.mxu1 }
 0x27c   :  { %v4689_v29 = vpack.c.bf16 %v1443_v50, %v1442_v23  ;;  %v2034_v30 = vpop.permute.xlu0 %2033  ;;  %v1346_v3 = vadd.f32 %v4653_v37, %v1345_v28  ;;  %v2036_v32 = vpop.permute.xlu1 %2035 }
 0x27d   :  { %v1347_v31 = vpop.f32.mrf.mxu1  ;;  %v2108_v11 = vsel %vm2089_vm3, %v4469_v44, %v2034_v30  ;;  %v2112_v47 = vsel %vm2089_vm3, %v4477_v22, %v2036_v32 }
 0x27e   :  { %3384 = vmatprep.mubr.bf16.mxu1 %v2108_v11  ;;  %v1444_v38 = vmax.f32 %v1346_v3, 0.0 }
 0x27f   :  { %v1348_v33 = vpop.f32.mrf.mxu1 }
 0x280   :  { %v1349_v35 = vadd.f32 %v4653_v37, %v1348_v33 }
 0x281   :  { %v1350_v36 = vpop.f32.mrf.mxu1 }
 0x282   :  { %v1445_v48 = vmax.f32 %v1349_v35, 0.0  ;;  %3385 = vmatmul.mubr.bf16.gmra.mxu1 %v2112_v47  ;;  %v2040_v46 = vpop.permute.xlu1 %2039 }
 0x283   :  { %v1353_v41 = vpop.f32.mrf.mxu1  ;;  %v2120_v22 = vsel %vm2089_vm3, %v4498_v10, %v2040_v46 }
 0x284   :  { %v4697_v43 = vpack.c.bf16 %v1445_v48, %v1444_v38  ;;  %v2038_v39 = vpop.permute.xlu0 %2037  ;;  %v1354_v49 = vadd.f32 %v4653_v37, %v1353_v41 }
 0x285   :  { %v1355_v45 = vpop.f32.mrf.mxu1  ;;  %v2116_v44 = vsel %vm2089_vm3, %v4487_v42, %v2038_v39 }
 0x286   :  { %3388 = vmatprep.mubr.bf16.mxu1 %v2116_v44  ;;  %v1446_v19 = vmax.f32 %v1354_v49, 0.0 }
 0x287   :  { %v1356_v62 = vpop.f32.mrf.mxu1 }
 0x288   :  { %v1357_v0 = vadd.f32 %v4653_v37, %v1356_v62 }
 0x289   :  { %v1358_v1 = vpop.f32.mrf.mxu1 }
 0x28a   :  { %v1447_v6 = vmax.f32 %v1357_v0, 0.0  ;;  %3389 = vmatmul.mubr.bf16.gmra.mxu1 %v2120_v22  ;;  %v2044_v57 = vpop.permute.xlu1 %2043 }
 0x28b   :  { %v1361_v7 = vpop.f32.mrf.mxu1  ;;  %v2128_v10 = vsel %vm2089_vm3, %v4523_v58, %v2044_v57 }
 0x28c   :  { %v4705_v8 = vpack.c.bf16 %v1447_v6, %v1446_v19  ;;  %v2042_v59 = vpop.permute.xlu0 %2041  ;;  %v1362_v14 = vadd.f32 %v4653_v37, %v1361_v7 }
 0x28d   :  { %v1363_v12 = vpop.f32.mrf.mxu1  ;;  %v2124_v42 = vsel %vm2089_vm3, %v4513_v27, %v2042_v59 }
 0x28e   :  { %3392 = vmatprep.mubr.bf16.mxu1 %v2124_v42  ;;  %v1448_v17 = vmax.f32 %v1362_v14, 0.0 }
 0x28f   :  { %v1364_v16 = vpop.f32.mrf.mxu1 }
 0x290   :  { %v1365_v52 = vadd.f32 %v4653_v37, %v1364_v16 }
 0x291   :  { %v1366_v15 = vpop.f32.mrf.mxu1 }
 0x292   :  { %v1449_v18 = vmax.f32 %v1365_v52, 0.0  ;;  %3393 = vmatmul.mubr.bf16.gmra.mxu1 %v2128_v10  ;;  %v2048_v30 = vpop.permute.xlu1 %2047 }
 0x293   :  { %v1369_v20 = vpop.f32.mrf.mxu1  ;;  %v2136_v58 = vsel %vm2089_vm3, %v4545_v54, %v2048_v30 }
 0x294   :  { %v4713_v23 = vpack.c.bf16 %v1449_v18, %v1448_v17  ;;  %v2046_v50 = vpop.permute.xlu0 %2045  ;;  %v1370_v31 = vadd.f32 %v4653_v37, %v1369_v20 }
 0x295   :  { %v1371_v28 = vpop.f32.mrf.mxu1  ;;  %v2132_v27 = vsel %vm2089_vm3, %v4534_v26, %v2046_v50 }
 0x296   :  { %3396 = vmatprep.mubr.bf16.mxu1 %v2132_v27  ;;  %v1450_v33 = vmax.f32 %v1370_v31, 0.0 }
 0x297   :  { %v1372_v11 = vpop.f32.mrf.mxu1 }
 0x298   :  { %v1373_v3 = vadd.f32 %v4653_v37, %v1372_v11 }
 0x299   :  { %v1374_v32 = vpop.f32.mrf.mxu1 }
 0x29a   :  { %v1451_v35 = vmax.f32 %v1373_v3, 0.0  ;;  %3397 = vmatmul.mubr.bf16.gmra.mxu1 %v2136_v58  ;;  %v2052_v41 = vpop.permute.xlu1 %2051 }
 0x29b   :  { %v1377_v47 = vpop.f32.mrf.mxu1  ;;  %v2144_v45 = vsel %vm2089_vm3, %v4565_v53, %v2052_v41 }
 0x29c   :  { %v4721_v36 = vpack.c.bf16 %v1451_v35, %v1450_v33  ;;  %v2050_v38 = vpop.permute.xlu0 %2049 }
 0x29d   :  { %v1379_v48 = vpop.f32.mrf.mxu1  ;;  %v2140_v26 = vsel %vm2089_vm3, %v4555_v24, %v2050_v38 }
 0x29e   :  { %3400 = vmatprep.mubr.bf16.mxu1 %v2140_v26 }
 0x29f   :  { %v1380_v39 = vpop.f32.mrf.mxu1 }
 0x2a0   :  { %v1381_v18 = vadd.f32 %v4653_v37, %v1380_v39 }
 0x2a1   :  { %v1382_v44 = vpop.f32.mrf.mxu1 }
 0x2a2   :  { %3401 = vmatmul.mubr.bf16.gmra.mxu1 %v2144_v45  ;;  %v2056_v0 = vpop.permute.xlu1 %2055  ;;  %v1453_v28 = vmax.f32 %v1381_v18, 0.0 }
 0x2a3   :  { %v1385_v54 = vpop.f32.mrf.mxu1  ;;  %v2152_v24 = vsel %vm2089_vm3, %v4585_v63, %v2056_v0 }
 0x2a4   :  { %v2054_v46 = vpop.permute.xlu0 %2053  ;;  %v1386_v30 = vadd.f32 %v4653_v37, %v1385_v54 }
 0x2a5   :  { %v1387_v49 = vpop.f32.mrf.mxu1  ;;  %v2148_v62 = vsel %vm2089_vm3, %v4575_v25, %v2054_v46 }
 0x2a6   :  { %3404 = vmatprep.mubr.bf16.mxu1 %v2148_v62  ;;  %v1454_v58 = vmax.f32 %v1386_v30, 0.0 }
 0x2a7   :  { %v1388_v22 = vpop.f32.mrf.mxu1 }
 0x2a8   :  { %v1389_v27 = vadd.f32 %v4653_v37, %v1388_v22 }
 0x2a9   :  { %v1390_v1 = vpop.f32.mrf.mxu1 }
 0x2aa   :  { %3405 = vmatmul.mubr.bf16.gmra.mxu1 %v2152_v24  ;;  %v2060_v6 = vpop.permute.xlu1 %2059  ;;  %v1455_v11 = vmax.f32 %v1389_v27, 0.0 }
 0x2ab   :  { %v2160_v7 = vsel %vm2089_vm3, %v4605_v2, %v2060_v6 }
 0x2ac   :  { %v2058_v19 = vpop.permute.xlu0 %2057 }
 0x2ad   :  { %v2156_v53 = vsel %vm2089_vm3, %v4595_v4, %v2058_v19 }
 0x2ae   :  { %3408 = vmatprep.mubr.bf16.mxu1 %v2156_v53 }
 0x2b2   :  { %3409 = vmatmul.mubr.bf16.gmra.mxu1 %v2160_v7  ;;  %v2064_v12 = vpop.permute.xlu1 %2063 }
 0x2b3   :  { %v2168_v63 = vsel %vm2089_vm3, %v4625_v13, %v2064_v12 }
 0x2b4   :  { %v2062_v59 = vpop.permute.xlu0 %2061 }
 0x2b5   :  { %v2164_v25 = vsel %vm2089_vm3, %v4615_v5, %v2062_v59 }
 0x2b6   :  { %3412 = vmatprep.mubr.bf16.mxu1 %v2164_v25 }
 0x2ba   :  { %3413 = vmatmul.mubr.bf16.gmra.mxu1 %v2168_v63  ;;  %v2068_v57 = vpop.permute.xlu1 %2067 }
 0x2bb   :  { %v2176_v2 = vsel %vm2089_vm3, %v4645_v21, %v2068_v57 }
 0x2bc   :  { %v2066_v42 = vpop.permute.xlu0 %2065 }
 0x2bd   :  { %v2172_v4 = vsel %vm2089_vm3, %v4635_v40, %v2066_v42 }
 0x2be   :  { %3416 = vmatprep.mubr.bf16.mxu1 %v2172_v4 }
 0x2c2   :  { %3417 = vmatmul.mubr.bf16.gmra.mxu1 %v2176_v2  ;;  %v2072_v16 = vpop.permute.xlu1 %2071 }
 0x2c3   :  { %v2184_v13 = vsel %vm2089_vm3, %v4670_v34, %v2072_v16 }
 0x2c4   :  { %v2070_v14 = vpop.permute.xlu0 %2069 }
 0x2c5   :  { %v2180_v5 = vsel %vm2089_vm3, %v4660_v55, %v2070_v14 }
 0x2c6   :  { %3420 = vmatprep.mubr.bf16.mxu1 %v2180_v5 }
 0x2ca   :  { %3421 = vmatmul.mubr.bf16.gmra.mxu1 %v2184_v13  ;;  %v2076_v10 = vpop.permute.xlu1 %2075 }
 0x2cb   :  { %v2192_v21 = vsel %vm2089_vm3, %v4689_v29, %v2076_v10 }
 0x2cc   :  { %v2074_v52 = vpop.permute.xlu0 %2073 }
 0x2cd   :  { %v2188_v40 = vsel %vm2089_vm3, %v4681_v9, %v2074_v52  ;;  %v1378_v9 = vadd.f32 %v4653_v37, %v1377_v47  ;;  %v4768_v37 = vld [vmem:[%s4995_s10] ss:$0 sm:$0xff] }
 0x2ce   :  { %3424 = vmatprep.mubr.bf16.mxu1 %v2188_v40 }
 0x2d2   :  { %3425 = vmatmul.mubr.bf16.gmra.mxu1 %v2192_v21  ;;  %v2080_v17 = vpop.permute.xlu1 %2079 }
 0x2d3   :  { %v2200_v34 = vsel %vm2089_vm3, %v4705_v8, %v2080_v17 }
 0x2d4   :  { %v2078_v15 = vpop.permute.xlu0 %2077 }
 0x2d5   :  { %v2196_v55 = vsel %vm2089_vm3, %v4697_v43, %v2078_v15  ;;  %v1452_v43 = vmax.f32 %v1378_v9, 0.0 }
 0x2d6   :  { %3428 = vmatprep.mubr.bf16.mxu1 %v2196_v55 }
 0x2d7   :  { %v1959_v31 = vpack.c.bf16 %v1453_v28, %v1452_v43 }
 0x2da   :  { %3429 = vmatmul.mubr.bf16.gmra.mxu1 %v2200_v34  ;;  %v2084_v29 = vpop.permute.xlu1 %2083 }
 0x2db   :  { %v2208_v8 = vsel %vm2089_vm3, %v4721_v36, %v2084_v29  ;;  %v4773_v36 = vld [vmem:[%s4996_s11] sm:$0x1] }
 0x2dc   :  { %v2082_v20 = vpop.permute.xlu0 %2081  ;;  %3272 = vmatprep.mubr.msk.bf16.mxu0 %vm2089_vm3, %v4773_v36 }
 0x2dd   :  { %v2204_v50 = vsel %vm2089_vm3, %v4713_v23, %v2082_v20  ;;  %v1960_v23 = vpack.c.bf16 %v1455_v11, %v1454_v58 }
 0x2de   :  { %3432 = vmatprep.mubr.bf16.mxu1 %v2204_v50 }
 0x2e2   :  { %3433 = vmatmul.mubr.bf16.gmra.mxu1 %v2208_v8  ;;  %v2088_v33 = vpop.permute.xlu1 %2087 }
 0x2e3   :  { %v2216_v35 = vsel %vm2089_vm3, %v1960_v23, %v2088_v33 }
 0x2e4   :  { %v2086_v3 = vpop.permute.xlu0 %2085 }
 0x2e5   :  { %v2212_v32 = vsel %vm2089_vm3, %v1959_v31, %v2086_v3 }
 0x2e6   :  { %3436 = vmatprep.mubr.bf16.mxu1 %v2212_v32 }
 0x2ea   :  { %3437 = vmatmul.mubr.bf16.gmra.mxu1 %v2216_v35 }
 0x2eb   :  { %3290 = vmatprep.mubr.msk.bf16.mxu1 %vm2089_vm3, %v4773_v36 }
 0x332   :  { %v3378_v47 = vpop.f32.mrf.mxu1 }
 0x333   :  { %v2332_v48 = vadd.f32 %v3378_v47, %v4768_v37 }
 0x334   :  { %v2323_v38 = vpop.f32.mrf.mxu1 }
 0x335   :  { %v2324_v41 = vadd.f32 %v4768_v37, %v2323_v38  ;;  %v2580_v44 = vmax.f32 %v2332_v48, 0.0 }
 0x336   :  { %v3379_v26 = vpop.f32.mrf.mxu1 }
 0x337   :  { %v2335_v39 = vadd.f32 %v3379_v26, %v4768_v37  ;;  %v2578_v62 = vmax.f32 %v2324_v41, 0.0 }
 0x338   :  { %v2326_v45 = vpop.f32.mrf.mxu1 }
 0x339   :  { %v2581_v54 = vmax.f32 %v2335_v39, 0.0  ;;  %v2327_v46 = vadd.f32 %v4768_v37, %v2326_v45 }
 0x33a   :  { %v3382_v49 = vpop.f32.mrf.mxu1 }
 0x33b   :  { %v4783_v0 = vpack.c.bf16 %v2581_v54, %v2580_v44  ;;  %v2579_v22 = vmax.f32 %v2327_v46, 0.0  ;;  %v2348_v19 = vadd.f32 %v3382_v49, %v4768_v37 }
 0x33c   :  { %v2339_v24 = vpop.f32.mrf.mxu1 }
 0x33d   :  { %v4785_v1 = vpack.c.bf16 %v2579_v22, %v2578_v62  ;;  %v2340_v6 = vadd.f32 %v4768_v37, %v2339_v24  ;;  %v2584_v25 = vmax.f32 %v2348_v19, 0.0 }
 0x33e   :  { %v3383_v53 = vpop.f32.mrf.mxu1 }
 0x33f   :  { %v2351_v7 = vadd.f32 %v3383_v53, %v4768_v37  ;;  %v2582_v4 = vmax.f32 %v2340_v6, 0.0 }
 0x340   :  { %v2342_v59 = vpop.f32.mrf.mxu1 }
 0x341   :  { %v2585_v12 = vmax.f32 %v2351_v7, 0.0  ;;  %v2343_v63 = vadd.f32 %v4768_v37, %v2342_v59 }
 0x342   :  { %v4791_v42 = vpop.f32.mrf.mxu1 }
 0x343   :  { %v4793_v57 = vpack.c.bf16 %v2585_v12, %v2584_v25  ;;  %v2583_v2 = vmax.f32 %v2343_v63, 0.0 }
 0x344   :  { %v4795_v14 = vpop.f32.mrf.mxu1 }
 0x345   :  { %v4797_v5 = vpack.c.bf16 %v2583_v2, %v2582_v4 }
 0x346   :  { %v4799_v16 = vpop.f32.mrf.mxu1 }
 0x348   :  { %v4801_v13 = vpop.f32.mrf.mxu1 }
 0x34a   :  { %v3390_v52 = vpop.f32.mrf.mxu1 }
 0x34b   :  { %v2380_v48 = vadd.f32 %v3390_v52, %v4768_v37 }
 0x34c   :  { %v2371_v40 = vpop.f32.mrf.mxu1 }
 0x34d   :  { %v2592_v44 = vmax.f32 %v2380_v48, 0.0  ;;  %v2372_v6 = vadd.f32 %v4768_v37, %v2371_v40 }
 0x34e   :  { %v3391_v10 = vpop.f32.mrf.mxu1 }
 0x34f   :  { %v2383_v47 = vadd.f32 %v3391_v10, %v4768_v37 }
 0x350   :  { %v2374_v21 = vpop.f32.mrf.mxu1 }
 0x351   :  { %v2593_v41 = vmax.f32 %v2383_v47, 0.0  ;;  %v2375_v49 = vadd.f32 %v4768_v37, %v2374_v21 }
 0x352   :  { %v3394_v15 = vpop.f32.mrf.mxu1 }
 0x353   :  { %v2396_v17 = vadd.f32 %v3394_v15, %v4768_v37  ;;  %v2650_v22 = vpack.c.bf16 %v2593_v41, %v2592_v44  ;;  %v2591_v63 = vmax.f32 %v2375_v49, 0.0  ;;  %v2675_v15 = vld [vmem:[#allocation2] sm:$0x1] }
 0x354   :  { %v2387_v55 = vpop.f32.mrf.mxu1  ;;  %2678 = vperm.xlu0 %3495, %v2675_v15  }
 0x355   :  { %v2388_v18 = vadd.f32 %v4768_v37, %v2387_v55  ;;  %v2596_v50 = vmax.f32 %v2396_v17, 0.0  ;;  %v2710_v21 = vsel %vm2089_vm3, %v2650_v22, 0  ;;  %v2590_v55 = vmax.f32 %v2372_v6, 0.0 }
 0x356   :  { %v3395_v34 = vpop.f32.mrf.mxu1 }
 0x357   :  { %v2399_v20 = vadd.f32 %v3395_v34, %v4768_v37  ;;  %v2594_v43 = vmax.f32 %v2388_v18, 0.0 }
 0x358   :  { %v2390_v9 = vpop.f32.mrf.mxu1 }
 0x359   :  { %v2597_v29 = vmax.f32 %v2399_v20, 0.0  ;;  %v2391_v28 = vadd.f32 %v4768_v37, %v2390_v9  ;;  %v2367_v20 = vadd.f32 %v4799_v16, %v4768_v37  ;;  %v2649_v9 = vpack.c.bf16 %v2591_v63, %v2590_v55 }
 0x35a   :  { %v4807_v27 = vpop.f32.mrf.mxu1 }
 0x35b   :  { %v4809_v30 = vpack.c.bf16 %v2597_v29, %v2596_v50  ;;  %v2595_v8 = vmax.f32 %v2391_v28, 0.0  ;;  %v2589_v41 = vmax.f32 %v2367_v20, 0.0  ;;  %v2707_v16 = vsel %vm2089_vm3, %v2649_v9, 0 }
 0x35c   :  { %v4811_v31 = vpop.f32.mrf.mxu1 }
 0x35d   :  { %v4813_v11 = vpack.c.bf16 %v2595_v8, %v2594_v43 }
 0x35e   :  { %v4815_v3 = vpop.f32.mrf.mxu1 }
 0x360   :  { %v4817_v58 = vpop.f32.mrf.mxu1 }
 0x362   :  { %v3402_v32 = vpop.f32.mrf.mxu1 }
 0x363   :  { %v2428_v40 = vadd.f32 %v3402_v32, %v4768_v37 }
 0x364   :  { %v4819_v33 = vpop.f32.mrf.mxu1 }
 0x365   :  { %v2604_v47 = vmax.f32 %v2428_v40, 0.0 }
 0x366   :  { %v3403_v23 = vpop.f32.mrf.mxu1 }
 0x367   :  { %v2431_v2 = vadd.f32 %v3403_v23, %v4768_v37  ;;  %v2364_v23 = vadd.f32 %v4791_v42, %v4768_v37  ;;  %v2420_v42 = vadd.f32 %v4768_v37, %v4819_v33 }
 0x368   :  { %v2422_v35 = vpop.f32.mrf.mxu1 }
 0x369   :  { %v2605_v29 = vmax.f32 %v2431_v2, 0.0  ;;  %v2423_v44 = vadd.f32 %v4768_v37, %v2422_v35  ;;  %v2588_v49 = vmax.f32 %v2364_v23, 0.0  ;;  %v2359_v35 = vadd.f32 %v4768_v37, %v4801_v13 }
 0x36a   :  { %v3406_v38 = vpop.f32.mrf.mxu1  ;;  %v2602_v63 = vmax.f32 %v2420_v42, 0.0  ;;  %v2415_v13 = vadd.f32 %v4815_v3, %v4768_v37 }
 0x36b   :  { %v2444_v39 = vadd.f32 %v3406_v38, %v4768_v37  ;;  %v2603_v6 = vmax.f32 %v2423_v44, 0.0 }
 0x36c   :  { %v2435_v26 = vpop.f32.mrf.mxu1  ;;  %v2601_v9 = vmax.f32 %v2415_v13, 0.0 }
 0x36d   :  { %v2436_v54 = vadd.f32 %v4768_v37, %v2435_v26  ;;  %v2608_v24 = vmax.f32 %v2444_v39, 0.0  ;;  %v2655_v15 = vpack.c.bf16 %v2603_v6, %v2602_v63  ;;  %v2695_v6 = vsel %vm2089_vm3, %v4797_v5, 0 }
 0x36e   :  { %v3407_v45 = vpop.f32.mrf.mxu1  ;;  %v2692_v63 = vsel %vm2089_vm3, %v4783_v0, 0 }
 0x36f   :  { %v2447_v46 = vadd.f32 %v3407_v45, %v4768_v37  ;;  %v2606_v59 = vmax.f32 %v2436_v54, 0.0  ;;  %v2656_v45 = vpack.c.bf16 %v2605_v29, %v2604_v47 }
 0x370   :  { %v2438_v62 = vpop.f32.mrf.mxu1 }
 0x371   :  { %v2609_v19 = vmax.f32 %v2447_v46, 0.0  ;;  %v2439_v53 = vadd.f32 %v4768_v37, %v2438_v62 }
 0x372   :  { %v3410_v7 = vpop.f32.mrf.mxu1 }
 0x373   :  { %v2658_v25 = vpack.c.bf16 %v2609_v19, %v2608_v24  ;;  %v2607_v12 = vmax.f32 %v2439_v53, 0.0  ;;  %v2460_v10 = vadd.f32 %v3410_v7, %v4768_v37  ;;  %v2648_v19 = vpack.c.bf16 %v2589_v41, %v2588_v49 }
 0x374   :  { %v2451_v4 = vpop.f32.mrf.mxu1 }
 0x375   :  { %v2657_v52 = vpack.c.bf16 %v2607_v12, %v2606_v59  ;;  %3473 = vmatprep.subr.msk.bf16.mxu0 %vm2089_vm3, %v2658_v25  ;;  %v2452_v34 = vadd.f32 %v4768_v37, %v2451_v4  ;;  %v2612_v28 = vmax.f32 %v2460_v10, 0.0  ;;  %v2356_v12 = vadd.f32 %v4768_v37, %v4795_v14 }
 0x376   :  { %v3411_v17 = vpop.f32.mrf.mxu1  ;;  %3257 = vmatpush3.bf16.xpose.msra.mxu0 %v2710_v21  ;;  %v2587_v10 = vmax.f32 %v2359_v35, 0.0 }
 0x377   :  { %v2463_v18 = vadd.f32 %v3411_v17, %v4768_v37  ;;  %3474 = vmatprep.subr.msk.bf16.mxu0 %vm2089_vm3, %v2657_v52  ;;  %v2610_v38 = vmax.f32 %v2452_v34, 0.0  ;;  %v2704_v17 = vsel %vm2089_vm3, %v2648_v19, 0  ;;  %v2586_v14 = vmax.f32 %v2356_v12, 0.0 }
 0x378   :  { %v2454_v50 = vpop.f32.mrf.mxu1  ;;  %v2412_v34 = vadd.f32 %v4807_v27, %v4768_v37  ;;  %v2404_v27 = vadd.f32 %v4768_v37, %v4811_v31 }
 0x379   :  { %v2613_v43 = vmax.f32 %v2463_v18, 0.0  ;;  %v2455_v8 = vadd.f32 %v4768_v37, %v2454_v50  ;;  %v2647_v20 = vpack.c.bf16 %v2587_v10, %v2586_v14  ;;  %v2689_v14 = vsel %vm2089_vm3, %v4785_v1, 0 }
 0x37a   :  { %v3414_v32 = vpop.f32.mrf.mxu1  ;;  %v2600_v3 = vmax.f32 %v2412_v34, 0.0 }
 0x37b   :  { %v4842_v48 = vpack.c.bf16 %v2613_v43, %v2612_v28  ;;  %v2611_v26 = vmax.f32 %v2455_v8, 0.0  ;;  %v2476_v46 = vadd.f32 %v3414_v32, %v4768_v37  ;;  %v2407_v43 = vadd.f32 %v4768_v37, %v4817_v58 }
 0x37c   :  { %v2467_v39 = vpop.f32.mrf.mxu1  ;;  %v2654_v28 = vpack.c.bf16 %v2601_v9, %v2600_v3  ;;  %v2701_v8 = vsel %vm2089_vm3, %v2647_v20, 0  ;;  %v2698_v58 = vsel %vm2089_vm3, %v4793_v57, 0 }
 0x37d   :  { %v4846_v54 = vpack.c.bf16 %v2611_v26, %v2610_v38  ;;  %v2468_v22 = vadd.f32 %v4768_v37, %v2467_v39  ;;  %v2616_v7 = vmax.f32 %v2476_v46, 0.0  ;;  %v2599_v47 = vmax.f32 %v2407_v43, 0.0 }
 0x37e   :  { %v3415_v62 = vpop.f32.mrf.mxu1  ;;  %3259 = vmatpush3.bf16.xpose.msra.mxu0 %v2707_v16  ;;  %v2598_v26 = vmax.f32 %v2404_v27, 0.0 }
 0x37f   :  { %v2479_v24 = vadd.f32 %v3415_v62, %v4768_v37  ;;  %3475 = vmatprep.subr.msk.bf16.mxu0 %vm2089_vm3, %v2656_v45  ;;  %v2614_v4 = vmax.f32 %v2468_v22, 0.0 }
 0x380   :  { %v2470_v53 = vpop.f32.mrf.mxu1  ;;  %v2653_v39 = vpack.c.bf16 %v2599_v47, %v2598_v26 }
 0x381   :  { %v2617_v59 = vmax.f32 %v2479_v24, 0.0  ;;  %v2471_v25 = vadd.f32 %v4768_v37, %v2470_v53 }
 0x382   :  { %v4859_v33 = vpop.f32.mrf.mxu1 }
 0x383   :  { %v4861_v2 = vpack.c.bf16 %v2617_v59, %v2616_v7  ;;  %v2615_v52 = vmax.f32 %v2471_v25, 0.0 }
 0x384   :  { %v4863_v21 = vpop.f32.mrf.mxu1 }
 0x385   :  { %v4867_v55 = vpack.c.bf16 %v2615_v52, %v2614_v4 }
 0x386   :  { %v4870_v40 = vpop.f32.mrf.mxu1  ;;  %3261 = vmatpush3.bf16.xpose.msra.mxu0 %v2704_v17 }
 0x387   :  { %3476 = vmatprep.subr.msk.bf16.mxu0 %vm2089_vm3, %v2655_v15 }
 0x388   :  { %v4875_v18 = vpop.f32.mrf.mxu1 }
 0x38a   :  { %v3422_v50 = vpop.f32.mrf.mxu1 }
 0x38b   :  { %v2508_v13 = vadd.f32 %v3422_v50, %v4768_v37 }
 0x38c   :  { %v2499_v29 = vpop.f32.mrf.mxu1 }
 0x38d   :  { %v2624_v0 = vmax.f32 %v2508_v13, 0.0 }
 0x38e   :  { %v3423_v23 = vpop.f32.mrf.mxu1  ;;  %3263 = vmatpush3.bf16.xpose.msra.mxu0 %v2701_v8 }
 0x38f   :  { %3477 = vmatprep.subr.msk.bf16.mxu0 %vm2089_vm3, %v2654_v28  ;;  %v2511_v5 = vadd.f32 %v3423_v23, %v4768_v37  ;;  %v2500_v23 = vadd.f32 %v4768_v37, %v2499_v29  ;;  %v2495_v29 = vadd.f32 %v4870_v40, %v4768_v37  ;;  %v2487_v40 = vadd.f32 %v4768_v37, %v4875_v18 }
 0x390   :  { %v2502_v32 = vpop.f32.mrf.mxu1 }
 0x391   :  { %v2503_v9 = vadd.f32 %v4768_v37, %v2502_v32  ;;  %v2622_v32 = vmax.f32 %v2500_v23, 0.0 }
 0x392   :  { %v3426_v38 = vpop.f32.mrf.mxu1 }
 0x393   :  { %v2524_v16 = vadd.f32 %v3426_v38, %v4768_v37  ;;  %v2623_v38 = vmax.f32 %v2503_v9, 0.0 }
 0x394   :  { %v2515_v41 = vpop.f32.mrf.mxu1 }
 0x395   :  { %v2516_v44 = vadd.f32 %v4768_v37, %v2515_v41  ;;  %v2628_v49 = vmax.f32 %v2524_v16, 0.0 }
 0x396   :  { %v3427_v45 = vpop.f32.mrf.mxu1  ;;  %3265 = vmatpush3.bf16.xpose.msra.mxu0 %v2698_v58  ;;  %v2665_v58 = vpack.c.bf16 %v2623_v38, %v2622_v32  ;;  %v2924_v38 = vld [vmem:[%s4987_s2] sm:$0xf] }
 0x397   :  { %v2527_v46 = vadd.f32 %v3427_v45, %v4768_v37  ;;  %3478 = vmatprep.subr.msk.bf16.mxu0 %vm2089_vm3, %v2653_v39  ;;  %v2626_v24 = vmax.f32 %v2516_v44, 0.0  ;;  %v2492_v44 = vadd.f32 %v4859_v33, %v4768_v37  ;;  %v2484_v33 = vadd.f32 %v4768_v37, %v4863_v21 }
 0x398   :  { %v2518_v31 = vpop.f32.mrf.mxu1  ;;  %v2952_v32 = vrot.slane %v2924_v38, %v262_v61 }
 0x399   :  { %v2629_v62 = vmax.f32 %v2527_v46, 0.0  ;;  %v2519_v42 = vadd.f32 %v4768_v37, %v2518_v31  ;;  %v2621_v31 = vmax.f32 %v2495_v29, 0.0  ;;  %v2618_v13 = vmax.f32 %v2484_v33, 0.0 }
 0x39a   :  { %v4890_v22 = vpop.f32.mrf.mxu1  ;;  %v2926_v29 = vand.u32 127, %v256_v51 }
 0x39b   :  { %v4892_v19 = vpack.c.bf16 %v2629_v62, %v2628_v49  ;;  %v2627_v35 = vmax.f32 %v2519_v42, 0.0  ;;  %v2755_v42 = vsel %vm2089_vm3, %v2665_v58, 0 }
 0x39c   :  { %v4894_v57 = vpop.f32.mrf.mxu1 }
 0x39d   :  { %v4896_v53 = vpack.c.bf16 %v2627_v35, %v2626_v24  ;;  %v2620_v24 = vmax.f32 %v2492_v44, 0.0 }
 0x39e   :  { %v3431_v7 = vpop.f32.mrf.mxu1  ;;  %3267 = vmatpush3.bf16.xpose.msra.mxu0 %v2695_v6 }
 0x39f   :  { %3479 = vmatprep.subr.msk.bf16.mxu0 %vm2089_vm3, %v4809_v30  ;;  %v2625_v30 = vmax.f32 %v2511_v5, 0.0  ;;  %v2664_v6 = vpack.c.bf16 %v2621_v31, %v2620_v24 }
 0x3a0   :  { %v4902_v59 = vpop.f32.mrf.mxu1 }
 0x3a1   :  { %v2666_v28 = vpack.c.bf16 %v2625_v30, %v2624_v0  ;;  %v2535_v21 = vadd.f32 %v4768_v37, %v4902_v59  ;;  %v2743_v59 = vsel %vm2089_vm3, %v4867_v55, 0 }
 0x3a2   :  { %v3434_v25 = vpop.f32.mrf.mxu1 }
 0x3a3   :  { %v2758_v39 = vsel %vm2089_vm3, %v2666_v28, 0  ;;  %v2556_v16 = vadd.f32 %v3434_v25, %v4768_v37 }
 0x3a4   :  { %v2547_v12 = vpop.f32.mrf.mxu1 }
 0x3a5   :  { %v2636_v46 = vmax.f32 %v2556_v16, 0.0  ;;  %v2548_v35 = vadd.f32 %v4768_v37, %v2547_v12  ;;  %v2540_v12 = vadd.f32 %v4890_v22, %v4768_v37 }
 0x3a6   :  { %v3435_v4 = vpop.f32.mrf.mxu1  ;;  %3269 = vmatpush3.bf16.xpose.msra.mxu0 %v2692_v63 }
 0x3a7   :  { %3480 = vmatprep.subr.msk.bf16.mxu0 %vm2089_vm3, %v4813_v11  ;;  %v2559_v26 = vadd.f32 %v3435_v4, %v4768_v37  ;;  %v2634_v63 = vmax.f32 %v2548_v35, 0.0  ;;  %v2619_v4 = vmax.f32 %v2487_v40, 0.0  ;;  %v2632_v30 = vmax.f32 %v2540_v12, 0.0 }
 0x3a8   :  { %v2550_v52 = vpop.f32.mrf.mxu1 }
 0x3a9   :  { %v2637_v45 = vmax.f32 %v2559_v26, 0.0  ;;  %v2551_v62 = vadd.f32 %v4768_v37, %v2550_v52  ;;  %v2543_v52 = vadd.f32 %v3431_v7, %v4768_v37  ;;  %v2532_v7 = vadd.f32 %v4768_v37, %v4894_v57 }
 0x3aa   :  { %v3438_v10 = vpop.f32.mrf.mxu1 }
 0x3ab   :  { %v2572_v17 = vadd.f32 %v3438_v10, %v4768_v37  ;;  %v2672_v49 = vpack.c.bf16 %v2637_v45, %v2636_v46  ;;  %v2635_v25 = vmax.f32 %v2551_v62, 0.0  ;;  %v2752_v10 = vsel %vm2089_vm3, %v2664_v6, 0 }
 0x3ac   :  { %v2563_v15 = vpop.f32.mrf.mxu1  ;;  %v2633_v18 = vmax.f32 %v2543_v52, 0.0  ;;  %v2630_v0 = vmax.f32 %v2532_v7, 0.0  ;;  %v2927_v6 = vadd.s32 128, %v2926_v29 }
 0x3ad   :  { %v2564_v20 = vadd.f32 %v4768_v37, %v2563_v15  ;;  %v2640_v43 = vmax.f32 %v2572_v17, 0.0  ;;  %v2671_v5 = vpack.c.bf16 %v2635_v25, %v2634_v63  ;;  %v2663_v15 = vpack.c.bf16 %v2619_v4, %v2618_v13 }
 0x3ae   :  { %v3439_v34 = vpop.f32.mrf.mxu1  ;;  %3271 = vmatpush3.bf16.xpose.msra.mxu0 %v2689_v14  ;;  %v2670_v17 = vpack.c.bf16 %v2633_v18, %v2632_v30  ;;  %vm2937_vm6 = vcmp.lt.s32.totalorder %v2927_v6, 200 }
 0x3af   :  { %v2575_v11 = vadd.f32 %v3439_v34, %v4768_v37  ;;  %v2638_v27 = vmax.f32 %v2564_v20, 0.0  ;;  %v2749_v14 = vsel %vm2089_vm3, %v2663_v15, 0  ;;  %v2631_v34 = vmax.f32 %v2535_v21, 0.0 }
 0x3b0   :  { %v2566_v3 = vpop.f32.mrf.mxu1  ;;  %v2746_v20 = vsel %vm2089_vm3, %v4861_v2, 0  ;;  %v2737_v2 = vsel %vm2089_vm3, %v4846_v54, 0 }
 0x3b1   :  { %v2641_v50 = vmax.f32 %v2575_v11, 0.0  ;;  %v2567_v8 = vadd.f32 %v4768_v37, %v2566_v3  ;;  %v2669_v22 = vpack.c.bf16 %v2631_v34, %v2630_v0  ;;  %v2740_v37 = vsel %vm2089_vm3, %v4842_v48, 0 }
 0x3b3   :  { %v2674_v47 = vpack.c.bf16 %v2641_v50, %v2640_v43  ;;  %v2639_v1 = vmax.f32 %v2567_v8, 0.0 }
 0x3b5   :  { %v2673_v41 = vpack.c.bf16 %v2639_v1, %v2638_v27  ;;  %3481 = vmatprep.subr.msk.bf16.mxu1 %vm2089_vm3, %v2674_v47  ;;  %3273 = vmatmul.mubr.msk.bf16.vlgmr.msra.gmra.mxu0 %vm2089_vm3, %v4773_v36 }
 0x3b6   :  { %3275 = vmatpush3.bf16.xpose.msra.mxu1 %v2758_v39 }
 0x3b7   :  { %3482 = vmatprep.subr.msk.bf16.mxu1 %vm2089_vm3, %v2673_v41  ;;  %v2948_v41 = vrot.slane %v2924_v38, %v4026_v60 }
 0x3be   :  { %3277 = vmatpush3.bf16.xpose.msra.mxu1 %v2755_v42 }
 0x3bf   :  { %3483 = vmatprep.subr.msk.bf16.mxu1 %vm2089_vm3, %v2672_v49 }
 0x3c6   :  { %3279 = vmatpush3.bf16.xpose.msra.mxu1 %v2752_v10 }
 0x3c7   :  { %3484 = vmatprep.subr.msk.bf16.mxu1 %vm2089_vm3, %v2671_v5 }
 0x3ce   :  { %3281 = vmatpush3.bf16.xpose.msra.mxu1 %v2749_v14 }
 0x3cf   :  { %3485 = vmatprep.subr.msk.bf16.mxu1 %vm2089_vm3, %v2670_v17  ;;  %v2679_v57 = vpop.permute.xlu0 %2678 }
 0x3d0   :  { %v4964_v55 = vrot.slane %v2679_v57, %v4026_v60 }
 0x3d6   :  { %3283 = vmatpush3.bf16.xpose.msra.mxu1 %v2746_v20 }
 0x3d7   :  { %3486 = vmatprep.subr.msk.bf16.mxu1 %vm2089_vm3, %v2669_v22 }
 0x3de   :  { %3285 = vmatpush3.bf16.xpose.msra.mxu1 %v2743_v59 }
 0x3df   :  { %3487 = vmatprep.subr.msk.bf16.mxu1 %vm2089_vm3, %v4892_v19 }
 0x3e6   :  { %3287 = vmatpush3.bf16.xpose.msra.mxu1 %v2740_v37 }
 0x3e7   :  { %3488 = vmatprep.subr.msk.bf16.mxu1 %vm2089_vm3, %v4896_v53 }
 0x3ee   :  { %3289 = vmatpush3.bf16.xpose.msra.mxu1 %v2737_v2 }
 0x3f5   :  { %3291 = vmatmul.mubr.msk.bf16.vlgmr.msra.gmra.mxu1 %vm2089_vm3, %v4773_v36 }
 0x475   :  { %v2818_v11 = vpop.f32.mrf.mxu0 }
 0x476   :  { %v2819_v19 = vadd.f32 %v2818_v11, %v4964_v55 }
 0x477   :  { %v2820_v9 = vpop.f32.mrf.mxu0 }
 0x478   :  { %v2973_v48 = vand.u32 2147483647, %v2819_v19  ;;  %v2821_v3 = vadd.f32 %v2820_v9, %v4964_v55  ;;  %v2940_v46 = vmax.f32 %v2819_v19, 0.0  ;;  %v2965_v31 = vmul.f32 %v2948_v41, %v2819_v19 }
 0x479   :  { %v2822_v28 = vpop.f32.mrf.mxu0  ;;  %v3178_v30 = vmul.f32 -1.442695, %v2819_v19 }
 0x47a   :  { %v2977_v53 = vsub.f32 0.0, %v2973_v48  ;;  %v2974_v43 = vand.u32 2147483647, %v2821_v3  ;;  %v2941_v44 = vmax.f32 %v2821_v3, 0.0  ;;  %v2966_v62 = vmul.f32 %v2952_v32, %v2821_v3 }
 0x47b   :  { %v2823_v50 = vpop.f32.mrf.mxu0  ;;  %v2969_v25 = vsub.f32 %v2940_v46, %v2965_v31  ;;  %v3179_v18 = vmul.f32 -1.442695, %v2821_v3  ;;  %v3589_v3 = vmov 1966171168  }
 0x47c   :  { %v2981_v54 = vmul.f32 1.442695, %v2977_v53  ;;  %v2978_v8 = vsub.f32 0.0, %v2974_v43  ;;  %v2970_v63 = vsub.f32 %v2941_v44, %v2966_v62  ;;  %v2897_v28 = vunpack.c.l.s4 %v3589_v3 }
 0x47e   :  { %3540 = vpow2.f32 %v2981_v54  ;;  %v2983_v23 = vmul.f32 1.442695, %v2978_v8 }
 0x480   :  { %3542 = vpow2.f32 %v2983_v23 }
 0x48b   :  { %v3541_v36 = vpop.eup %3540 }
 0x48c   :  { %v2989_v27 = vadd.f32 1.0, %v3541_v36  ;;  %v2992_v26 = vmul.f32 -0.5, %v3541_v36  ;;  %v2995_v58 = vand.u32 2147483647, %v3541_v36 }
 0x48d   :  { %v3543_v47 = vpop.eup %3542 }
 0x48e   :  { %3544 = vlog2.f32 %v2989_v27  ;;  %v2998_v1 = vadd.f32 1.0, %v3543_v47  ;;  %v3001_v39 = vmul.f32 -0.5, %v3543_v47  ;;  %v2993_v16 = vadd.f32 1.0, %v2992_v26 }
 0x48f   :  { %v3004_v35 = vand.u32 2147483647, %v3543_v47  ;;  %vm2996_vm4 = vcmp.lt.f32.partialorder %v2995_v58, 0.0004427343 }
 0x490   :  { %3546 = vlog2.f32 %v2998_v1  ;;  %v3002_v49 = vadd.f32 1.0, %v3001_v39  ;;  %v2994_v24 = vmul.f32 %v3541_v36, %v2993_v16 }
 0x491   :  { %vm3005_vm5 = vcmp.lt.f32.partialorder %v3004_v35, 0.0004427343  ;;  %3548 = vpow2.f32 %v3179_v18 }
 0x492   :  { %v3003_v61 = vmul.f32 %v3543_v47, %v3002_v49  ;;  %3550 = vpow2.f32 %v3178_v30 }
 0x49b   :  { %v3545_v45 = vpop.eup %3544 }
 0x49c   :  { %v2991_v42 = vmul.f32 0.6931472, %v3545_v45 }
 0x49d   :  { %v3547_v60 = vpop.eup %3546 }
 0x49e   :  { %v2997_v40 = vsel %vm2996_vm4, %v2994_v24, %v2991_v42  ;;  %v3000_v33 = vmul.f32 0.6931472, %v3547_v60  ;;  %v3549_v59 = vpop.eup %3548 }
 0x49f   :  { %v3025_v52 = vadd.f32 %v2997_v40, %v2969_v25  ;;  %v3551_v37 = vpop.eup %3550  ;;  %v2879_v2 = vadd.f32 1.0, %v3549_v59 }
 0x4a0   :  { %v3006_v4 = vsel %vm3005_vm5, %v3003_v61, %v3000_v33  ;;  %v2878_v57 = vadd.f32 1.0, %v3551_v37 }
 0x4a1   :  { %v3026_v5 = vadd.f32 %v3006_v4, %v2970_v63  ;;  %v3034_v13 = vsel %vm3033_vm7, %v3025_v52, 0.0 }
 0x4a3   :  { %v3030_v10 = vsel %vm2937_vm6, %v3026_v5, 0.0 }
 0x4a4   :  { %v3035_v12 = vsel %vm3033_vm7, %v3030_v10, 0.0 }
 0x4a5   :  { %v3036_v15 = vadd.f32 %v3035_v12, %v3034_v13 }
 0x4a7   :  { %3041 = vadd.xlane.f32.xlu1 %v3036_v15 }
 0x4b5   :  { %v2859_v17 = vpop.f32.mrf.mxu1 }
 0x4b6   :  { %v2860_v21 = vadd.f32 %v2859_v17, %v4964_v55 }
 0x4b7   :  { %v2861_v14 = vpop.f32.mrf.mxu1 }
 0x4b8   :  { %v3180_v7 = vmul.f32 -1.442695, %v2860_v21  ;;  %v2862_v34 = vadd.f32 %v2861_v14, %v4964_v55  ;;  %v2898_v55 = vunpack.c.0.s8 %v2897_v28 }
 0x4b9   :  { %v2863_v0 = vpop.f32.mrf.mxu1 }
 0x4ba   :  { %3552 = vpow2.f32 %v3180_v7  ;;  %v3181_v22 = vmul.f32 -1.442695, %v2862_v34  ;;  %v2901_v8 = vsub.s32 %v2898_v55, %v4019_v56 }
 0x4bb   :  { %v2864_v20 = vpop.f32.mrf.mxu1 }
 0x4bc   :  { %3554 = vpow2.f32 %v3181_v22 }
 0x4bd   :  { %3556 = vrcp.f32 %v2879_v2 }
 0x4be   :  { %3558 = vrcp.f32 %v2878_v57 }
 0x4c7   :  { %v3553_v11 = vpop.eup %3552 }
 0x4c8   :  { %v2880_v19 = vadd.f32 1.0, %v3553_v11 }
 0x4c9   :  { %v3555_v9 = vpop.eup %3554 }
 0x4ca   :  { %v2881_v48 = vadd.f32 1.0, %v3555_v9  ;;  %3560 = vrcp.f32 %v2880_v19  ;;  %v3557_v53 = vpop.eup %3556 }
 0x4cb   :  { %v3559_v43 = vpop.eup %3558 }
 0x4cc   :  { %3562 = vrcp.f32 %v2881_v48  ;;  %v2894_v54 = vcombine.low %v3559_v43, %v3557_v53 }
 0x4ce   :  { %v2902_v27 = vrot.slane %v2894_v54, %v2901_v8 }
 0x4d7   :  { %v3561_v50 = vpop.eup %3560 }
 0x4d9   :  { %v3563_v23 = vpop.eup %3562 }
 0x4da   :  { %v2895_v36 = vcombine.low %v3561_v50, %v3563_v23 }
 0x4dc   :  { %v2909_v47 = vrot.slane %v2895_v36, %v2901_v8 }
 0x4de   :  { %v2910_v1 = vcombine.low %v2902_v27, %v2909_v47 }
 0x4e0   :  { %v2917_v38 = vrot.slane %v2910_v1, %v2901_v8 }
 0x4e2   :  { %2923 = vst.msk [vmem:[%s4998_s13] sm:$0xf] %vm2921_vm8, %v2917_v38 }
 0x530   :  { %v3042_v26 = vpop.xlane.xlu1 %3041 }
 0x531   :  { %v3043_v41 = vrot.slane %v3042_v26, 4 }
 0x533   :  { %v3044_v39 = vadd.f32 %v3043_v41, %v3042_v26 }
 0x535   :  { %v3045_v32 = vrot.slane %v3044_v39, 2 }
 0x537   :  { %v3046_v16 = vadd.f32 %v3045_v32, %v3044_v39 }
 0x539   :  { %v3047_v29 = vrot.slane %v3046_v16, 1 }
 0x53b   :  { %v3048_v58 = vadd.f32 %v3047_v29, %v3046_v16 }
 0x53d   :  { %3489 = vpush %v3048_v58 }
 0x56e   :  { %s3490_s5 = spop %3489 }
 0x56f   :  { %v3050_v56 = vstv %s3490_s5 }
 0x570   :  { %3052 = vst.msk [vmem:[#allocation3] sm:$0x1] %vm3051_vm9, %v3050_v56 }
 0x571   :  { %3576 = shalt.err (!%p3573_p4)
}
 0x572   :  { %3064 = dma.vmem_to_hbm [thread:$0]  %s3062_s19, 16, %s4999_s14, [#allocation4]  }
 0x573   :  { %3585 = dma.done.wait [#allocation4], 16  }
 0x574   :  { %3586 = vsyncadd [#allocation4], 4294967280 }
 0x575   :  { %3070 = vsyncpa [#allocation4], 1 }

</bundles_post_ra>
